<compile_context>
chip_gen: v6e
topology: v6e:2x2x1
jax: 0.10.0
libtpu: 0.0.40
codegen_flags: <defaults>
</compile_context>

<pallas_src>
import math
from functools import partial

import jax
import jax.numpy as jnp
from jax import lax
from jax.experimental import pallas as pl
from jax.experimental.pallas import tpu as pltpu

ACT_DTYPE = jnp.bfloat16               # inter-kernel activation stream
VMEM_LIMIT_BYTES = 48 * 1024 * 1024    # > v5e/v6e default scoped limits, < v7x 64 MiB


def _default_tm_target():
    try:
        kind = jax.devices()[0].device_kind.lower()
    except Exception:
        return 256
    if "v6" in kind:     # 128 MiB VMEM: larger M tiles approach the HBM roofline
        return 512
    return 256           # v7x has only 64 MiB VMEM; keep 256 there (and on v5e)


# --------------------------- Buffered(1) feature probe ----------------------

_BUFFERED1_OK = None


def _buffered1_supported():
    """Single-buffering grid-invariant blocks halves their VMEM footprint; probe once
    so the script still runs if this JAX build rejects buffer_count=1."""
    global _BUFFERED1_OK
    if _BUFFERED1_OK is None:
        try:
            def k(x_ref, o_ref):
                o_ref[...] = x_ref[...]
            y = pl.pallas_call(
                k, grid=(1,),
                in_specs=[pl.BlockSpec((8, 128), lambda i: (0, 0),
                                       pipeline_mode=pl.Buffered(1))],
                out_specs=pl.BlockSpec((8, 128), lambda i: (0, 0)),
                out_shape=jax.ShapeDtypeStruct((8, 128), jnp.float32),
            )(jnp.zeros((8, 128), jnp.float32))
            jax.block_until_ready(y)
            _BUFFERED1_OK = True
        except Exception:
            _BUFFERED1_OK = False
    return _BUFFERED1_OK


def _const_spec(shape):
    """BlockSpec for a grid-invariant operand (constant index_map, 1-D grid)."""
    ndim = len(shape)
    index_map = lambda i: (0,) * ndim
    if _buffered1_supported():
        return pl.BlockSpec(shape, index_map, pipeline_mode=pl.Buffered(1))
    return pl.BlockSpec(shape, index_map)


# ------------------------------ tiling helper ------------------------------

def _pick_tile(dim, target, align):
    """Largest tile <= target that divides dim and is `align`-aligned."""
    if dim <= target:
        return dim
    t = (target // align) * align
    while t >= align:
        if dim % t == 0:
            return t
        t -= align
    # No aligned divisor: fall back to the full dim, but refuse silently pathological
    # blocks that would blow the scoped VMEM limit (perf-review correctness concern).
    assert dim <= 4 * target, (
        f"no {align}-aligned tile divides M={dim}; pad the row dimension")
    return dim


# ----------------------- fused (LN) + matmul (+res) ------------------------

def _linear_kernel(*refs, has_ln, has_bias, has_res):
    idx = 0
    x_ref = refs[idx]; idx += 1
    if has_ln:
        g_ref, bln_ref = refs[idx], refs[idx + 1]; idx += 2
    w_ref = refs[idx]; idx += 1
    if has_bias:
        bias_ref = refs[idx]; idx += 1
    if has_res:
        r_ref = refs[idx]; idx += 1
    o_ref = refs[idx]

    if has_ln:
        x = x_ref[...].astype(jnp.float32)
        mu = jnp.mean(x, axis=-1, keepdims=True)
        xc = x - mu
        var = jnp.mean(xc * xc, axis=-1, keepdims=True)
        xn = xc * lax.rsqrt(var + 1e-5) * g_ref[...] + bln_ref[...]
        xb = xn.astype(jnp.bfloat16)
    else:
        xb = x_ref[...].astype(jnp.bfloat16)          # direct bf16 cast, no f32 detour

    acc = jnp.dot(xb, w_ref[...].astype(jnp.bfloat16),
                  preferred_element_type=jnp.float32)
    if has_bias:
        acc = acc + bias_ref[...]
    if has_res:
        acc = acc + r_ref[...].astype(jnp.float32)
    o_ref[...] = acc.astype(o_ref.dtype)


def fused_linear(x, w, b=None, *, ln=None, residual=None, out_dtype=None,
                 tm_target=None):
    """y = [residual +] (LN(x) if ln else x) @ w [+ b].   x:[M,K]  w:[K,N].

    Full-N weight residency: 1-D grid over M tiles; W/bias/LN params are fetched once
    per call (single-buffered when supported)."""
    M, K = x.shape
    N = w.shape[1]
    tm = _pick_tile(M, tm_target or _default_tm_target(), 8)
    grid = (M // tm,)

    in_specs = [pl.BlockSpec((tm, K), lambda i: (i, 0))]
    inputs = [x]
    if ln is not None:
        g, bln = ln
        in_specs += [_const_spec((1, K)), _const_spec((1, K))]
        inputs += [g.reshape(1, K).astype(jnp.float32),
                   bln.reshape(1, K).astype(jnp.float32)]
    in_specs += [_const_spec((K, N))]
    inputs += [w]
    if b is not None:
        in_specs += [_const_spec((1, N))]
        inputs += [b.reshape(1, N).astype(jnp.float32)]
    if residual is not None:
        in_specs += [pl.BlockSpec((tm, N), lambda i: (i, 0))]
        inputs += [residual]

    return pl.pallas_call(
        partial(_linear_kernel, has_ln=ln is not None, has_bias=b is not None,
                has_res=residual is not None),
        grid=grid,
        in_specs=in_specs,
        out_specs=pl.BlockSpec((tm, N), lambda i: (i, 0)),
        out_shape=jax.ShapeDtypeStruct((M, N), out_dtype or ACT_DTYPE),
        compiler_params=pltpu.CompilerParams(
            dimension_semantics=("parallel",),
            vmem_limit_bytes=VMEM_LIMIT_BYTES),
    )(*inputs)


# --------------------------- standalone LayerNorm ---------------------------

def _ln_kernel(x_ref, g_ref, b_ref, o_ref):
    x = x_ref[...].astype(jnp.float32)
    mu = jnp.mean(x, axis=-1, keepdims=True)
    xc = x - mu
    var = jnp.mean(xc * xc, axis=-1, keepdims=True)
    o_ref[...] = (xc * lax.rsqrt(var + 1e-5) * g_ref[...] + b_ref[...]).astype(o_ref.dtype)


def layernorm(x, g, b, *, out_dtype=None, tm_target=None):
    M, D = x.shape
    tm = _pick_tile(M, tm_target or _default_tm_target(), 8)
    return pl.pallas_call(
        _ln_kernel,
        grid=(M // tm,),
        in_specs=[pl.BlockSpec((tm, D), lambda i: (i, 0)),
                  _const_spec((1, D)), _const_spec((1, D))],
        out_specs=pl.BlockSpec((tm, D), lambda i: (i, 0)),
        out_shape=jax.ShapeDtypeStruct((M, D), out_dtype or ACT_DTYPE),
        compiler_params=pltpu.CompilerParams(
            dimension_semantics=("parallel",),
            vmem_limit_bytes=VMEM_LIMIT_BYTES),
    )(x, g.reshape(1, D).astype(jnp.float32), b.reshape(1, D).astype(jnp.float32))


# ------------------ fused LN + MLP (fc, QuickGELU, proj) + res ---------------

def _ln_mlp_kernel(x_ref, g_ref, b_ref, w1_ref, b1_ref, w2_ref, b2_ref, o_ref):
    x = x_ref[...].astype(jnp.float32)
    mu = jnp.mean(x, axis=-1, keepdims=True)
    xc = x - mu
    var = jnp.mean(xc * xc, axis=-1, keepdims=True)
    xn = xc * lax.rsqrt(var + 1e-5) * g_ref[...] + b_ref[...]

    h = jnp.dot(xn.astype(jnp.bfloat16), w1_ref[...].astype(jnp.bfloat16),
                preferred_element_type=jnp.float32) + b1_ref[...]
    h = h * jax.nn.sigmoid(1.702 * h)                       # QuickGELU
    y = jnp.dot(h.astype(jnp.bfloat16), w2_ref[...].astype(jnp.bfloat16),
                preferred_element_type=jnp.float32) + b2_ref[...]
    o_ref[...] = (x + y).astype(o_ref.dtype)                # residual fused


def ln_mlp_residual(x, g, b, w1, b1, w2, b2, *, out_dtype=None, tm_target=None):
    # TODO(synk): at very large widths on v7x, add an H4 grid axis with an f32
    # accumulator scratch instead of shrinking tm (per perf review).
    M, D = x.shape
    H4 = w1.shape[1]
    tm = _pick_tile(M, tm_target or _default_tm_target(), 8)
    return pl.pallas_call(
        _ln_mlp_kernel,
        grid=(M // tm,),
        in_specs=[pl.BlockSpec((tm, D), lambda i: (i, 0)),
                  _const_spec((1, D)), _const_spec((1, D)),
                  _const_spec((D, H4)), _const_spec((1, H4)),
                  _const_spec((H4, D)), _const_spec((1, D))],
        out_specs=pl.BlockSpec((tm, D), lambda i: (i, 0)),
        out_shape=jax.ShapeDtypeStruct((M, D), out_dtype or ACT_DTYPE),
        compiler_params=pltpu.CompilerParams(
            dimension_semantics=("parallel",),
            vmem_limit_bytes=VMEM_LIMIT_BYTES),
    )(x, g.reshape(1, D).astype(jnp.float32), b.reshape(1, D).astype(jnp.float32),
      w1, b1.reshape(1, H4).astype(jnp.float32),
      w2, b2.reshape(1, D).astype(jnp.float32))


# ---------------------- multi-head attention (all heads) --------------------

def _sdpa_kernel(qkv_ref, o_ref, *, n_head, dh, scale, valid_len, hpg):
    qkv = qkv_ref[0]                                        # [S, 3D] fused QKV
    S = qkv.shape[0]
    D = n_head * dh
    if valid_len < S:
        kmask = lax.broadcasted_iota(jnp.int32, (S, S), 1) < valid_len
    gw = hpg * dh                                           # 128-lane store groups
    for g in range(n_head // hpg):                          # static unroll
        outs = []
        for hh in range(hpg):
            h = g * hpg + hh
            q = (qkv[:, h * dh:(h + 1) * dh].astype(jnp.float32) * scale
                 ).astype(jnp.bfloat16)                     # scale folded into q
            k = qkv[:, D + h * dh:D + (h + 1) * dh].astype(jnp.bfloat16)
            v = qkv[:, 2 * D + h * dh:2 * D + (h + 1) * dh].astype(jnp.bfloat16)
            s = lax.dot_general(q, k, (((1,), (1,)), ((), ())),
                                preferred_element_type=jnp.float32)
            if valid_len < S:
                s = jnp.where(kmask, s, jnp.float32(-1e30))  # mask padded keys
            m = jnp.max(s, axis=-1, keepdims=True)
            p = jnp.exp(s - m)
            p = p * pl.reciprocal(jnp.sum(p, axis=-1, keepdims=True), approx=True)
            outs.append(jnp.dot(p.astype(jnp.bfloat16), v,
                                preferred_element_type=jnp.float32))
        blk = outs[0] if hpg == 1 else jnp.concatenate(outs, axis=-1)
        o_ref[0, :, g * gw:(g + 1) * gw] = blk.astype(o_ref.dtype)  # lane-dense store


def sdpa(qkv, n_head, scale, out_dtype=None):
    """qkv: [Nb, S, 3D] (fused QKV, batch-first) -> [Nb, S, D]."""
    Nb, S, threeD = qkv.shape
    D = threeD // 3
    dh = D // n_head
    S_pad = ((S + 7) // 8) * 8                              # sublane-align token dim
    if S_pad != S:
        qkv = jnp.pad(qkv, ((0, 0), (0, S_pad - S), (0, 0)))
    hpg = 1                                                 # heads per output store
    if dh < 128 and 128 % dh == 0 and n_head % (128 // dh) == 0:
        hpg = 128 // dh
    out = pl.pallas_call(
        partial(_sdpa_kernel, n_head=n_head, dh=dh, scale=scale,
                valid_len=S, hpg=hpg),
        grid=(Nb,),
        in_specs=[pl.BlockSpec((1, S_pad, threeD), lambda b: (b, 0, 0))],  # one stream
        out_specs=pl.BlockSpec((1, S_pad, D), lambda b: (b, 0, 0)),
        out_shape=jax.ShapeDtypeStruct((Nb, S_pad, D), out_dtype or ACT_DTYPE),
        compiler_params=pltpu.CompilerParams(
            dimension_semantics=("parallel",),
            vmem_limit_bytes=VMEM_LIMIT_BYTES),
    )(qkv)
    return out[:, :S, :] if S_pad != S else out


# --------------------------- model composition ------------------------------

def cross_frame_block(x, p, n_head, T):
    """CrossFramelAttentionBlock forward, batch-first x: [B*T, L, D]."""
    BT, L, D = x.shape
    B = BT // T
    scale = 1.0 / math.sqrt(D // n_head)

    # --- message-token path: temporal attention over the T frames of each video ---
    cls = x[:, 0, :]                                                     # [BT, D]
    msg = fused_linear(cls, p["msg_fc_w"], p["msg_fc_b"])                # message_fc
    qkv = fused_linear(msg, p["msg_attn"]["wqkv"], p["msg_attn"]["bqkv"],
                       ln=(p["msg_ln_g"], p["msg_ln_b"]))                # LN fused into QKV
    o = sdpa(qkv.reshape(B, T, 3 * D), n_head, scale).reshape(BT, D)
    msg = fused_linear(o, p["msg_attn"]["wo"], p["msg_attn"]["bo"],
                       residual=msg)                                     # out-proj + residual

    # --- main spatial attention over L+1 tokens (patches + cls + message) ---
    xc = jnp.concatenate([x, msg.reshape(BT, 1, D)], axis=1)             # [BT, L+1, D]
    qkv = fused_linear(xc.reshape(BT * (L + 1), D),
                       p["attn"]["wqkv"], p["attn"]["bqkv"],
                       ln=(p["ln1_g"], p["ln1_b"]))                      # LN1 fused into QKV
    o = sdpa(qkv.reshape(BT, L + 1, 3 * D), n_head, scale)               # [BT, L+1, D]
    o = o[:, :L, :].reshape(BT * L, D)                                   # drop message token
    res = xc[:, :L, :].reshape(BT * L, D)
    xa = fused_linear(o, p["attn"]["wo"], p["attn"]["bo"], residual=res)

    # --- LN2 + fc + QuickGELU + proj + residual, the [tm, 4D] stays in VMEM ---
    xo = ln_mlp_residual(xa, p["ln2_g"], p["ln2_b"],
                         p["fc_w"], p["fc_b"], p["proj_w"], p["proj_b"])
    return xo.reshape(BT, L, D)


def cct_forward(x, params, *, patch_size, n_head, T):
    """CrossFrameCommunicationTransformer.forward.  x: NCHW [B*T, 3, H, W]."""
    BT, C, H, W = x.shape
    P = patch_size
    gh, gw = H // P, W // P
    Np = gh * gw
    D = params["positional_embedding"].shape[-1]

    # conv1 (stride=patch, no bias) == patch unfold (JAX glue) + Pallas matmul
    # TODO(synk): fold the unfold/transpose into the embed matmul BlockSpec if the
    # patch embed ever becomes a measurable fraction at high resolution.
    patches = (x.reshape(BT, C, gh, P, gw, P)
                .transpose(0, 2, 4, 1, 3, 5)
                .reshape(BT * Np, C * P * P))
    emb = fused_linear(patches, params["conv_w"]).reshape(BT, Np, D)

    cls = jnp.broadcast_to(params["class_embedding"][None, None, :].astype(emb.dtype),
                           (BT, 1, D))
    z = jnp.concatenate([cls, emb], axis=1) + params["positional_embedding"][None]
    L = Np + 1
    z = layernorm(z.reshape(BT * L, D),
                  params["ln_pre_g"], params["ln_pre_b"]).reshape(BT, L, D)

    # transformer (batch-first layout throughout; semantics identical to seq-first)
    for blk in params["blocks"]:
        z = cross_frame_block(z, blk, n_head, T)

    # ln_post fused with the final projection (no-bias path), f32 output
    cls_x = fused_linear(z[:, 0, :], params["proj"],
                         ln=(params["ln_post_g"], params["ln_post_b"]),
                         out_dtype=jnp.float32)
    return cls_x, z[:, 1:, :]


# ----------------------------- parameter init -------------------------------

def init_params(key, *, input_resolution, patch_size, width, layers, output_dim):
    scale = width ** (-0.5)
    n_patches = (input_resolution // patch_size) ** 2

    def nrm(k, shape, std=0.02, dtype=jnp.bfloat16):
        return (std * jax.random.normal(k, shape, dtype=jnp.float32)).astype(dtype)

    keys = jax.random.split(key, 4 + layers)
    params = {
        # matmul weights stored bf16 (MXU-native, half the HBM traffic)
        "conv_w": nrm(keys[0], (3 * patch_size * patch_size, width)),
        "class_embedding": (scale * jax.random.normal(keys[1], (width,))).astype(jnp.float32),
        "positional_embedding": (scale * jax.random.normal(
            keys[2], (n_patches + 1, width))).astype(jnp.float32),
        "ln_pre_g": jnp.ones((width,), jnp.float32),
        "ln_pre_b": jnp.zeros((width,), jnp.float32),
        "ln_post_g": jnp.ones((width,), jnp.float32),
        "ln_post_b": jnp.zeros((width,), jnp.float32),
        "proj": (scale * jax.random.normal(keys[3], (width, output_dim))).astype(jnp.bfloat16),
        "blocks": [],
    }

    def attn_params(k):
        k1, k2 = jax.random.split(k, 2)
        return {"wqkv": nrm(k1, (width, 3 * width)),          # fused Q,K,V projection
                "bqkv": jnp.zeros((3 * width,), jnp.float32),
                "wo": nrm(k2, (width, width)),
                "bo": jnp.zeros((width,), jnp.float32)}

    for i in range(layers):
        bk = jax.random.split(keys[4 + i], 5)
        params["blocks"].append({
            "msg_fc_w": nrm(bk[0], (width, width)),
            "msg_fc_b": jnp.zeros((width,), jnp.float32),
            "msg_ln_g": jnp.ones((width,), jnp.float32),
            "msg_ln_b": jnp.zeros((width,), jnp.float32),
            "msg_attn": attn_params(bk[1]),
            "attn": attn_params(bk[2]),
            "ln1_g": jnp.ones((width,), jnp.float32),
            "ln1_b": jnp.zeros((width,), jnp.float32),
            "ln2_g": jnp.ones((width,), jnp.float32),
            "ln2_b": jnp.zeros((width,), jnp.float32),
            "fc_w": nrm(bk[3], (width, 4 * width)),
            "fc_b": jnp.zeros((4 * width,), jnp.float32),
            "proj_w": nrm(bk[4], (4 * width, width)),
            "proj_b": jnp.zeros((width,), jnp.float32),
        })
    return params


# ---------------------------------- main ------------------------------------

if __name__ == "__main__":
    # small, lane-dense demo shapes (D multiple of 128, T multiple of 8)
    B, T = 2, 8                                # batch, frames  -> BT = 16
    input_resolution, patch_size = 32, 16      # 2x2 = 4 patches, L = 5
    width, layers, heads, output_dim = 128, 2, 2, 128

    _buffered1_supported()                     # run the feature probe outside jit

    key = jax.random.PRNGKey(0)
    kx, kp = jax.random.split(key)
    x = jax.random.normal(kx, (B * T, 3, input_resolution, input_resolution),
                          dtype=jnp.float32)
    params = init_params(kp, input_resolution=input_resolution,
                         patch_size=patch_size, width=width,
                         layers=layers, output_dim=output_dim)

    fwd = jax.jit(partial(cct_forward, patch_size=patch_size, n_head=heads, T=T))
    cls_x, tokens = fwd(x, params)
    jax.block_until_ready((cls_x, tokens))

    n_patches = (input_resolution // patch_size) ** 2
    assert cls_x.shape == (B * T, output_dim), cls_x.shape
    assert tokens.shape == (B * T, n_patches, width), tokens.shape
    assert bool(jnp.all(jnp.isfinite(cls_x.astype(jnp.float32))))
    assert bool(jnp.all(jnp.isfinite(tokens.astype(jnp.float32))))
    print("KERNEL_OK")
</pallas_src>

<mosaic_0001>
module attributes {stable_mosaic.version = 11 : i64} {
  func.func @k(%arg0: i32, %arg1: memref<8x128xf32, #tpu.memory_space<vmem>>, %arg2: memref<8x128xf32, #tpu.memory_space<vmem>>) attributes {dimension_semantics = [#tpu.dimension_semantics<arbitrary>], iteration_bounds = array<i64: 1>, scalar_prefetch = 0 : i64, scratch_operands = 0 : i64, tpu.core_type = #tpu.core_type<tc>, window_params = [{pipeline_mode = #tpu.pipeline_mode<synchronous>, transform_indices = @transform_0, window_bounds = array<i64: 8, 128>}, {pipeline_mode = #tpu.pipeline_mode<synchronous>, transform_indices = @transform_1, window_bounds = array<i64: 8, 128>}]} {
    %c0 = arith.constant 0 : index
    %c0_0 = arith.constant 0 : index
    %0 = vector.load %arg1[%c0, %c0_0] : memref<8x128xf32, #tpu.memory_space<vmem>>, vector<8x128xf32>
    %c0_1 = arith.constant 0 : index
    %c0_2 = arith.constant 0 : index
    %1 = vector.load %arg2[%c0_1, %c0_2] : memref<8x128xf32, #tpu.memory_space<vmem>>, vector<8x128xf32>
    tpu.vector_store %arg2[%c0_1, %c0_2], %0 {strides = array<i32>} : memref<8x128xf32, #tpu.memory_space<vmem>>, vector<8x128xf32>,
    return
  }
  func.func @transform_0(%arg0: i32) -> (i32, i32) {
    %c0_i32 = arith.constant 0 : i32
    %c0_i32_0 = arith.constant 0 : i32
    %c0_i32_1 = arith.constant 0 : i32
    return %c0_i32, %c0_i32_0 : i32, i32
  }
  func.func @transform_1(%arg0: i32) -> (i32, i32) {
    %c0_i32 = arith.constant 0 : i32
    %c0_i32_0 = arith.constant 0 : i32
    %c0_i32_1 = arith.constant 0 : i32
    return %c0_i32, %c0_i32_0 : i32, i32
  }
}

module attributes {stable_mosaic.version = 11 : i64} {
  func.func @_linear_kernel(%arg0: i32, %arg1: memref<64x768xf32, #tpu.memory_space<vmem>>, %arg2: memref<768x128xbf16, #tpu.memory_space<vmem>>, %arg3: memref<64x128xbf16, #tpu.memory_space<vmem>>) attributes {dimension_semantics = [#tpu.dimension_semantics<parallel>], iteration_bounds = array<i64: 1>, scalar_prefetch = 0 : i64, scratch_operands = 0 : i64, tpu.core_type = #tpu.core_type<tc>, window_params = [{transform_indices = @transform_0, window_bounds = array<i64: 64, 768>}, {pipeline_mode = #tpu.pipeline_mode<synchronous>, transform_indices = @transform_1, window_bounds = array<i64: 768, 128>}, {transform_indices = @transform_2, window_bounds = array<i64: 64, 128>}]} {
    %c0 = arith.constant 0 : index
    %c0_0 = arith.constant 0 : index
    %0 = vector.load %arg1[%c0, %c0_0] : memref<64x768xf32, #tpu.memory_space<vmem>>, vector<64x768xf32>
    %1 = arith.truncf %0 : vector<64x768xf32> to vector<64x768xbf16>
    %c0_1 = arith.constant 0 : index
    %c0_2 = arith.constant 0 : index
    %2 = vector.load %arg2[%c0_1, %c0_2] : memref<768x128xbf16, #tpu.memory_space<vmem>>, vector<768x128xbf16>
    %cst = arith.constant dense<0.000000e+00> : vector<64x128xf32>
    %3 = tpu.matmul %1, %2, %cst {dimension_numbers = #tpu.dot_dimension_numbers<[1], [0], [0], [1], [0, 0, 1, 1], [], []>} : vector<64x768xbf16>, vector<768x128xbf16>, vector<64x128xf32> -> vector<64x128xf32>
    %4 = arith.truncf %3 : vector<64x128xf32> to vector<64x128xbf16>
    %c0_3 = arith.constant 0 : index
    %c0_4 = arith.constant 0 : index
    %5 = vector.load %arg3[%c0_3, %c0_4] : memref<64x128xbf16, #tpu.memory_space<vmem>>, vector<64x128xbf16>
    tpu.vector_store %arg3[%c0_3, %c0_4], %4 {strides = array<i32>} : memref<64x128xbf16, #tpu.memory_space<vmem>>, vector<64x128xbf16>,
    return
  }
  func.func @transform_0(%arg0: i32) -> (i32, i32) {
    %c0_i32 = arith.constant 0 : i32
    %c0_i32_0 = arith.constant 0 : i32
    return %arg0, %c0_i32 : i32, i32
  }
  func.func @transform_1(%arg0: i32) -> (i32, i32) {
    %c0_i32 = arith.constant 0 : i32
    %c0_i32_0 = arith.constant 0 : i32
    %c0_i32_1 = arith.constant 0 : i32
    return %c0_i32, %c0_i32_0 : i32, i32
  }
  func.func @transform_2(%arg0: i32) -> (i32, i32) {
    %c0_i32 = arith.constant 0 : i32
    %c0_i32_0 = arith.constant 0 : i32
    return %arg0, %c0_i32 : i32, i32
  }
}

module attributes {stable_mosaic.version = 11 : i64} {
  func.func @_ln_kernel(%arg0: i32, %arg1: memref<80x128xf32, #tpu.memory_space<vmem>>, %arg2: memref<1x128xf32, #tpu.memory_space<vmem>>, %arg3: memref<1x128xf32, #tpu.memory_space<vmem>>, %arg4: memref<80x128xbf16, #tpu.memory_space<vmem>>) attributes {dimension_semantics = [#tpu.dimension_semantics<parallel>], iteration_bounds = array<i64: 1>, scalar_prefetch = 0 : i64, scratch_operands = 0 : i64, tpu.core_type = #tpu.core_type<tc>, window_params = [{transform_indices = @transform_0, window_bounds = array<i64: 80, 128>}, {pipeline_mode = #tpu.pipeline_mode<synchronous>, transform_indices = @transform_1, window_bounds = array<i64: 1, 128>}, {pipeline_mode = #tpu.pipeline_mode<synchronous>, transform_indices = @transform_2, window_bounds = array<i64: 1, 128>}, {transform_indices = @transform_3, window_bounds = array<i64: 80, 128>}]} {
    %c0 = arith.constant 0 : index
    %c0_0 = arith.constant 0 : index
    %0 = vector.load %arg1[%c0, %c0_0] : memref<80x128xf32, #tpu.memory_space<vmem>>, vector<80x128xf32>
    %cst = arith.constant dense<0.000000e+00> : vector<80xf32>
    %1 = vector.multi_reduction <add>, %0, %cst [1] : vector<80x128xf32> to vector<80xf32>
    %2 = vector.shape_cast %1 : vector<80xf32> to vector<80x1xf32>
    %cst_1 = arith.constant 1.280000e+02 : f32
    %3 = vector.broadcast %cst_1 : f32 to vector<80x1xf32>
    %4 = arith.divf %2, %3 : vector<80x1xf32>
    %5 = vector.broadcast %4 : vector<80x1xf32> to vector<80x128xf32>
    %6 = arith.subf %0, %5 : vector<80x128xf32>
    %7 = arith.mulf %6, %6 : vector<80x128xf32>
    %cst_2 = arith.constant dense<0.000000e+00> : vector<80xf32>
    %8 = vector.multi_reduction <add>, %7, %cst_2 [1] : vector<80x128xf32> to vector<80xf32>
    %9 = vector.shape_cast %8 : vector<80xf32> to vector<80x1xf32>
    %cst_3 = arith.constant 1.280000e+02 : f32
    %10 = vector.broadcast %cst_3 : f32 to vector<80x1xf32>
    %11 = arith.divf %9, %10 : vector<80x1xf32>
    %cst_4 = arith.constant 9.99999974E-6 : f32
    %12 = vector.broadcast %cst_4 : f32 to vector<80x1xf32>
    %13 = arith.addf %11, %12 : vector<80x1xf32>
    %14 = math.rsqrt %13 : vector<80x1xf32>
    %15 = vector.broadcast %14 : vector<80x1xf32> to vector<80x128xf32>
    %16 = arith.mulf %6, %15 : vector<80x128xf32>
    %c0_5 = arith.constant 0 : index
    %c0_6 = arith.constant 0 : index
    %17 = vector.load %arg2[%c0_5, %c0_6] : memref<1x128xf32, #tpu.memory_space<vmem>>, vector<1x128xf32>
    %18 = vector.broadcast %17 : vector<1x128xf32> to vector<80x128xf32>
    %19 = arith.mulf %16, %18 : vector<80x128xf32>
    %c0_7 = arith.constant 0 : index
    %c0_8 = arith.constant 0 : index
    %20 = vector.load %arg3[%c0_7, %c0_8] : memref<1x128xf32, #tpu.memory_space<vmem>>, vector<1x128xf32>
    %21 = vector.broadcast %20 : vector<1x128xf32> to vector<80x128xf32>
    %22 = arith.addf %19, %21 : vector<80x128xf32>
    %23 = arith.truncf %22 : vector<80x128xf32> to vector<80x128xbf16>
    %c0_9 = arith.constant 0 : index
    %c0_10 = arith.constant 0 : index
    %24 = vector.load %arg4[%c0_9, %c0_10] : memref<80x128xbf16, #tpu.memory_space<vmem>>, vector<80x128xbf16>
    tpu.vector_store %arg4[%c0_9, %c0_10], %23 {strides = array<i32>} : memref<80x128xbf16, #tpu.memory_space<vmem>>, vector<80x128xbf16>,
    return
  }
  func.func @transform_0(%arg0: i32) -> (i32, i32) {
    %c0_i32 = arith.constant 0 : i32
    %c0_i32_0 = arith.constant 0 : i32
    return %arg0, %c0_i32 : i32, i32
  }
  func.func @transform_1(%arg0: i32) -> (i32, i32) {
    %c0_i32 = arith.constant 0 : i32
    %c0_i32_0 = arith.constant 0 : i32
    %c0_i32_1 = arith.constant 0 : i32
    return %c0_i32, %c0_i32_0 : i32, i32
  }
  func.func @transform_2(%arg0: i32) -> (i32, i32) {
    %c0_i32 = arith.constant 0 : i32
    %c0_i32_0 = arith.constant 0 : i32
    %c0_i32_1 = arith.constant 0 : i32
    return %c0_i32, %c0_i32_0 : i32, i32
  }
  func.func @transform_3(%arg0: i32) -> (i32, i32) {
    %c0_i32 = arith.constant 0 : i32
    %c0_i32_0 = arith.constant 0 : i32
    return %arg0, %c0_i32 : i32, i32
  }
}

module attributes {stable_mosaic.version = 11 : i64} {
  func.func @_linear_kernel(%arg0: i32, %arg1: memref<16x128xbf16, #tpu.memory_space<vmem>>, %arg2: memref<128x128xbf16, #tpu.memory_space<vmem>>, %arg3: memref<1x128xf32, #tpu.memory_space<vmem>>, %arg4: memref<16x128xbf16, #tpu.memory_space<vmem>>) attributes {dimension_semantics = [#tpu.dimension_semantics<parallel>], iteration_bounds = array<i64: 1>, scalar_prefetch = 0 : i64, scratch_operands = 0 : i64, tpu.core_type = #tpu.core_type<tc>, window_params = [{transform_indices = @transform_0, window_bounds = array<i64: 16, 128>}, {pipeline_mode = #tpu.pipeline_mode<synchronous>, transform_indices = @transform_1, window_bounds = array<i64: 128, 128>}, {pipeline_mode = #tpu.pipeline_mode<synchronous>, transform_indices = @transform_2, window_bounds = array<i64: 1, 128>}, {transform_indices = @transform_3, window_bounds = array<i64: 16, 128>}]} {
    %c0 = arith.constant 0 : index
    %c0_0 = arith.constant 0 : index
    %0 = vector.load %arg1[%c0, %c0_0] : memref<16x128xbf16, #tpu.memory_space<vmem>>, vector<16x128xbf16>
    %c0_1 = arith.constant 0 : index
    %c0_2 = arith.constant 0 : index
    %1 = vector.load %arg2[%c0_1, %c0_2] : memref<128x128xbf16, #tpu.memory_space<vmem>>, vector<128x128xbf16>
    %cst = arith.constant dense<0.000000e+00> : vector<16x128xf32>
    %2 = tpu.matmul %0, %1, %cst {dimension_numbers = #tpu.dot_dimension_numbers<[1], [0], [0], [1], [0, 0, 1, 1], [], []>} : vector<16x128xbf16>, vector<128x128xbf16>, vector<16x128xf32> -> vector<16x128xf32>
    %c0_3 = arith.constant 0 : index
    %c0_4 = arith.constant 0 : index
    %3 = vector.load %arg3[%c0_3, %c0_4] : memref<1x128xf32, #tpu.memory_space<vmem>>, vector<1x128xf32>
    %4 = vector.broadcast %3 : vector<1x128xf32> to vector<16x128xf32>
    %5 = arith.addf %2, %4 : vector<16x128xf32>
    %6 = arith.truncf %5 : vector<16x128xf32> to vector<16x128xbf16>
    %c0_5 = arith.constant 0 : index
    %c0_6 = arith.constant 0 : index
    %7 = vector.load %arg4[%c0_5, %c0_6] : memref<16x128xbf16, #tpu.memory_space<vmem>>, vector<16x128xbf16>
    tpu.vector_store %arg4[%c0_5, %c0_6], %6 {strides = array<i32>} : memref<16x128xbf16, #tpu.memory_space<vmem>>, vector<16x128xbf16>,
    return
  }
  func.func @transform_0(%arg0: i32) -> (i32, i32) {
    %c0_i32 = arith.constant 0 : i32
    %c0_i32_0 = arith.constant 0 : i32
    return %arg0, %c0_i32 : i32, i32
  }
  func.func @transform_1(%arg0: i32) -> (i32, i32) {
    %c0_i32 = arith.constant 0 : i32
    %c0_i32_0 = arith.constant 0 : i32
    %c0_i32_1 = arith.constant 0 : i32
    return %c0_i32, %c0_i32_0 : i32, i32
  }
  func.func @transform_2(%arg0: i32) -> (i32, i32) {
    %c0_i32 = arith.constant 0 : i32
    %c0_i32_0 = arith.constant 0 : i32
    %c0_i32_1 = arith.constant 0 : i32
    return %c0_i32, %c0_i32_0 : i32, i32
  }
  func.func @transform_3(%arg0: i32) -> (i32, i32) {
    %c0_i32 = arith.constant 0 : i32
    %c0_i32_0 = arith.constant 0 : i32
    return %arg0, %c0_i32 : i32, i32
  }
}

module attributes {stable_mosaic.version = 11 : i64} {
  func.func @_linear_kernel(%arg0: i32, %arg1: memref<16x128xbf16, #tpu.memory_space<vmem>>, %arg2: memref<1x128xf32, #tpu.memory_space<vmem>>, %arg3: memref<1x128xf32, #tpu.memory_space<vmem>>, %arg4: memref<128x384xbf16, #tpu.memory_space<vmem>>, %arg5: memref<1x384xf32, #tpu.memory_space<vmem>>, %arg6: memref<16x384xbf16, #tpu.memory_space<vmem>>) attributes {dimension_semantics = [#tpu.dimension_semantics<parallel>], iteration_bounds = array<i64: 1>, scalar_prefetch = 0 : i64, scratch_operands = 0 : i64, tpu.core_type = #tpu.core_type<tc>, window_params = [{transform_indices = @transform_0, window_bounds = array<i64: 16, 128>}, {pipeline_mode = #tpu.pipeline_mode<synchronous>, transform_indices = @transform_1, window_bounds = array<i64: 1, 128>}, {pipeline_mode = #tpu.pipeline_mode<synchronous>, transform_indices = @transform_2, window_bounds = array<i64: 1, 128>}, {pipeline_mode = #tpu.pipeline_mode<synchronous>, transform_indices = @transform_3, window_bounds = array<i64: 128, 384>}, {pipeline_mode = #tpu.pipeline_mode<synchronous>, transform_indices = @transform_4, window_bounds = array<i64: 1, 384>}, {transform_indices = @transform_5, window_bounds = array<i64: 16, 384>}]} {
    %c0 = arith.constant 0 : index
    %c0_0 = arith.constant 0 : index
    %0 = vector.load %arg1[%c0, %c0_0] : memref<16x128xbf16, #tpu.memory_space<vmem>>, vector<16x128xbf16>
    %1 = arith.extf %0 : vector<16x128xbf16> to vector<16x128xf32>
    %cst = arith.constant dense<0.000000e+00> : vector<16xf32>
    %2 = vector.multi_reduction <add>, %1, %cst [1] : vector<16x128xf32> to vector<16xf32>
    %3 = vector.shape_cast %2 : vector<16xf32> to vector<16x1xf32>
    %cst_1 = arith.constant 1.280000e+02 : f32
    %4 = vector.broadcast %cst_1 : f32 to vector<16x1xf32>
    %5 = arith.divf %3, %4 : vector<16x1xf32>
    %6 = vector.broadcast %5 : vector<16x1xf32> to vector<16x128xf32>
    %7 = arith.subf %1, %6 : vector<16x128xf32>
    %8 = arith.mulf %7, %7 : vector<16x128xf32>
    %cst_2 = arith.constant dense<0.000000e+00> : vector<16xf32>
    %9 = vector.multi_reduction <add>, %8, %cst_2 [1] : vector<16x128xf32> to vector<16xf32>
    %10 = vector.shape_cast %9 : vector<16xf32> to vector<16x1xf32>
    %cst_3 = arith.constant 1.280000e+02 : f32
    %11 = vector.broadcast %cst_3 : f32 to vector<16x1xf32>
    %12 = arith.divf %10, %11 : vector<16x1xf32>
    %cst_4 = arith.constant 9.99999974E-6 : f32
    %13 = vector.broadcast %cst_4 : f32 to vector<16x1xf32>
    %14 = arith.addf %12, %13 : vector<16x1xf32>
    %15 = math.rsqrt %14 : vector<16x1xf32>
    %16 = vector.broadcast %15 : vector<16x1xf32> to vector<16x128xf32>
    %17 = arith.mulf %7, %16 : vector<16x128xf32>
    %c0_5 = arith.constant 0 : index
    %c0_6 = arith.constant 0 : index
    %18 = vector.load %arg2[%c0_5, %c0_6] : memref<1x128xf32, #tpu.memory_space<vmem>>, vector<1x128xf32>
    %19 = vector.broadcast %18 : vector<1x128xf32> to vector<16x128xf32>
    %20 = arith.mulf %17, %19 : vector<16x128xf32>
    %c0_7 = arith.constant 0 : index
    %c0_8 = arith.constant 0 : index
    %21 = vector.load %arg3[%c0_7, %c0_8] : memref<1x128xf32, #tpu.memory_space<vmem>>, vector<1x128xf32>
    %22 = vector.broadcast %21 : vector<1x128xf32> to vector<16x128xf32>
    %23 = arith.addf %20, %22 : vector<16x128xf32>
    %24 = arith.truncf %23 : vector<16x128xf32> to vector<16x128xbf16>
    %c0_9 = arith.constant 0 : index
    %c0_10 = arith.constant 0 : index
    %25 = vector.load %arg4[%c0_9, %c0_10] : memref<128x384xbf16, #tpu.memory_space<vmem>>, vector<128x384xbf16>
    %cst_11 = arith.constant dense<0.000000e+00> : vector<16x384xf32>
    %26 = tpu.matmul %24, %25, %cst_11 {dimension_numbers = #tpu.dot_dimension_numbers<[1], [0], [0], [1], [0, 0, 1, 1], [], []>} : vector<16x128xbf16>, vector<128x384xbf16>, vector<16x384xf32> -> vector<16x384xf32>
    %c0_12 = arith.constant 0 : index
    %c0_13 = arith.constant 0 : index
    %27 = vector.load %arg5[%c0_12, %c0_13] : memref<1x384xf32, #tpu.memory_space<vmem>>, vector<1x384xf32>
    %28 = vector.broadcast %27 : vector<1x384xf32> to vector<16x384xf32>
    %29 = arith.addf %26, %28 : vector<16x384xf32>
    %30 = arith.truncf %29 : vector<16x384xf32> to vector<16x384xbf16>
    %c0_14 = arith.constant 0 : index
    %c0_15 = arith.constant 0 : index
    %31 = vector.load %arg6[%c0_14, %c0_15] : memref<16x384xbf16, #tpu.memory_space<vmem>>, vector<16x384xbf16>
    tpu.vector_store %arg6[%c0_14, %c0_15], %30 {strides = array<i32>} : memref<16x384xbf16, #tpu.memory_space<vmem>>, vector<16x384xbf16>,
    return
  }
  func.func @transform_0(%arg0: i32) -> (i32, i32) {
    %c0_i32 = arith.constant 0 : i32
    %c0_i32_0 = arith.constant 0 : i32
    return %arg0, %c0_i32 : i32, i32
  }
  func.func @transform_1(%arg0: i32) -> (i32, i32) {
    %c0_i32 = arith.constant 0 : i32
    %c0_i32_0 = arith.constant 0 : i32
    %c0_i32_1 = arith.constant 0 : i32
    return %c0_i32, %c0_i32_0 : i32, i32
  }
  func.func @transform_2(%arg0: i32) -> (i32, i32) {
    %c0_i32 = arith.constant 0 : i32
    %c0_i32_0 = arith.constant 0 : i32
    %c0_i32_1 = arith.constant 0 : i32
    return %c0_i32, %c0_i32_0 : i32, i32
  }
  func.func @transform_3(%arg0: i32) -> (i32, i32) {
    %c0_i32 = arith.constant 0 : i32
    %c0_i32_0 = arith.constant 0 : i32
    %c0_i32_1 = arith.constant 0 : i32
    return %c0_i32, %c0_i32_0 : i32, i32
  }
  func.func @transform_4(%arg0: i32) -> (i32, i32) {
    %c0_i32 = arith.constant 0 : i32
    %c0_i32_0 = arith.constant 0 : i32
    %c0_i32_1 = arith.constant 0 : i32
    return %c0_i32, %c0_i32_0 : i32, i32
  }
  func.func @transform_5(%arg0: i32) -> (i32, i32) {
    %c0_i32 = arith.constant 0 : i32
    %c0_i32_0 = arith.constant 0 : i32
    return %arg0, %c0_i32 : i32, i32
  }
}

module attributes {stable_mosaic.version = 11 : i64} {
  func.func @_sdpa_kernel(%arg0: i32, %arg1: memref<1x8x384xbf16, #tpu.memory_space<vmem>>, %arg2: memref<1x8x128xbf16, #tpu.memory_space<vmem>>) attributes {dimension_semantics = [#tpu.dimension_semantics<parallel>], iteration_bounds = array<i64: 2>, scalar_prefetch = 0 : i64, scratch_operands = 0 : i64, tpu.core_type = #tpu.core_type<tc>, window_params = [{transform_indices = @transform_0, window_bounds = array<i64: 1, 8, 384>}, {transform_indices = @transform_1, window_bounds = array<i64: 1, 8, 128>}]} {
    %c0 = arith.constant 0 : index
    %c0_0 = arith.constant 0 : index
    %c0_1 = arith.constant 0 : index
    %0 = vector.load %arg1[%c0, %c0_0, %c0_1] : memref<1x8x384xbf16, #tpu.memory_space<vmem>>, vector<1x8x384xbf16>
    %1 = vector.shape_cast %0 : vector<1x8x384xbf16> to vector<8x384xbf16>
    %2 = vector.extract_strided_slice %1 {offsets = [0, 0], sizes = [8, 64], strides = [1, 1]} : vector<8x384xbf16> to vector<8x64xbf16>
    %3 = arith.extf %2 : vector<8x64xbf16> to vector<8x64xf32>
    %cst = arith.constant 1.250000e-01 : f32
    %4 = vector.broadcast %cst : f32 to vector<8x64xf32>
    %5 = arith.mulf %3, %4 : vector<8x64xf32>
    %6 = arith.truncf %5 : vector<8x64xf32> to vector<8x64xbf16>
    %7 = vector.extract_strided_slice %1 {offsets = [0, 128], sizes = [8, 64], strides = [1, 1]} : vector<8x384xbf16> to vector<8x64xbf16>
    %8 = vector.extract_strided_slice %1 {offsets = [0, 256], sizes = [8, 64], strides = [1, 1]} : vector<8x384xbf16> to vector<8x64xbf16>
    %cst_2 = arith.constant dense<0.000000e+00> : vector<8x8xf32>
    %9 = tpu.matmul %6, %7, %cst_2 {dimension_numbers = #tpu.dot_dimension_numbers<[1], [1], [0], [0], [0, 0, 1, 0], [], []>} : vector<8x64xbf16>, vector<8x64xbf16>, vector<8x8xf32> -> vector<8x8xf32>
    %cst_3 = arith.constant dense<0xFF800000> : vector<8xf32>
    %10 = vector.multi_reduction <maximumf>, %9, %cst_3 [1] : vector<8x8xf32> to vector<8xf32>
    %11 = vector.shape_cast %10 : vector<8xf32> to vector<8x1xf32>
    %12 = vector.broadcast %11 : vector<8x1xf32> to vector<8x8xf32>
    %13 = arith.subf %9, %12 : vector<8x8xf32>
    %14 = math.exp %13 : vector<8x8xf32>
    %cst_4 = arith.constant dense<0.000000e+00> : vector<8xf32>
    %15 = vector.multi_reduction <add>, %14, %cst_4 [1] : vector<8x8xf32> to vector<8xf32>
    %16 = vector.shape_cast %15 : vector<8xf32> to vector<8x1xf32>
    %17 = tpu.reciprocal %16 {approx = true} : vector<8x1xf32> -> vector<8x1xf32>
    %18 = vector.broadcast %17 : vector<8x1xf32> to vector<8x8xf32>
    %19 = arith.mulf %14, %18 : vector<8x8xf32>
    %20 = arith.truncf %19 : vector<8x8xf32> to vector<8x8xbf16>
    %cst_5 = arith.constant dense<0.000000e+00> : vector<8x64xf32>
    %21 = tpu.matmul %20, %8, %cst_5 {dimension_numbers = #tpu.dot_dimension_numbers<[1], [0], [0], [1], [0, 0, 1, 1], [], []>} : vector<8x8xbf16>, vector<8x64xbf16>, vector<8x64xf32> -> vector<8x64xf32>
    %22 = vector.extract_strided_slice %1 {offsets = [0, 64], sizes = [8, 64], strides = [1, 1]} : vector<8x384xbf16> to vector<8x64xbf16>
    %23 = arith.extf %22 : vector<8x64xbf16> to vector<8x64xf32>
    %cst_6 = arith.constant 1.250000e-01 : f32
    %24 = vector.broadcast %cst_6 : f32 to vector<8x64xf32>
    %25 = arith.mulf %23, %24 : vector<8x64xf32>
    %26 = arith.truncf %25 : vector<8x64xf32> to vector<8x64xbf16>
    %27 = vector.extract_strided_slice %1 {offsets = [0, 192], sizes = [8, 64], strides = [1, 1]} : vector<8x384xbf16> to vector<8x64xbf16>
    %28 = vector.extract_strided_slice %1 {offsets = [0, 320], sizes = [8, 64], strides = [1, 1]} : vector<8x384xbf16> to vector<8x64xbf16>
    %cst_7 = arith.constant dense<0.000000e+00> : vector<8x8xf32>
    %29 = tpu.matmul %26, %27, %cst_7 {dimension_numbers = #tpu.dot_dimension_numbers<[1], [1], [0], [0], [0, 0, 1, 0], [], []>} : vector<8x64xbf16>, vector<8x64xbf16>, vector<8x8xf32> -> vector<8x8xf32>
    %cst_8 = arith.constant dense<0xFF800000> : vector<8xf32>
    %30 = vector.multi_reduction <maximumf>, %29, %cst_8 [1] : vector<8x8xf32> to vector<8xf32>
    %31 = vector.shape_cast %30 : vector<8xf32> to vector<8x1xf32>
    %32 = vector.broadcast %31 : vector<8x1xf32> to vector<8x8xf32>
    %33 = arith.subf %29, %32 : vector<8x8xf32>
    %34 = math.exp %33 : vector<8x8xf32>
    %cst_9 = arith.constant dense<0.000000e+00> : vector<8xf32>
    %35 = vector.multi_reduction <add>, %34, %cst_9 [1] : vector<8x8xf32> to vector<8xf32>
    %36 = vector.shape_cast %35 : vector<8xf32> to vector<8x1xf32>
    %37 = tpu.reciprocal %36 {approx = true} : vector<8x1xf32> -> vector<8x1xf32>
    %38 = vector.broadcast %37 : vector<8x1xf32> to vector<8x8xf32>
    %39 = arith.mulf %34, %38 : vector<8x8xf32>
    %40 = arith.truncf %39 : vector<8x8xf32> to vector<8x8xbf16>
    %cst_10 = arith.constant dense<0.000000e+00> : vector<8x64xf32>
    %41 = tpu.matmul %40, %28, %cst_10 {dimension_numbers = #tpu.dot_dimension_numbers<[1], [0], [0], [1], [0, 0, 1, 1], [], []>} : vector<8x8xbf16>, vector<8x64xbf16>, vector<8x64xf32> -> vector<8x64xf32>
    %42 = tpu.concatenate %21, %41 in 1 : vector<8x64xf32>, vector<8x64xf32> -> vector<8x128xf32>
    %43 = arith.truncf %42 : vector<8x128xf32> to vector<8x128xbf16>
    %c0_11 = arith.constant 0 : index
    %c0_12 = arith.constant 0 : index
    %c0_13 = arith.constant 0 : index
    %44 = vector.load %arg2[%c0_11, %c0_12, %c0_13] : memref<1x8x128xbf16, #tpu.memory_space<vmem>>, vector<1x8x128xbf16>
    %45 = vector.shape_cast %44 : vector<1x8x128xbf16> to vector<8x128xbf16>
    %46 = vector.shape_cast %43 : vector<8x128xbf16> to vector<1x8x128xbf16>
    tpu.vector_store %arg2[%c0_11, %c0_12, %c0_13], %46 {strides = array<i32>} : memref<1x8x128xbf16, #tpu.memory_space<vmem>>, vector<1x8x128xbf16>,
    return
  }
  func.func @transform_0(%arg0: i32) -> (i32, i32, i32) {
    %c0_i32 = arith.constant 0 : i32
    %c0_i32_0 = arith.constant 0 : i32
    %c0_i32_1 = arith.constant 0 : i32
    return %arg0, %c0_i32, %c0_i32_0 : i32, i32, i32
  }
  func.func @transform_1(%arg0: i32) -> (i32, i32, i32) {
    %c0_i32 = arith.constant 0 : i32
    %c0_i32_0 = arith.constant 0 : i32
    %c0_i32_1 = arith.constant 0 : i32
    return %arg0, %c0_i32, %c0_i32_0 : i32, i32, i32
  }
}

module attributes {stable_mosaic.version = 11 : i64} {
  func.func @_linear_kernel(%arg0: i32, %arg1: memref<16x128xbf16, #tpu.memory_space<vmem>>, %arg2: memref<128x128xbf16, #tpu.memory_space<vmem>>, %arg3: memref<1x128xf32, #tpu.memory_space<vmem>>, %arg4: memref<16x128xbf16, #tpu.memory_space<vmem>>, %arg5: memref<16x128xbf16, #tpu.memory_space<vmem>>) attributes {dimension_semantics = [#tpu.dimension_semantics<parallel>], iteration_bounds = array<i64: 1>, scalar_prefetch = 0 : i64, scratch_operands = 0 : i64, tpu.core_type = #tpu.core_type<tc>, window_params = [{transform_indices = @transform_0, window_bounds = array<i64: 16, 128>}, {pipeline_mode = #tpu.pipeline_mode<synchronous>, transform_indices = @transform_1, window_bounds = array<i64: 128, 128>}, {pipeline_mode = #tpu.pipeline_mode<synchronous>, transform_indices = @transform_2, window_bounds = array<i64: 1, 128>}, {transform_indices = @transform_3, window_bounds = array<i64: 16, 128>}, {transform_indices = @transform_4, window_bounds = array<i64: 16, 128>}]} {
    %c0 = arith.constant 0 : index
    %c0_0 = arith.constant 0 : index
    %0 = vector.load %arg1[%c0, %c0_0] : memref<16x128xbf16, #tpu.memory_space<vmem>>, vector<16x128xbf16>
    %c0_1 = arith.constant 0 : index
    %c0_2 = arith.constant 0 : index
    %1 = vector.load %arg2[%c0_1, %c0_2] : memref<128x128xbf16, #tpu.memory_space<vmem>>, vector<128x128xbf16>
    %cst = arith.constant dense<0.000000e+00> : vector<16x128xf32>
    %2 = tpu.matmul %0, %1, %cst {dimension_numbers = #tpu.dot_dimension_numbers<[1], [0], [0], [1], [0, 0, 1, 1], [], []>} : vector<16x128xbf16>, vector<128x128xbf16>, vector<16x128xf32> -> vector<16x128xf32>
    %c0_3 = arith.constant 0 : index
    %c0_4 = arith.constant 0 : index
    %3 = vector.load %arg3[%c0_3, %c0_4] : memref<1x128xf32, #tpu.memory_space<vmem>>, vector<1x128xf32>
    %4 = vector.broadcast %3 : vector<1x128xf32> to vector<16x128xf32>
    %5 = arith.addf %2, %4 : vector<16x128xf32>
    %c0_5 = arith.constant 0 : index
    %c0_6 = arith.constant 0 : index
    %6 = vector.load %arg4[%c0_5, %c0_6] : memref<16x128xbf16, #tpu.memory_space<vmem>>, vector<16x128xbf16>
    %7 = arith.extf %6 : vector<16x128xbf16> to vector<16x128xf32>
    %8 = arith.addf %5, %7 : vector<16x128xf32>
    %9 = arith.truncf %8 : vector<16x128xf32> to vector<16x128xbf16>
    %c0_7 = arith.constant 0 : index
    %c0_8 = arith.constant 0 : index
    %10 = vector.load %arg5[%c0_7, %c0_8] : memref<16x128xbf16, #tpu.memory_space<vmem>>, vector<16x128xbf16>
    tpu.vector_store %arg5[%c0_7, %c0_8], %9 {strides = array<i32>} : memref<16x128xbf16, #tpu.memory_space<vmem>>, vector<16x128xbf16>,
    return
  }
  func.func @transform_0(%arg0: i32) -> (i32, i32) {
    %c0_i32 = arith.constant 0 : i32
    %c0_i32_0 = arith.constant 0 : i32
    return %arg0, %c0_i32 : i32, i32
  }
  func.func @transform_1(%arg0: i32) -> (i32, i32) {
    %c0_i32 = arith.constant 0 : i32
    %c0_i32_0 = arith.constant 0 : i32
    %c0_i32_1 = arith.constant 0 : i32
    return %c0_i32, %c0_i32_0 : i32, i32
  }
  func.func @transform_2(%arg0: i32) -> (i32, i32) {
    %c0_i32 = arith.constant 0 : i32
    %c0_i32_0 = arith.constant 0 : i32
    %c0_i32_1 = arith.constant 0 : i32
    return %c0_i32, %c0_i32_0 : i32, i32
  }
  func.func @transform_3(%arg0: i32) -> (i32, i32) {
    %c0_i32 = arith.constant 0 : i32
    %c0_i32_0 = arith.constant 0 : i32
    return %arg0, %c0_i32 : i32, i32
  }
  func.func @transform_4(%arg0: i32) -> (i32, i32) {
    %c0_i32 = arith.constant 0 : i32
    %c0_i32_0 = arith.constant 0 : i32
    return %arg0, %c0_i32 : i32, i32
  }
}

module attributes {stable_mosaic.version = 11 : i64} {
  func.func @_linear_kernel(%arg0: i32, %arg1: memref<96x128xbf16, #tpu.memory_space<vmem>>, %arg2: memref<1x128xf32, #tpu.memory_space<vmem>>, %arg3: memref<1x128xf32, #tpu.memory_space<vmem>>, %arg4: memref<128x384xbf16, #tpu.memory_space<vmem>>, %arg5: memref<1x384xf32, #tpu.memory_space<vmem>>, %arg6: memref<96x384xbf16, #tpu.memory_space<vmem>>) attributes {dimension_semantics = [#tpu.dimension_semantics<parallel>], iteration_bounds = array<i64: 1>, scalar_prefetch = 0 : i64, scratch_operands = 0 : i64, tpu.core_type = #tpu.core_type<tc>, window_params = [{transform_indices = @transform_0, window_bounds = array<i64: 96, 128>}, {pipeline_mode = #tpu.pipeline_mode<synchronous>, transform_indices = @transform_1, window_bounds = array<i64: 1, 128>}, {pipeline_mode = #tpu.pipeline_mode<synchronous>, transform_indices = @transform_2, window_bounds = array<i64: 1, 128>}, {pipeline_mode = #tpu.pipeline_mode<synchronous>, transform_indices = @transform_3, window_bounds = array<i64: 128, 384>}, {pipeline_mode = #tpu.pipeline_mode<synchronous>, transform_indices = @transform_4, window_bounds = array<i64: 1, 384>}, {transform_indices = @transform_5, window_bounds = array<i64: 96, 384>}]} {
    %c0 = arith.constant 0 : index
    %c0_0 = arith.constant 0 : index
    %0 = vector.load %arg1[%c0, %c0_0] : memref<96x128xbf16, #tpu.memory_space<vmem>>, vector<96x128xbf16>
    %1 = arith.extf %0 : vector<96x128xbf16> to vector<96x128xf32>
    %cst = arith.constant dense<0.000000e+00> : vector<96xf32>
    %2 = vector.multi_reduction <add>, %1, %cst [1] : vector<96x128xf32> to vector<96xf32>
    %3 = vector.shape_cast %2 : vector<96xf32> to vector<96x1xf32>
    %cst_1 = arith.constant 1.280000e+02 : f32
    %4 = vector.broadcast %cst_1 : f32 to vector<96x1xf32>
    %5 = arith.divf %3, %4 : vector<96x1xf32>
    %6 = vector.broadcast %5 : vector<96x1xf32> to vector<96x128xf32>
    %7 = arith.subf %1, %6 : vector<96x128xf32>
    %8 = arith.mulf %7, %7 : vector<96x128xf32>
    %cst_2 = arith.constant dense<0.000000e+00> : vector<96xf32>
    %9 = vector.multi_reduction <add>, %8, %cst_2 [1] : vector<96x128xf32> to vector<96xf32>
    %10 = vector.shape_cast %9 : vector<96xf32> to vector<96x1xf32>
    %cst_3 = arith.constant 1.280000e+02 : f32
    %11 = vector.broadcast %cst_3 : f32 to vector<96x1xf32>
    %12 = arith.divf %10, %11 : vector<96x1xf32>
    %cst_4 = arith.constant 9.99999974E-6 : f32
    %13 = vector.broadcast %cst_4 : f32 to vector<96x1xf32>
    %14 = arith.addf %12, %13 : vector<96x1xf32>
    %15 = math.rsqrt %14 : vector<96x1xf32>
    %16 = vector.broadcast %15 : vector<96x1xf32> to vector<96x128xf32>
    %17 = arith.mulf %7, %16 : vector<96x128xf32>
    %c0_5 = arith.constant 0 : index
    %c0_6 = arith.constant 0 : index
    %18 = vector.load %arg2[%c0_5, %c0_6] : memref<1x128xf32, #tpu.memory_space<vmem>>, vector<1x128xf32>
    %19 = vector.broadcast %18 : vector<1x128xf32> to vector<96x128xf32>
    %20 = arith.mulf %17, %19 : vector<96x128xf32>
    %c0_7 = arith.constant 0 : index
    %c0_8 = arith.constant 0 : index
    %21 = vector.load %arg3[%c0_7, %c0_8] : memref<1x128xf32, #tpu.memory_space<vmem>>, vector<1x128xf32>
    %22 = vector.broadcast %21 : vector<1x128xf32> to vector<96x128xf32>
    %23 = arith.addf %20, %22 : vector<96x128xf32>
    %24 = arith.truncf %23 : vector<96x128xf32> to vector<96x128xbf16>
    %c0_9 = arith.constant 0 : index
    %c0_10 = arith.constant 0 : index
    %25 = vector.load %arg4[%c0_9, %c0_10] : memref<128x384xbf16, #tpu.memory_space<vmem>>, vector<128x384xbf16>
    %cst_11 = arith.constant dense<0.000000e+00> : vector<96x384xf32>
    %26 = tpu.matmul %24, %25, %cst_11 {dimension_numbers = #tpu.dot_dimension_numbers<[1], [0], [0], [1], [0, 0, 1, 1], [], []>} : vector<96x128xbf16>, vector<128x384xbf16>, vector<96x384xf32> -> vector<96x384xf32>
    %c0_12 = arith.constant 0 : index
    %c0_13 = arith.constant 0 : index
    %27 = vector.load %arg5[%c0_12, %c0_13] : memref<1x384xf32, #tpu.memory_space<vmem>>, vector<1x384xf32>
    %28 = vector.broadcast %27 : vector<1x384xf32> to vector<96x384xf32>
    %29 = arith.addf %26, %28 : vector<96x384xf32>
    %30 = arith.truncf %29 : vector<96x384xf32> to vector<96x384xbf16>
    %c0_14 = arith.constant 0 : index
    %c0_15 = arith.constant 0 : index
    %31 = vector.load %arg6[%c0_14, %c0_15] : memref<96x384xbf16, #tpu.memory_space<vmem>>, vector<96x384xbf16>
    tpu.vector_store %arg6[%c0_14, %c0_15], %30 {strides = array<i32>} : memref<96x384xbf16, #tpu.memory_space<vmem>>, vector<96x384xbf16>,
    return
  }
  func.func @transform_0(%arg0: i32) -> (i32, i32) {
    %c0_i32 = arith.constant 0 : i32
    %c0_i32_0 = arith.constant 0 : i32
    return %arg0, %c0_i32 : i32, i32
  }
  func.func @transform_1(%arg0: i32) -> (i32, i32) {
    %c0_i32 = arith.constant 0 : i32
    %c0_i32_0 = arith.constant 0 : i32
    %c0_i32_1 = arith.constant 0 : i32
    return %c0_i32, %c0_i32_0 : i32, i32
  }
  func.func @transform_2(%arg0: i32) -> (i32, i32) {
    %c0_i32 = arith.constant 0 : i32
    %c0_i32_0 = arith.constant 0 : i32
    %c0_i32_1 = arith.constant 0 : i32
    return %c0_i32, %c0_i32_0 : i32, i32
  }
  func.func @transform_3(%arg0: i32) -> (i32, i32) {
    %c0_i32 = arith.constant 0 : i32
    %c0_i32_0 = arith.constant 0 : i32
    %c0_i32_1 = arith.constant 0 : i32
    return %c0_i32, %c0_i32_0 : i32, i32
  }
  func.func @transform_4(%arg0: i32) -> (i32, i32) {
    %c0_i32 = arith.constant 0 : i32
    %c0_i32_0 = arith.constant 0 : i32
    %c0_i32_1 = arith.constant 0 : i32
    return %c0_i32, %c0_i32_0 : i32, i32
  }
  func.func @transform_5(%arg0: i32) -> (i32, i32) {
    %c0_i32 = arith.constant 0 : i32
    %c0_i32_0 = arith.constant 0 : i32
    return %arg0, %c0_i32 : i32, i32
  }
}

module attributes {stable_mosaic.version = 11 : i64} {
  func.func @_sdpa_kernel(%arg0: i32, %arg1: memref<1x8x384xbf16, #tpu.memory_space<vmem>>, %arg2: memref<1x8x128xbf16, #tpu.memory_space<vmem>>) attributes {dimension_semantics = [#tpu.dimension_semantics<parallel>], iteration_bounds = array<i64: 16>, scalar_prefetch = 0 : i64, scratch_operands = 0 : i64, tpu.core_type = #tpu.core_type<tc>, window_params = [{transform_indices = @transform_0, window_bounds = array<i64: 1, 8, 384>}, {transform_indices = @transform_1, window_bounds = array<i64: 1, 8, 128>}]} {
    %c0 = arith.constant 0 : index
    %c0_0 = arith.constant 0 : index
    %c0_1 = arith.constant 0 : index
    %0 = vector.load %arg1[%c0, %c0_0, %c0_1] : memref<1x8x384xbf16, #tpu.memory_space<vmem>>, vector<1x8x384xbf16>
    %1 = vector.shape_cast %0 : vector<1x8x384xbf16> to vector<8x384xbf16>
    %2 = tpu.iota {dimensions = array<i32: 1>} : vector<8x8xi32>
    %c6_i32 = arith.constant 6 : i32
    %3 = vector.broadcast %c6_i32 : i32 to vector<8x8xi32>
    %4 = arith.cmpi slt, %2, %3 : vector<8x8xi32>
    %5 = vector.extract_strided_slice %1 {offsets = [0, 0], sizes = [8, 64], strides = [1, 1]} : vector<8x384xbf16> to vector<8x64xbf16>
    %6 = arith.extf %5 : vector<8x64xbf16> to vector<8x64xf32>
    %cst = arith.constant 1.250000e-01 : f32
    %7 = vector.broadcast %cst : f32 to vector<8x64xf32>
    %8 = arith.mulf %6, %7 : vector<8x64xf32>
    %9 = arith.truncf %8 : vector<8x64xf32> to vector<8x64xbf16>
    %10 = vector.extract_strided_slice %1 {offsets = [0, 128], sizes = [8, 64], strides = [1, 1]} : vector<8x384xbf16> to vector<8x64xbf16>
    %11 = vector.extract_strided_slice %1 {offsets = [0, 256], sizes = [8, 64], strides = [1, 1]} : vector<8x384xbf16> to vector<8x64xbf16>
    %cst_2 = arith.constant dense<0.000000e+00> : vector<8x8xf32>
    %12 = tpu.matmul %9, %10, %cst_2 {dimension_numbers = #tpu.dot_dimension_numbers<[1], [1], [0], [0], [0, 0, 1, 0], [], []>} : vector<8x64xbf16>, vector<8x64xbf16>, vector<8x8xf32> -> vector<8x8xf32>
    %cst_3 = arith.constant -1.000000e+30 : f32
    %13 = vector.broadcast %cst_3 : f32 to vector<8x8xf32>
    %14 = arith.select %4, %12, %13 : vector<8x8xi1>, vector<8x8xf32>
    %cst_4 = arith.constant dense<0xFF800000> : vector<8xf32>
    %15 = vector.multi_reduction <maximumf>, %14, %cst_4 [1] : vector<8x8xf32> to vector<8xf32>
    %16 = vector.shape_cast %15 : vector<8xf32> to vector<8x1xf32>
    %17 = vector.broadcast %16 : vector<8x1xf32> to vector<8x8xf32>
    %18 = arith.subf %14, %17 : vector<8x8xf32>
    %19 = math.exp %18 : vector<8x8xf32>
    %cst_5 = arith.constant dense<0.000000e+00> : vector<8xf32>
    %20 = vector.multi_reduction <add>, %19, %cst_5 [1] : vector<8x8xf32> to vector<8xf32>
    %21 = vector.shape_cast %20 : vector<8xf32> to vector<8x1xf32>
    %22 = tpu.reciprocal %21 {approx = true} : vector<8x1xf32> -> vector<8x1xf32>
    %23 = vector.broadcast %22 : vector<8x1xf32> to vector<8x8xf32>
    %24 = arith.mulf %19, %23 : vector<8x8xf32>
    %25 = arith.truncf %24 : vector<8x8xf32> to vector<8x8xbf16>
    %cst_6 = arith.constant dense<0.000000e+00> : vector<8x64xf32>
    %26 = tpu.matmul %25, %11, %cst_6 {dimension_numbers = #tpu.dot_dimension_numbers<[1], [0], [0], [1], [0, 0, 1, 1], [], []>} : vector<8x8xbf16>, vector<8x64xbf16>, vector<8x64xf32> -> vector<8x64xf32>
    %27 = vector.extract_strided_slice %1 {offsets = [0, 64], sizes = [8, 64], strides = [1, 1]} : vector<8x384xbf16> to vector<8x64xbf16>
    %28 = arith.extf %27 : vector<8x64xbf16> to vector<8x64xf32>
    %cst_7 = arith.constant 1.250000e-01 : f32
    %29 = vector.broadcast %cst_7 : f32 to vector<8x64xf32>
    %30 = arith.mulf %28, %29 : vector<8x64xf32>
    %31 = arith.truncf %30 : vector<8x64xf32> to vector<8x64xbf16>
    %32 = vector.extract_strided_slice %1 {offsets = [0, 192], sizes = [8, 64], strides = [1, 1]} : vector<8x384xbf16> to vector<8x64xbf16>
    %33 = vector.extract_strided_slice %1 {offsets = [0, 320], sizes = [8, 64], strides = [1, 1]} : vector<8x384xbf16> to vector<8x64xbf16>
    %cst_8 = arith.constant dense<0.000000e+00> : vector<8x8xf32>
    %34 = tpu.matmul %31, %32, %cst_8 {dimension_numbers = #tpu.dot_dimension_numbers<[1], [1], [0], [0], [0, 0, 1, 0], [], []>} : vector<8x64xbf16>, vector<8x64xbf16>, vector<8x8xf32> -> vector<8x8xf32>
    %cst_9 = arith.constant -1.000000e+30 : f32
    %35 = vector.broadcast %cst_9 : f32 to vector<8x8xf32>
    %36 = arith.select %4, %34, %35 : vector<8x8xi1>, vector<8x8xf32>
    %cst_10 = arith.constant dense<0xFF800000> : vector<8xf32>
    %37 = vector.multi_reduction <maximumf>, %36, %cst_10 [1] : vector<8x8xf32> to vector<8xf32>
    %38 = vector.shape_cast %37 : vector<8xf32> to vector<8x1xf32>
    %39 = vector.broadcast %38 : vector<8x1xf32> to vector<8x8xf32>
    %40 = arith.subf %36, %39 : vector<8x8xf32>
    %41 = math.exp %40 : vector<8x8xf32>
    %cst_11 = arith.constant dense<0.000000e+00> : vector<8xf32>
    %42 = vector.multi_reduction <add>, %41, %cst_11 [1] : vector<8x8xf32> to vector<8xf32>
    %43 = vector.shape_cast %42 : vector<8xf32> to vector<8x1xf32>
    %44 = tpu.reciprocal %43 {approx = true} : vector<8x1xf32> -> vector<8x1xf32>
    %45 = vector.broadcast %44 : vector<8x1xf32> to vector<8x8xf32>
    %46 = arith.mulf %41, %45 : vector<8x8xf32>
    %47 = arith.truncf %46 : vector<8x8xf32> to vector<8x8xbf16>
    %cst_12 = arith.constant dense<0.000000e+00> : vector<8x64xf32>
    %48 = tpu.matmul %47, %33, %cst_12 {dimension_numbers = #tpu.dot_dimension_numbers<[1], [0], [0], [1], [0, 0, 1, 1], [], []>} : vector<8x8xbf16>, vector<8x64xbf16>, vector<8x64xf32> -> vector<8x64xf32>
    %49 = tpu.concatenate %26, %48 in 1 : vector<8x64xf32>, vector<8x64xf32> -> vector<8x128xf32>
    %50 = arith.truncf %49 : vector<8x128xf32> to vector<8x128xbf16>
    %c0_13 = arith.constant 0 : index
    %c0_14 = arith.constant 0 : index
    %c0_15 = arith.constant 0 : index
    %51 = vector.load %arg2[%c0_13, %c0_14, %c0_15] : memref<1x8x128xbf16, #tpu.memory_space<vmem>>, vector<1x8x128xbf16>
    %52 = vector.shape_cast %51 : vector<1x8x128xbf16> to vector<8x128xbf16>
    %53 = vector.shape_cast %50 : vector<8x128xbf16> to vector<1x8x128xbf16>
    tpu.vector_store %arg2[%c0_13, %c0_14, %c0_15], %53 {strides = array<i32>} : memref<1x8x128xbf16, #tpu.memory_space<vmem>>, vector<1x8x128xbf16>,
    return
  }
  func.func @transform_0(%arg0: i32) -> (i32, i32, i32) {
    %c0_i32 = arith.constant 0 : i32
    %c0_i32_0 = arith.constant 0 : i32
    %c0_i32_1 = arith.constant 0 : i32
    return %arg0, %c0_i32, %c0_i32_0 : i32, i32, i32
  }
  func.func @transform_1(%arg0: i32) -> (i32, i32, i32) {
    %c0_i32 = arith.constant 0 : i32
    %c0_i32_0 = arith.constant 0 : i32
    %c0_i32_1 = arith.constant 0 : i32
    return %arg0, %c0_i32, %c0_i32_0 : i32, i32, i32
  }
}

module attributes {stable_mosaic.version = 11 : i64} {
  func.func @_linear_kernel(%arg0: i32, %arg1: memref<80x128xbf16, #tpu.memory_space<vmem>>, %arg2: memref<128x128xbf16, #tpu.memory_space<vmem>>, %arg3: memref<1x128xf32, #tpu.memory_space<vmem>>, %arg4: memref<80x128xbf16, #tpu.memory_space<vmem>>, %arg5: memref<80x128xbf16, #tpu.memory_space<vmem>>) attributes {dimension_semantics = [#tpu.dimension_semantics<parallel>], iteration_bounds = array<i64: 1>, scalar_prefetch = 0 : i64, scratch_operands = 0 : i64, tpu.core_type = #tpu.core_type<tc>, window_params = [{transform_indices = @transform_0, window_bounds = array<i64: 80, 128>}, {pipeline_mode = #tpu.pipeline_mode<synchronous>, transform_indices = @transform_1, window_bounds = array<i64: 128, 128>}, {pipeline_mode = #tpu.pipeline_mode<synchronous>, transform_indices = @transform_2, window_bounds = array<i64: 1, 128>}, {transform_indices = @transform_3, window_bounds = array<i64: 80, 128>}, {transform_indices = @transform_4, window_bounds = array<i64: 80, 128>}]} {
    %c0 = arith.constant 0 : index
    %c0_0 = arith.constant 0 : index
    %0 = vector.load %arg1[%c0, %c0_0] : memref<80x128xbf16, #tpu.memory_space<vmem>>, vector<80x128xbf16>
    %c0_1 = arith.constant 0 : index
    %c0_2 = arith.constant 0 : index
    %1 = vector.load %arg2[%c0_1, %c0_2] : memref<128x128xbf16, #tpu.memory_space<vmem>>, vector<128x128xbf16>
    %cst = arith.constant dense<0.000000e+00> : vector<80x128xf32>
    %2 = tpu.matmul %0, %1, %cst {dimension_numbers = #tpu.dot_dimension_numbers<[1], [0], [0], [1], [0, 0, 1, 1], [], []>} : vector<80x128xbf16>, vector<128x128xbf16>, vector<80x128xf32> -> vector<80x128xf32>
    %c0_3 = arith.constant 0 : index
    %c0_4 = arith.constant 0 : index
    %3 = vector.load %arg3[%c0_3, %c0_4] : memref<1x128xf32, #tpu.memory_space<vmem>>, vector<1x128xf32>
    %4 = vector.broadcast %3 : vector<1x128xf32> to vector<80x128xf32>
    %5 = arith.addf %2, %4 : vector<80x128xf32>
    %c0_5 = arith.constant 0 : index
    %c0_6 = arith.constant 0 : index
    %6 = vector.load %arg4[%c0_5, %c0_6] : memref<80x128xbf16, #tpu.memory_space<vmem>>, vector<80x128xbf16>
    %7 = arith.extf %6 : vector<80x128xbf16> to vector<80x128xf32>
    %8 = arith.addf %5, %7 : vector<80x128xf32>
    %9 = arith.truncf %8 : vector<80x128xf32> to vector<80x128xbf16>
    %c0_7 = arith.constant 0 : index
    %c0_8 = arith.constant 0 : index
    %10 = vector.load %arg5[%c0_7, %c0_8] : memref<80x128xbf16, #tpu.memory_space<vmem>>, vector<80x128xbf16>
    tpu.vector_store %arg5[%c0_7, %c0_8], %9 {strides = array<i32>} : memref<80x128xbf16, #tpu.memory_space<vmem>>, vector<80x128xbf16>,
    return
  }
  func.func @transform_0(%arg0: i32) -> (i32, i32) {
    %c0_i32 = arith.constant 0 : i32
    %c0_i32_0 = arith.constant 0 : i32
    return %arg0, %c0_i32 : i32, i32
  }
  func.func @transform_1(%arg0: i32) -> (i32, i32) {
    %c0_i32 = arith.constant 0 : i32
    %c0_i32_0 = arith.constant 0 : i32
    %c0_i32_1 = arith.constant 0 : i32
    return %c0_i32, %c0_i32_0 : i32, i32
  }
  func.func @transform_2(%arg0: i32) -> (i32, i32) {
    %c0_i32 = arith.constant 0 : i32
    %c0_i32_0 = arith.constant 0 : i32
    %c0_i32_1 = arith.constant 0 : i32
    return %c0_i32, %c0_i32_0 : i32, i32
  }
  func.func @transform_3(%arg0: i32) -> (i32, i32) {
    %c0_i32 = arith.constant 0 : i32
    %c0_i32_0 = arith.constant 0 : i32
    return %arg0, %c0_i32 : i32, i32
  }
  func.func @transform_4(%arg0: i32) -> (i32, i32) {
    %c0_i32 = arith.constant 0 : i32
    %c0_i32_0 = arith.constant 0 : i32
    return %arg0, %c0_i32 : i32, i32
  }
}

module attributes {stable_mosaic.version = 11 : i64} {
  func.func @_linear_kernel(%arg0: i32, %arg1: memref<16x128xbf16, #tpu.memory_space<vmem>>, %arg2: memref<1x128xf32, #tpu.memory_space<vmem>>, %arg3: memref<1x128xf32, #tpu.memory_space<vmem>>, %arg4: memref<128x384xbf16, #tpu.memory_space<vmem>>, %arg5: memref<1x384xf32, #tpu.memory_space<vmem>>, %arg6: memref<16x384xbf16, #tpu.memory_space<vmem>>) attributes {dimension_semantics = [#tpu.dimension_semantics<parallel>], iteration_bounds = array<i64: 1>, scalar_prefetch = 0 : i64, scratch_operands = 0 : i64, tpu.core_type = #tpu.core_type<tc>, window_params = [{transform_indices = @transform_0, window_bounds = array<i64: 16, 128>}, {pipeline_mode = #tpu.pipeline_mode<synchronous>, transform_indices = @transform_1, window_bounds = array<i64: 1, 128>}, {pipeline_mode = #tpu.pipeline_mode<synchronous>, transform_indices = @transform_2, window_bounds = array<i64: 1, 128>}, {pipeline_mode = #tpu.pipeline_mode<synchronous>, transform_indices = @transform_3, window_bounds = array<i64: 128, 384>}, {pipeline_mode = #tpu.pipeline_mode<synchronous>, transform_indices = @transform_4, window_bounds = array<i64: 1, 384>}, {transform_indices = @transform_5, window_bounds = array<i64: 16, 384>}]} {
    %c0 = arith.constant 0 : index
    %c0_0 = arith.constant 0 : index
    %0 = vector.load %arg1[%c0, %c0_0] : memref<16x128xbf16, #tpu.memory_space<vmem>>, vector<16x128xbf16>
    %1 = arith.extf %0 : vector<16x128xbf16> to vector<16x128xf32>
    %cst = arith.constant dense<0.000000e+00> : vector<16xf32>
    %2 = vector.multi_reduction <add>, %1, %cst [1] : vector<16x128xf32> to vector<16xf32>
    %3 = vector.shape_cast %2 : vector<16xf32> to vector<16x1xf32>
    %cst_1 = arith.constant 1.280000e+02 : f32
    %4 = vector.broadcast %cst_1 : f32 to vector<16x1xf32>
    %5 = arith.divf %3, %4 : vector<16x1xf32>
    %6 = vector.broadcast %5 : vector<16x1xf32> to vector<16x128xf32>
    %7 = arith.subf %1, %6 : vector<16x128xf32>
    %8 = arith.mulf %7, %7 : vector<16x128xf32>
    %cst_2 = arith.constant dense<0.000000e+00> : vector<16xf32>
    %9 = vector.multi_reduction <add>, %8, %cst_2 [1] : vector<16x128xf32> to vector<16xf32>
    %10 = vector.shape_cast %9 : vector<16xf32> to vector<16x1xf32>
    %cst_3 = arith.constant 1.280000e+02 : f32
    %11 = vector.broadcast %cst_3 : f32 to vector<16x1xf32>
    %12 = arith.divf %10, %11 : vector<16x1xf32>
    %cst_4 = arith.constant 9.99999974E-6 : f32
    %13 = vector.broadcast %cst_4 : f32 to vector<16x1xf32>
    %14 = arith.addf %12, %13 : vector<16x1xf32>
    %15 = math.rsqrt %14 : vector<16x1xf32>
    %16 = vector.broadcast %15 : vector<16x1xf32> to vector<16x128xf32>
    %17 = arith.mulf %7, %16 : vector<16x128xf32>
    %c0_5 = arith.constant 0 : index
    %c0_6 = arith.constant 0 : index
    %18 = vector.load %arg2[%c0_5, %c0_6] : memref<1x128xf32, #tpu.memory_space<vmem>>, vector<1x128xf32>
    %19 = vector.broadcast %18 : vector<1x128xf32> to vector<16x128xf32>
    %20 = arith.mulf %17, %19 : vector<16x128xf32>
    %c0_7 = arith.constant 0 : index
    %c0_8 = arith.constant 0 : index
    %21 = vector.load %arg3[%c0_7, %c0_8] : memref<1x128xf32, #tpu.memory_space<vmem>>, vector<1x128xf32>
    %22 = vector.broadcast %21 : vector<1x128xf32> to vector<16x128xf32>
    %23 = arith.addf %20, %22 : vector<16x128xf32>
    %24 = arith.truncf %23 : vector<16x128xf32> to vector<16x128xbf16>
    %c0_9 = arith.constant 0 : index
    %c0_10 = arith.constant 0 : index
    %25 = vector.load %arg4[%c0_9, %c0_10] : memref<128x384xbf16, #tpu.memory_space<vmem>>, vector<128x384xbf16>
    %cst_11 = arith.constant dense<0.000000e+00> : vector<16x384xf32>
    %26 = tpu.matmul %24, %25, %cst_11 {dimension_numbers = #tpu.dot_dimension_numbers<[1], [0], [0], [1], [0, 0, 1, 1], [], []>} : vector<16x128xbf16>, vector<128x384xbf16>, vector<16x384xf32> -> vector<16x384xf32>
    %c0_12 = arith.constant 0 : index
    %c0_13 = arith.constant 0 : index
    %27 = vector.load %arg5[%c0_12, %c0_13] : memref<1x384xf32, #tpu.memory_space<vmem>>, vector<1x384xf32>
    %28 = vector.broadcast %27 : vector<1x384xf32> to vector<16x384xf32>
    %29 = arith.addf %26, %28 : vector<16x384xf32>
    %30 = arith.truncf %29 : vector<16x384xf32> to vector<16x384xbf16>
    %c0_14 = arith.constant 0 : index
    %c0_15 = arith.constant 0 : index
    %31 = vector.load %arg6[%c0_14, %c0_15] : memref<16x384xbf16, #tpu.memory_space<vmem>>, vector<16x384xbf16>
    tpu.vector_store %arg6[%c0_14, %c0_15], %30 {strides = array<i32>} : memref<16x384xbf16, #tpu.memory_space<vmem>>, vector<16x384xbf16>,
    return
  }
  func.func @transform_0(%arg0: i32) -> (i32, i32) {
    %c0_i32 = arith.constant 0 : i32
    %c0_i32_0 = arith.constant 0 : i32
    return %arg0, %c0_i32 : i32, i32
  }
  func.func @transform_1(%arg0: i32) -> (i32, i32) {
    %c0_i32 = arith.constant 0 : i32
    %c0_i32_0 = arith.constant 0 : i32
    %c0_i32_1 = arith.constant 0 : i32
    return %c0_i32, %c0_i32_0 : i32, i32
  }
  func.func @transform_2(%arg0: i32) -> (i32, i32) {
    %c0_i32 = arith.constant 0 : i32
    %c0_i32_0 = arith.constant 0 : i32
    %c0_i32_1 = arith.constant 0 : i32
    return %c0_i32, %c0_i32_0 : i32, i32
  }
  func.func @transform_3(%arg0: i32) -> (i32, i32) {
    %c0_i32 = arith.constant 0 : i32
    %c0_i32_0 = arith.constant 0 : i32
    %c0_i32_1 = arith.constant 0 : i32
    return %c0_i32, %c0_i32_0 : i32, i32
  }
  func.func @transform_4(%arg0: i32) -> (i32, i32) {
    %c0_i32 = arith.constant 0 : i32
    %c0_i32_0 = arith.constant 0 : i32
    %c0_i32_1 = arith.constant 0 : i32
    return %c0_i32, %c0_i32_0 : i32, i32
  }
  func.func @transform_5(%arg0: i32) -> (i32, i32) {
    %c0_i32 = arith.constant 0 : i32
    %c0_i32_0 = arith.constant 0 : i32
    return %arg0, %c0_i32 : i32, i32
  }
}

module attributes {stable_mosaic.version = 11 : i64} {
  func.func @_ln_mlp_kernel(%arg0: i32, %arg1: memref<80x128xbf16, #tpu.memory_space<vmem>>, %arg2: memref<1x128xf32, #tpu.memory_space<vmem>>, %arg3: memref<1x128xf32, #tpu.memory_space<vmem>>, %arg4: memref<128x512xbf16, #tpu.memory_space<vmem>>, %arg5: memref<1x512xf32, #tpu.memory_space<vmem>>, %arg6: memref<512x128xbf16, #tpu.memory_space<vmem>>, %arg7: memref<1x128xf32, #tpu.memory_space<vmem>>, %arg8: memref<80x128xbf16, #tpu.memory_space<vmem>>) attributes {dimension_semantics = [#tpu.dimension_semantics<parallel>], iteration_bounds = array<i64: 1>, scalar_prefetch = 0 : i64, scratch_operands = 0 : i64, tpu.core_type = #tpu.core_type<tc>, window_params = [{transform_indices = @transform_0, window_bounds = array<i64: 80, 128>}, {pipeline_mode = #tpu.pipeline_mode<synchronous>, transform_indices = @transform_1, window_bounds = array<i64: 1, 128>}, {pipeline_mode = #tpu.pipeline_mode<synchronous>, transform_indices = @transform_2, window_bounds = array<i64: 1, 128>}, {pipeline_mode = #tpu.pipeline_mode<synchronous>, transform_indices = @transform_3, window_bounds = array<i64: 128, 512>}, {pipeline_mode = #tpu.pipeline_mode<synchronous>, transform_indices = @transform_4, window_bounds = array<i64: 1, 512>}, {pipeline_mode = #tpu.pipeline_mode<synchronous>, transform_indices = @transform_5, window_bounds = array<i64: 512, 128>}, {pipeline_mode = #tpu.pipeline_mode<synchronous>, transform_indices = @transform_6, window_bounds = array<i64: 1, 128>}, {transform_indices = @transform_7, window_bounds = array<i64: 80, 128>}]} {
    %c0 = arith.constant 0 : index
    %c0_0 = arith.constant 0 : index
    %0 = vector.load %arg1[%c0, %c0_0] : memref<80x128xbf16, #tpu.memory_space<vmem>>, vector<80x128xbf16>
    %1 = arith.extf %0 : vector<80x128xbf16> to vector<80x128xf32>
    %cst = arith.constant dense<0.000000e+00> : vector<80xf32>
    %2 = vector.multi_reduction <add>, %1, %cst [1] : vector<80x128xf32> to vector<80xf32>
    %3 = vector.shape_cast %2 : vector<80xf32> to vector<80x1xf32>
    %cst_1 = arith.constant 1.280000e+02 : f32
    %4 = vector.broadcast %cst_1 : f32 to vector<80x1xf32>
    %5 = arith.divf %3, %4 : vector<80x1xf32>
    %6 = vector.broadcast %5 : vector<80x1xf32> to vector<80x128xf32>
    %7 = arith.subf %1, %6 : vector<80x128xf32>
    %8 = arith.mulf %7, %7 : vector<80x128xf32>
    %cst_2 = arith.constant dense<0.000000e+00> : vector<80xf32>
    %9 = vector.multi_reduction <add>, %8, %cst_2 [1] : vector<80x128xf32> to vector<80xf32>
    %10 = vector.shape_cast %9 : vector<80xf32> to vector<80x1xf32>
    %cst_3 = arith.constant 1.280000e+02 : f32
    %11 = vector.broadcast %cst_3 : f32 to vector<80x1xf32>
    %12 = arith.divf %10, %11 : vector<80x1xf32>
    %cst_4 = arith.constant 9.99999974E-6 : f32
    %13 = vector.broadcast %cst_4 : f32 to vector<80x1xf32>
    %14 = arith.addf %12, %13 : vector<80x1xf32>
    %15 = math.rsqrt %14 : vector<80x1xf32>
    %16 = vector.broadcast %15 : vector<80x1xf32> to vector<80x128xf32>
    %17 = arith.mulf %7, %16 : vector<80x128xf32>
    %c0_5 = arith.constant 0 : index
    %c0_6 = arith.constant 0 : index
    %18 = vector.load %arg2[%c0_5, %c0_6] : memref<1x128xf32, #tpu.memory_space<vmem>>, vector<1x128xf32>
    %19 = vector.broadcast %18 : vector<1x128xf32> to vector<80x128xf32>
    %20 = arith.mulf %17, %19 : vector<80x128xf32>
    %c0_7 = arith.constant 0 : index
    %c0_8 = arith.constant 0 : index
    %21 = vector.load %arg3[%c0_7, %c0_8] : memref<1x128xf32, #tpu.memory_space<vmem>>, vector<1x128xf32>
    %22 = vector.broadcast %21 : vector<1x128xf32> to vector<80x128xf32>
    %23 = arith.addf %20, %22 : vector<80x128xf32>
    %24 = arith.truncf %23 : vector<80x128xf32> to vector<80x128xbf16>
    %c0_9 = arith.constant 0 : index
    %c0_10 = arith.constant 0 : index
    %25 = vector.load %arg4[%c0_9, %c0_10] : memref<128x512xbf16, #tpu.memory_space<vmem>>, vector<128x512xbf16>
    %cst_11 = arith.constant dense<0.000000e+00> : vector<80x512xf32>
    %26 = tpu.matmul %24, %25, %cst_11 {dimension_numbers = #tpu.dot_dimension_numbers<[1], [0], [0], [1], [0, 0, 1, 1], [], []>} : vector<80x128xbf16>, vector<128x512xbf16>, vector<80x512xf32> -> vector<80x512xf32>
    %c0_12 = arith.constant 0 : index
    %c0_13 = arith.constant 0 : index
    %27 = vector.load %arg5[%c0_12, %c0_13] : memref<1x512xf32, #tpu.memory_space<vmem>>, vector<1x512xf32>
    %28 = vector.broadcast %27 : vector<1x512xf32> to vector<80x512xf32>
    %29 = arith.addf %26, %28 : vector<80x512xf32>
    %cst_14 = arith.constant 1.702000e+00 : f32
    %30 = vector.broadcast %cst_14 : f32 to vector<80x512xf32>
    %31 = arith.mulf %30, %29 : vector<80x512xf32>
    %32 = arith.negf %31 : vector<80x512xf32>
    %33 = math.exp %32 : vector<80x512xf32>
    %cst_15 = arith.constant 1.000000e+00 : f32
    %34 = vector.broadcast %cst_15 : f32 to vector<80x512xf32>
    %35 = arith.addf %34, %33 : vector<80x512xf32>
    %36 = arith.divf %34, %35 : vector<80x512xf32>
    %37 = arith.mulf %29, %36 : vector<80x512xf32>
    %38 = arith.truncf %37 : vector<80x512xf32> to vector<80x512xbf16>
    %c0_16 = arith.constant 0 : index
    %c0_17 = arith.constant 0 : index
    %39 = vector.load %arg6[%c0_16, %c0_17] : memref<512x128xbf16, #tpu.memory_space<vmem>>, vector<512x128xbf16>
    %cst_18 = arith.constant dense<0.000000e+00> : vector<80x128xf32>
    %40 = tpu.matmul %38, %39, %cst_18 {dimension_numbers = #tpu.dot_dimension_numbers<[1], [0], [0], [1], [0, 0, 1, 1], [], []>} : vector<80x512xbf16>, vector<512x128xbf16>, vector<80x128xf32> -> vector<80x128xf32>
    %c0_19 = arith.constant 0 : index
    %c0_20 = arith.constant 0 : index
    %41 = vector.load %arg7[%c0_19, %c0_20] : memref<1x128xf32, #tpu.memory_space<vmem>>, vector<1x128xf32>
    %42 = vector.broadcast %41 : vector<1x128xf32> to vector<80x128xf32>
    %43 = arith.addf %40, %42 : vector<80x128xf32>
    %44 = arith.addf %1, %43 : vector<80x128xf32>
    %45 = arith.truncf %44 : vector<80x128xf32> to vector<80x128xbf16>
    %c0_21 = arith.constant 0 : index
    %c0_22 = arith.constant 0 : index
    %46 = vector.load %arg8[%c0_21, %c0_22] : memref<80x128xbf16, #tpu.memory_space<vmem>>, vector<80x128xbf16>
    tpu.vector_store %arg8[%c0_21, %c0_22], %45 {strides = array<i32>} : memref<80x128xbf16, #tpu.memory_space<vmem>>, vector<80x128xbf16>,
    return
  }
  func.func @transform_0(%arg0: i32) -> (i32, i32) {
    %c0_i32 = arith.constant 0 : i32
    %c0_i32_0 = arith.constant 0 : i32
    return %arg0, %c0_i32 : i32, i32
  }
  func.func @transform_1(%arg0: i32) -> (i32, i32) {
    %c0_i32 = arith.constant 0 : i32
    %c0_i32_0 = arith.constant 0 : i32
    %c0_i32_1 = arith.constant 0 : i32
    return %c0_i32, %c0_i32_0 : i32, i32
  }
  func.func @transform_2(%arg0: i32) -> (i32, i32) {
    %c0_i32 = arith.constant 0 : i32
    %c0_i32_0 = arith.constant 0 : i32
    %c0_i32_1 = arith.constant 0 : i32
    return %c0_i32, %c0_i32_0 : i32, i32
  }
  func.func @transform_3(%arg0: i32) -> (i32, i32) {
    %c0_i32 = arith.constant 0 : i32
    %c0_i32_0 = arith.constant 0 : i32
    %c0_i32_1 = arith.constant 0 : i32
    return %c0_i32, %c0_i32_0 : i32, i32
  }
  func.func @transform_4(%arg0: i32) -> (i32, i32) {
    %c0_i32 = arith.constant 0 : i32
    %c0_i32_0 = arith.constant 0 : i32
    %c0_i32_1 = arith.constant 0 : i32
    return %c0_i32, %c0_i32_0 : i32, i32
  }
  func.func @transform_5(%arg0: i32) -> (i32, i32) {
    %c0_i32 = arith.constant 0 : i32
    %c0_i32_0 = arith.constant 0 : i32
    %c0_i32_1 = arith.constant 0 : i32
    return %c0_i32, %c0_i32_0 : i32, i32
  }
  func.func @transform_6(%arg0: i32) -> (i32, i32) {
    %c0_i32 = arith.constant 0 : i32
    %c0_i32_0 = arith.constant 0 : i32
    %c0_i32_1 = arith.constant 0 : i32
    return %c0_i32, %c0_i32_0 : i32, i32
  }
  func.func @transform_7(%arg0: i32) -> (i32, i32) {
    %c0_i32 = arith.constant 0 : i32
    %c0_i32_0 = arith.constant 0 : i32
    return %arg0, %c0_i32 : i32, i32
  }
}

module attributes {stable_mosaic.version = 11 : i64} {
  func.func @_linear_kernel(%arg0: i32, %arg1: memref<96x128xbf16, #tpu.memory_space<vmem>>, %arg2: memref<1x128xf32, #tpu.memory_space<vmem>>, %arg3: memref<1x128xf32, #tpu.memory_space<vmem>>, %arg4: memref<128x384xbf16, #tpu.memory_space<vmem>>, %arg5: memref<1x384xf32, #tpu.memory_space<vmem>>, %arg6: memref<96x384xbf16, #tpu.memory_space<vmem>>) attributes {dimension_semantics = [#tpu.dimension_semantics<parallel>], iteration_bounds = array<i64: 1>, scalar_prefetch = 0 : i64, scratch_operands = 0 : i64, tpu.core_type = #tpu.core_type<tc>, window_params = [{transform_indices = @transform_0, window_bounds = array<i64: 96, 128>}, {pipeline_mode = #tpu.pipeline_mode<synchronous>, transform_indices = @transform_1, window_bounds = array<i64: 1, 128>}, {pipeline_mode = #tpu.pipeline_mode<synchronous>, transform_indices = @transform_2, window_bounds = array<i64: 1, 128>}, {pipeline_mode = #tpu.pipeline_mode<synchronous>, transform_indices = @transform_3, window_bounds = array<i64: 128, 384>}, {pipeline_mode = #tpu.pipeline_mode<synchronous>, transform_indices = @transform_4, window_bounds = array<i64: 1, 384>}, {transform_indices = @transform_5, window_bounds = array<i64: 96, 384>}]} {
    %c0 = arith.constant 0 : index
    %c0_0 = arith.constant 0 : index
    %0 = vector.load %arg1[%c0, %c0_0] : memref<96x128xbf16, #tpu.memory_space<vmem>>, vector<96x128xbf16>
    %1 = arith.extf %0 : vector<96x128xbf16> to vector<96x128xf32>
    %cst = arith.constant dense<0.000000e+00> : vector<96xf32>
    %2 = vector.multi_reduction <add>, %1, %cst [1] : vector<96x128xf32> to vector<96xf32>
    %3 = vector.shape_cast %2 : vector<96xf32> to vector<96x1xf32>
    %cst_1 = arith.constant 1.280000e+02 : f32
    %4 = vector.broadcast %cst_1 : f32 to vector<96x1xf32>
    %5 = arith.divf %3, %4 : vector<96x1xf32>
    %6 = vector.broadcast %5 : vector<96x1xf32> to vector<96x128xf32>
    %7 = arith.subf %1, %6 : vector<96x128xf32>
    %8 = arith.mulf %7, %7 : vector<96x128xf32>
    %cst_2 = arith.constant dense<0.000000e+00> : vector<96xf32>
    %9 = vector.multi_reduction <add>, %8, %cst_2 [1] : vector<96x128xf32> to vector<96xf32>
    %10 = vector.shape_cast %9 : vector<96xf32> to vector<96x1xf32>
    %cst_3 = arith.constant 1.280000e+02 : f32
    %11 = vector.broadcast %cst_3 : f32 to vector<96x1xf32>
    %12 = arith.divf %10, %11 : vector<96x1xf32>
    %cst_4 = arith.constant 9.99999974E-6 : f32
    %13 = vector.broadcast %cst_4 : f32 to vector<96x1xf32>
    %14 = arith.addf %12, %13 : vector<96x1xf32>
    %15 = math.rsqrt %14 : vector<96x1xf32>
    %16 = vector.broadcast %15 : vector<96x1xf32> to vector<96x128xf32>
    %17 = arith.mulf %7, %16 : vector<96x128xf32>
    %c0_5 = arith.constant 0 : index
    %c0_6 = arith.constant 0 : index
    %18 = vector.load %arg2[%c0_5, %c0_6] : memref<1x128xf32, #tpu.memory_space<vmem>>, vector<1x128xf32>
    %19 = vector.broadcast %18 : vector<1x128xf32> to vector<96x128xf32>
    %20 = arith.mulf %17, %19 : vector<96x128xf32>
    %c0_7 = arith.constant 0 : index
    %c0_8 = arith.constant 0 : index
    %21 = vector.load %arg3[%c0_7, %c0_8] : memref<1x128xf32, #tpu.memory_space<vmem>>, vector<1x128xf32>
    %22 = vector.broadcast %21 : vector<1x128xf32> to vector<96x128xf32>
    %23 = arith.addf %20, %22 : vector<96x128xf32>
    %24 = arith.truncf %23 : vector<96x128xf32> to vector<96x128xbf16>
    %c0_9 = arith.constant 0 : index
    %c0_10 = arith.constant 0 : index
    %25 = vector.load %arg4[%c0_9, %c0_10] : memref<128x384xbf16, #tpu.memory_space<vmem>>, vector<128x384xbf16>
    %cst_11 = arith.constant dense<0.000000e+00> : vector<96x384xf32>
    %26 = tpu.matmul %24, %25, %cst_11 {dimension_numbers = #tpu.dot_dimension_numbers<[1], [0], [0], [1], [0, 0, 1, 1], [], []>} : vector<96x128xbf16>, vector<128x384xbf16>, vector<96x384xf32> -> vector<96x384xf32>
    %c0_12 = arith.constant 0 : index
    %c0_13 = arith.constant 0 : index
    %27 = vector.load %arg5[%c0_12, %c0_13] : memref<1x384xf32, #tpu.memory_space<vmem>>, vector<1x384xf32>
    %28 = vector.broadcast %27 : vector<1x384xf32> to vector<96x384xf32>
    %29 = arith.addf %26, %28 : vector<96x384xf32>
    %30 = arith.truncf %29 : vector<96x384xf32> to vector<96x384xbf16>
    %c0_14 = arith.constant 0 : index
    %c0_15 = arith.constant 0 : index
    %31 = vector.load %arg6[%c0_14, %c0_15] : memref<96x384xbf16, #tpu.memory_space<vmem>>, vector<96x384xbf16>
    tpu.vector_store %arg6[%c0_14, %c0_15], %30 {strides = array<i32>} : memref<96x384xbf16, #tpu.memory_space<vmem>>, vector<96x384xbf16>,
    return
  }
  func.func @transform_0(%arg0: i32) -> (i32, i32) {
    %c0_i32 = arith.constant 0 : i32
    %c0_i32_0 = arith.constant 0 : i32
    return %arg0, %c0_i32 : i32, i32
  }
  func.func @transform_1(%arg0: i32) -> (i32, i32) {
    %c0_i32 = arith.constant 0 : i32
    %c0_i32_0 = arith.constant 0 : i32
    %c0_i32_1 = arith.constant 0 : i32
    return %c0_i32, %c0_i32_0 : i32, i32
  }
  func.func @transform_2(%arg0: i32) -> (i32, i32) {
    %c0_i32 = arith.constant 0 : i32
    %c0_i32_0 = arith.constant 0 : i32
    %c0_i32_1 = arith.constant 0 : i32
    return %c0_i32, %c0_i32_0 : i32, i32
  }
  func.func @transform_3(%arg0: i32) -> (i32, i32) {
    %c0_i32 = arith.constant 0 : i32
    %c0_i32_0 = arith.constant 0 : i32
    %c0_i32_1 = arith.constant 0 : i32
    return %c0_i32, %c0_i32_0 : i32, i32
  }
  func.func @transform_4(%arg0: i32) -> (i32, i32) {
    %c0_i32 = arith.constant 0 : i32
    %c0_i32_0 = arith.constant 0 : i32
    %c0_i32_1 = arith.constant 0 : i32
    return %c0_i32, %c0_i32_0 : i32, i32
  }
  func.func @transform_5(%arg0: i32) -> (i32, i32) {
    %c0_i32 = arith.constant 0 : i32
    %c0_i32_0 = arith.constant 0 : i32
    return %arg0, %c0_i32 : i32, i32
  }
}

module attributes {stable_mosaic.version = 11 : i64} {
  func.func @_linear_kernel(%arg0: i32, %arg1: memref<16x128xbf16, #tpu.memory_space<vmem>>, %arg2: memref<1x128xf32, #tpu.memory_space<vmem>>, %arg3: memref<1x128xf32, #tpu.memory_space<vmem>>, %arg4: memref<128x128xbf16, #tpu.memory_space<vmem>>, %arg5: memref<16x128xf32, #tpu.memory_space<vmem>>) attributes {dimension_semantics = [#tpu.dimension_semantics<parallel>], iteration_bounds = array<i64: 1>, scalar_prefetch = 0 : i64, scratch_operands = 0 : i64, tpu.core_type = #tpu.core_type<tc>, window_params = [{transform_indices = @transform_0, window_bounds = array<i64: 16, 128>}, {pipeline_mode = #tpu.pipeline_mode<synchronous>, transform_indices = @transform_1, window_bounds = array<i64: 1, 128>}, {pipeline_mode = #tpu.pipeline_mode<synchronous>, transform_indices = @transform_2, window_bounds = array<i64: 1, 128>}, {pipeline_mode = #tpu.pipeline_mode<synchronous>, transform_indices = @transform_3, window_bounds = array<i64: 128, 128>}, {transform_indices = @transform_4, window_bounds = array<i64: 16, 128>}]} {
    %c0 = arith.constant 0 : index
    %c0_0 = arith.constant 0 : index
    %0 = vector.load %arg1[%c0, %c0_0] : memref<16x128xbf16, #tpu.memory_space<vmem>>, vector<16x128xbf16>
    %1 = arith.extf %0 : vector<16x128xbf16> to vector<16x128xf32>
    %cst = arith.constant dense<0.000000e+00> : vector<16xf32>
    %2 = vector.multi_reduction <add>, %1, %cst [1] : vector<16x128xf32> to vector<16xf32>
    %3 = vector.shape_cast %2 : vector<16xf32> to vector<16x1xf32>
    %cst_1 = arith.constant 1.280000e+02 : f32
    %4 = vector.broadcast %cst_1 : f32 to vector<16x1xf32>
    %5 = arith.divf %3, %4 : vector<16x1xf32>
    %6 = vector.broadcast %5 : vector<16x1xf32> to vector<16x128xf32>
    %7 = arith.subf %1, %6 : vector<16x128xf32>
    %8 = arith.mulf %7, %7 : vector<16x128xf32>
    %cst_2 = arith.constant dense<0.000000e+00> : vector<16xf32>
    %9 = vector.multi_reduction <add>, %8, %cst_2 [1] : vector<16x128xf32> to vector<16xf32>
    %10 = vector.shape_cast %9 : vector<16xf32> to vector<16x1xf32>
    %cst_3 = arith.constant 1.280000e+02 : f32
    %11 = vector.broadcast %cst_3 : f32 to vector<16x1xf32>
    %12 = arith.divf %10, %11 : vector<16x1xf32>
    %cst_4 = arith.constant 9.99999974E-6 : f32
    %13 = vector.broadcast %cst_4 : f32 to vector<16x1xf32>
    %14 = arith.addf %12, %13 : vector<16x1xf32>
    %15 = math.rsqrt %14 : vector<16x1xf32>
    %16 = vector.broadcast %15 : vector<16x1xf32> to vector<16x128xf32>
    %17 = arith.mulf %7, %16 : vector<16x128xf32>
    %c0_5 = arith.constant 0 : index
    %c0_6 = arith.constant 0 : index
    %18 = vector.load %arg2[%c0_5, %c0_6] : memref<1x128xf32, #tpu.memory_space<vmem>>, vector<1x128xf32>
    %19 = vector.broadcast %18 : vector<1x128xf32> to vector<16x128xf32>
    %20 = arith.mulf %17, %19 : vector<16x128xf32>
    %c0_7 = arith.constant 0 : index
    %c0_8 = arith.constant 0 : index
    %21 = vector.load %arg3[%c0_7, %c0_8] : memref<1x128xf32, #tpu.memory_space<vmem>>, vector<1x128xf32>
    %22 = vector.broadcast %21 : vector<1x128xf32> to vector<16x128xf32>
    %23 = arith.addf %20, %22 : vector<16x128xf32>
    %24 = arith.truncf %23 : vector<16x128xf32> to vector<16x128xbf16>
    %c0_9 = arith.constant 0 : index
    %c0_10 = arith.constant 0 : index
    %25 = vector.load %arg4[%c0_9, %c0_10] : memref<128x128xbf16, #tpu.memory_space<vmem>>, vector<128x128xbf16>
    %cst_11 = arith.constant dense<0.000000e+00> : vector<16x128xf32>
    %26 = tpu.matmul %24, %25, %cst_11 {dimension_numbers = #tpu.dot_dimension_numbers<[1], [0], [0], [1], [0, 0, 1, 1], [], []>} : vector<16x128xbf16>, vector<128x128xbf16>, vector<16x128xf32> -> vector<16x128xf32>
    %c0_12 = arith.constant 0 : index
    %c0_13 = arith.constant 0 : index
    %27 = vector.load %arg5[%c0_12, %c0_13] : memref<16x128xf32, #tpu.memory_space<vmem>>, vector<16x128xf32>
    tpu.vector_store %arg5[%c0_12, %c0_13], %26 {strides = array<i32>} : memref<16x128xf32, #tpu.memory_space<vmem>>, vector<16x128xf32>,
    return
  }
  func.func @transform_0(%arg0: i32) -> (i32, i32) {
    %c0_i32 = arith.constant 0 : i32
    %c0_i32_0 = arith.constant 0 : i32
    return %arg0, %c0_i32 : i32, i32
  }
  func.func @transform_1(%arg0: i32) -> (i32, i32) {
    %c0_i32 = arith.constant 0 : i32
    %c0_i32_0 = arith.constant 0 : i32
    %c0_i32_1 = arith.constant 0 : i32
    return %c0_i32, %c0_i32_0 : i32, i32
  }
  func.func @transform_2(%arg0: i32) -> (i32, i32) {
    %c0_i32 = arith.constant 0 : i32
    %c0_i32_0 = arith.constant 0 : i32
    %c0_i32_1 = arith.constant 0 : i32
    return %c0_i32, %c0_i32_0 : i32, i32
  }
  func.func @transform_3(%arg0: i32) -> (i32, i32) {
    %c0_i32 = arith.constant 0 : i32
    %c0_i32_0 = arith.constant 0 : i32
    %c0_i32_1 = arith.constant 0 : i32
    return %c0_i32, %c0_i32_0 : i32, i32
  }
  func.func @transform_4(%arg0: i32) -> (i32, i32) {
    %c0_i32 = arith.constant 0 : i32
    %c0_i32_0 = arith.constant 0 : i32
    return %arg0, %c0_i32 : i32, i32
  }
}

</mosaic_0001>

<bundles_post_ra>
// kernel: tpu_custom_call.1
= control target key start
LH: loop header
LB: loop body
LE: loop exit
PB: predicated region body
PF: predicated region fallthrough
CT: control target
= control target key end

     0   :  { %6 = vsyncpa [#allocation3], 0  ;;  %s102_s0 = inlined_call_operand.hbm [shape: f32[8,128], index: 0, kind: input, shape index: {}]   ;;  %s103_s1 = inlined_call_operand.hbm [shape: f32[8,128], index: 1, kind: output, shape index: {}]  }
   0x1   :  { %7 = vsyncpa [#allocation4], 0  ;;  %s84_s6 = smov [#allocation2]  }
   0x2   :  { %s14_s7 = sshll.u32 %s84_s6, 4  ;;  %s15_s7 = int_to_ptr.vmem [resolvable:$true] %s14_s7 }
   0x3   :  { %s48_s8 = scalar_lea.vmem %s15_s7, 128  ;;  %p53_p1 = scmp.lt.s32.totalorder %s15_s7, %s15_s7 }
   0x4   :  { %p49_p0 = scmp.ne.s32.totalorder %s15_s7, %s48_s8  ;;  %p54_p2 = scmp.lt.s32.totalorder %s48_s8, %s48_s8 }
   0x6   :  { %p55_p3 = por %p54_p2, %p53_p1 }
   0x8   :  { %p56_p4 = pnand %p55_p3, %p49_p0 }
   0xa   :  { %59 = shalt.err (!%p56_p4)
}
   0xb   :  { %17 = dma.hbm_to_vmem [thread:$0]  %s102_s0, 128, %s15_s7, [#allocation3]  }
   0xc   :  { %80 = dma.done.wait [#allocation3], 128  }
   0xd   :  { %81 = vsyncadd [#allocation3], 4294967168  ;;  %s85_s11 = smov [#allocation5]   ;;  %v21_v0 = vld [vmem:[#allocation2] sm:$0xff] }
   0xe   :  { %s29_s12 = sshll.u32 %s85_s11, 4  ;;  %22 = vst [vmem:[#allocation5] sm:$0xff] %v21_v0  ;;  %s30_s12 = int_to_ptr.vmem [resolvable:$true] %s29_s12 }
   0xf   :  { %s60_s13 = scalar_lea.vmem %s30_s12, 128  ;;  %p65_p6 = scmp.lt.s32.totalorder %s30_s12, %s30_s12 }
  0x10   :  { %p61_p5 = scmp.ne.s32.totalorder %s30_s12, %s60_s13  ;;  %p66_p7 = scmp.lt.s32.totalorder %s60_s13, %s60_s13 }
  0x12   :  { %p67_p8 = por %p66_p7, %p65_p6 }
  0x14   :  { %p68_p9 = pnand %p67_p8, %p61_p5 }
  0x16   :  { %71 = shalt.err (!%p68_p9)
}
  0x17   :  { %32 = dma.vmem_to_hbm [thread:$0]  %s30_s12, 128, %s103_s1, [#allocation4]  }
  0x18   :  { %82 = dma.done.wait [#allocation4], 128  }
  0x19   :  { %83 = vsyncadd [#allocation4], 4294967168 }
  0x1a   :  { %36 = vsyncpa [#allocation3], 1 }
  0x1b   :  { %37 = vsyncpa [#allocation4], 1 }

// kernel: cct_forward.19
= control target key start
LH: loop header
LB: loop body
LE: loop exit
PB: predicated region body
PF: predicated region fallthrough
CT: control target
= control target key end

     0   :  { %s1293_s1 = inlined_call_operand.vmem [shape: bf16[768,128], index: 1, kind: input, shape index: {}]   ;;  %s1294_s0 = inlined_call_operand.vmem [shape: f32[64,768], index: 0, kind: input, shape index: {}]   ;;  %s1295_s2 = inlined_call_operand.vmem [shape: bf16[64,128], index: 2, kind: output, shape index: {}]  }
   0x1   :  { %v930_v0 = vld [vmem:[%s1293_s1 + $0x78] sm:$0xff]   ;;  %v934_v4 = vld [vmem:[%s1293_s1 + $0x70] sm:$0xff]   ;;  %v938_v8 = vld [vmem:[%s1293_s1 + $0x68] sm:$0xff]  }
   0x2   :  { %v931_v1 = vld [vmem:[%s1293_s1 + $0xf8] sm:$0xff]   ;;  %794 = vmatprep.subr.bf16.mxu0 %v930_v0  ;;  %v935_v5 = vld [vmem:[%s1293_s1 + $0xf0] sm:$0xff]   ;;  %v939_v9 = vld [vmem:[%s1293_s1 + $0xe8] sm:$0xff]  }
   0x3   :  { %v932_v2 = vld [vmem:[%s1293_s1 + $0x38] sm:$0xff]   ;;  %834 = vmatprep.subr.bf16.mxu1 %v931_v1  ;;  %v936_v6 = vld [vmem:[%s1293_s1 + $0x30] sm:$0xff]   ;;  %v940_v10 = vld [vmem:[%s1293_s1 + $0x28] sm:$0xff]  }
   0x4   :  { %v933_v3 = vld [vmem:[%s1293_s1 + $0xb8] sm:$0xff]   ;;  %795 = vmatpush3.bf16.msra.mxu0 %v932_v2  ;;  %v937_v7 = vld [vmem:[%s1293_s1 + $0xb0] sm:$0xff]   ;;  %v941_v11 = vld [vmem:[%s1293_s1 + $0xa8] sm:$0xff]  }
   0x5   :  { %835 = vmatpush3.bf16.msra.mxu1 %v933_v3  ;;  %796 = vmatprep.subr.bf16.mxu0 %v934_v4  ;;  %v942_v12 = vld [vmem:[%s1293_s1 + $0x60] sm:$0xff]   ;;  %v946_v16 = vld [vmem:[%s1293_s1 + $0x58] sm:$0xff]   ;;  %v950_v20 = vld [vmem:[%s1293_s1 + $0x50] sm:$0xff]  }
   0x6   :  { %836 = vmatprep.subr.bf16.mxu1 %v935_v5  ;;  %v943_v13 = vld [vmem:[%s1293_s1 + $0xe0] sm:$0xff]   ;;  %v947_v17 = vld [vmem:[%s1293_s1 + $0xd8] sm:$0xff]   ;;  %v951_v21 = vld [vmem:[%s1293_s1 + $0xd0] sm:$0xff]  }
   0x7   :  { %v944_v14 = vld [vmem:[%s1293_s1 + $0x20] sm:$0xff]   ;;  %v948_v18 = vld [vmem:[%s1293_s1 + $0x18] sm:$0xff]   ;;  %v952_v22 = vld [vmem:[%s1293_s1 + $0x10] sm:$0xff]  }
   0x8   :  { %797 = vmatpush3.bf16.msra.mxu0 %v936_v6  ;;  %v945_v15 = vld [vmem:[%s1293_s1 + $0xa0] sm:$0xff]   ;;  %v949_v19 = vld [vmem:[%s1293_s1 + $0x98] sm:$0xff]   ;;  %v953_v23 = vld [vmem:[%s1293_s1 + $0x90] sm:$0xff]  }
   0x9   :  { %837 = vmatpush3.bf16.msra.mxu1 %v937_v7  ;;  %798 = vmatprep.subr.bf16.mxu0 %v938_v8  ;;  %v954_v24 = vld [vmem:[%s1293_s1 + $0x48] sm:$0xff]   ;;  %v958_v28 = vld [vmem:[%s1293_s1 + $0x40] sm:$0xff]   ;;  %v19_v33 = vld [vmem:[%s1294_s0 + $0x38] sm:$0xff] }
   0xa   :  { %838 = vmatprep.subr.bf16.mxu1 %v939_v9  ;;  %v955_v25 = vld [vmem:[%s1293_s1 + $0xc8] sm:$0xff]   ;;  %v959_v29 = vld [vmem:[%s1293_s1 + $0xc0] sm:$0xff]   ;;  %v15_v34 = vld [vmem:[%s1294_s0 + $0x18] sm:$0xff] }
   0xb   :  { %v956_v26 = vld [vmem:[%s1293_s1 + $0x8] sm:$0xff]   ;;  %v960_v30 = vld [vmem:[%s1293_s1] sm:$0xff]   ;;  %v18_v38 = vld [vmem:[%s1294_s0 + $0x30] sm:$0xff] }
   0xc   :  { %799 = vmatpush3.bf16.msra.mxu0 %v940_v10  ;;  %v957_v27 = vld [vmem:[%s1293_s1 + $0x88] sm:$0xff]   ;;  %v961_v31 = vld [vmem:[%s1293_s1 + $0x80] sm:$0xff]   ;;  %v14_v41 = vld [vmem:[%s1294_s0 + $0x10] sm:$0xff] }
   0xd   :  { %839 = vmatpush3.bf16.msra.mxu1 %v941_v11  ;;  %800 = vmatprep.subr.bf16.mxu0 %v942_v12  ;;  %v13_v32 = vld [vmem:[%s1294_s0 + $0x8] sm:$0xff]  ;;  %v12_v37 = vld [vmem:[%s1294_s0] sm:$0xff]  ;;  %v962_v44 = vld [vmem:[%s1293_s1 + $0x178] sm:$0xff]  }
   0xe   :  { %840 = vmatprep.subr.bf16.mxu1 %v943_v13  ;;  %v61_v35 = vpack.c.bf16 %v19_v33, %v13_v32  ;;  %v21_v36 = vld [vmem:[%s1294_s0 + $0x48] sm:$0xff]  ;;  %v60_v40 = vpack.c.bf16 %v18_v38, %v12_v37  ;;  %v20_v42 = vld [vmem:[%s1294_s0 + $0x40] sm:$0xff]  ;;  %v963_v45 = vld [vmem:[%s1293_s1 + $0x138] sm:$0xff]  }
   0xf   :  { %v63_v39 = vpack.c.bf16 %v21_v36, %v15_v34  ;;  %v62_v43 = vpack.c.bf16 %v20_v42, %v14_v41  ;;  %v964_v46 = vld [vmem:[%s1293_s1 + $0x170] sm:$0xff]   ;;  %v25_v48 = vld [vmem:[%s1294_s0 + $0x68] sm:$0xff]  ;;  %v31_v49 = vld [vmem:[%s1294_s0 + $0x98] sm:$0xff] }
  0x10   :  { %801 = vmatpush3.bf16.msra.mxu0 %v944_v14  ;;  %500 = vmatprep.mubr.bf16.mxu0 %v61_v35  ;;  %v965_v47 = vld [vmem:[%s1293_s1 + $0x130] sm:$0xff]   ;;  %v27_v50 = vld [vmem:[%s1294_s0 + $0x78] sm:$0xff]  ;;  %v33_v51 = vld [vmem:[%s1294_s0 + $0xa8] sm:$0xff]  ;;  %v67_v52 = vpack.c.bf16 %v31_v49, %v25_v48 }
  0x11   :  { %841 = vmatpush3.bf16.msra.mxu1 %v945_v15  ;;  %802 = vmatprep.subr.bf16.mxu0 %v946_v16  ;;  %v69_v53 = vpack.c.bf16 %v33_v51, %v27_v50  ;;  %v24_v54 = vld [vmem:[%s1294_s0 + $0x60] sm:$0xff]  ;;  %v30_v55 = vld [vmem:[%s1294_s0 + $0x90] sm:$0xff]  ;;  %v966_v60 = vld [vmem:[%s1293_s1 + $0x168] sm:$0xff]  }
  0x12   :  { %842 = vmatprep.subr.bf16.mxu1 %v947_v17  ;;  %565 = vmatprep.mubr.bf16.mxu1 %v63_v39  ;;  %v26_v56 = vld [vmem:[%s1294_s0 + $0x70] sm:$0xff]  ;;  %v66_v57 = vpack.c.bf16 %v30_v55, %v24_v54  ;;  %v32_v58 = vld [vmem:[%s1294_s0 + $0xa0] sm:$0xff]  ;;  %v967_v61 = vld [vmem:[%s1293_s1 + $0x128] sm:$0xff]  }
  0x13   :  { %v68_v59 = vpack.c.bf16 %v32_v58, %v26_v56  ;;  %v968_v62 = vld [vmem:[%s1293_s1 + $0x160] sm:$0xff]   ;;  %v37_v0 = vld [vmem:[%s1294_s0 + $0xc8] sm:$0xff]  ;;  %v43_v1 = vld [vmem:[%s1294_s0 + $0xf8] sm:$0xff] }
  0x14   :  { %803 = vmatpush3.bf16.msra.mxu0 %v948_v18  ;;  %v969_v63 = vld [vmem:[%s1293_s1 + $0x120] sm:$0xff]   ;;  %v73_v2 = vpack.c.bf16 %v43_v1, %v37_v0  ;;  %v39_v3 = vld [vmem:[%s1294_s0 + $0xd8] sm:$0xff]  ;;  %v45_v4 = vld [vmem:[%s1294_s0 + $0x108] sm:$0xff] }
  0x15   :  { %843 = vmatpush3.bf16.msra.mxu1 %v949_v19  ;;  %804 = vmatprep.subr.bf16.mxu0 %v950_v20  ;;  %v36_v5 = vld [vmem:[%s1294_s0 + $0xc0] sm:$0xff]  ;;  %v75_v6 = vpack.c.bf16 %v45_v4, %v39_v3  ;;  %v42_v7 = vld [vmem:[%s1294_s0 + $0xf0] sm:$0xff]  ;;  %v970_v11 = vld [vmem:[%s1293_s1 + $0x158] sm:$0xff]  }
  0x16   :  { %844 = vmatprep.subr.bf16.mxu1 %v951_v21  ;;  %v38_v8 = vld [vmem:[%s1294_s0 + $0xd0] sm:$0xff]  ;;  %v44_v9 = vld [vmem:[%s1294_s0 + $0x100] sm:$0xff]  ;;  %v72_v10 = vpack.c.bf16 %v42_v7, %v36_v5  ;;  %v971_v13 = vld [vmem:[%s1293_s1 + $0x118] sm:$0xff]  }
  0x17   :  { %v74_v12 = vpack.c.bf16 %v44_v9, %v38_v8  ;;  %v972_v14 = vld [vmem:[%s1293_s1 + $0x150] sm:$0xff]   ;;  %v49_v16 = vld [vmem:[%s1294_s0 + $0x128] sm:$0xff]  ;;  %v55_v17 = vld [vmem:[%s1294_s0 + $0x158] sm:$0xff] }
  0x18   :  { %805 = vmatpush3.bf16.msra.mxu0 %v952_v22  ;;  %v973_v15 = vld [vmem:[%s1293_s1 + $0x110] sm:$0xff]   ;;  %v51_v18 = vld [vmem:[%s1294_s0 + $0x138] sm:$0xff]  ;;  %v79_v19 = vpack.c.bf16 %v55_v17, %v49_v16  ;;  %v57_v20 = vld [vmem:[%s1294_s0 + $0x168] sm:$0xff] }
  0x19   :  { %845 = vmatpush3.bf16.msra.mxu1 %v953_v23  ;;  %806 = vmatprep.subr.bf16.mxu0 %v954_v24  ;;  %v48_v21 = vld [vmem:[%s1294_s0 + $0x120] sm:$0xff]  ;;  %v54_v22 = vld [vmem:[%s1294_s0 + $0x150] sm:$0xff]  ;;  %v81_v23 = vpack.c.bf16 %v57_v20, %v51_v18  ;;  %v23_v32 = vld [vmem:[%s1294_s0 + $0x58] sm:$0xff] }
  0x1a   :  { %846 = vmatprep.subr.bf16.mxu1 %v955_v25  ;;  %v50_v24 = vld [vmem:[%s1294_s0 + $0x130] sm:$0xff]  ;;  %v56_v25 = vld [vmem:[%s1294_s0 + $0x160] sm:$0xff]  ;;  %v41_v33 = vld [vmem:[%s1294_s0 + $0xe8] sm:$0xff] }
  0x1b   :  { %v47_v34 = vld [vmem:[%s1294_s0 + $0x118] sm:$0xff]  ;;  %v977_v37 = vld [vmem:[%s1293_s1 + $0x100] sm:$0xff]   ;;  %v22_v39 = vld [vmem:[%s1294_s0 + $0x50] sm:$0xff] }
  0x1c   :  { %807 = vmatpush3.bf16.msra.mxu0 %v956_v26  ;;  %v974_v26 = vld [vmem:[%s1293_s1 + $0x148] sm:$0xff]   ;;  %v77_v36 = vpack.c.bf16 %v47_v34, %v41_v33  ;;  %v16_v38 = vld [vmem:[%s1294_s0 + $0x20] sm:$0xff]  ;;  %v46_v41 = vld [vmem:[%s1294_s0 + $0x110] sm:$0xff] }
  0x1d   :  { %847 = vmatpush3.bf16.msra.mxu1 %v957_v27  ;;  %808 = vmatprep.subr.bf16.mxu0 %v958_v28  ;;  %v78_v27 = vpack.c.bf16 %v54_v22, %v48_v21  ;;  %v80_v28 = vpack.c.bf16 %v56_v25, %v50_v24  ;;  %v29_v42 = vld [vmem:[%s1294_s0 + $0x88] sm:$0xff]  ;;  %v28_v50 = vld [vmem:[%s1294_s0 + $0x80] sm:$0xff]  ;;  %v34_v51 = vld [vmem:[%s1294_s0 + $0xb0] sm:$0xff] }
  0x1e   :  { %848 = vmatprep.subr.bf16.mxu1 %v959_v29  ;;  %v975_v29 = vld [vmem:[%s1293_s1 + $0x108] sm:$0xff]   ;;  %v70_v54 = vpack.c.bf16 %v34_v51, %v28_v50 }
  0x20   :  { %809 = vmatpush3.bf16.msra.mxu0 %v960_v30  ;;  %v976_v30 = vld [vmem:[%s1293_s1 + $0x140] sm:$0xff]  }
  0x21   :  { %849 = vmatpush3.bf16.msra.mxu1 %v961_v31  ;;  %874 = vmatprep.subr.bf16.mxu0 %v962_v44  ;;  %v17_v31 = vld [vmem:[%s1294_s0 + $0x28] sm:$0xff] }
  0x22   :  { %914 = vmatprep.subr.bf16.mxu1 %v962_v44  ;;  %v65_v35 = vpack.c.bf16 %v23_v32, %v17_v31  ;;  %v53_v44 = vld [vmem:[%s1294_s0 + $0x148] sm:$0xff] }
  0x23   :  { %501 = vmatmul.mubr.bf16.vlgmr.msra.gmra.mxu0 %v60_v40  ;;  %v40_v40 = vld [vmem:[%s1294_s0 + $0xe0] sm:$0xff] }
  0x24   :  { %566 = vmatmul.mubr.bf16.vlgmr.msra.gmra.mxu1 %v62_v43  ;;  %875 = vmatpush3.bf16.msra.mxu0 %v963_v45  ;;  %v35_v43 = vld [vmem:[%s1294_s0 + $0xb8] sm:$0xff] }
  0x25   :  { %922 = vmatpush3.bf16.msra.mxu1 %v963_v45  ;;  %876 = vmatprep.subr.bf16.mxu0 %v964_v46  ;;  %v59_v45 = vld [vmem:[%s1294_s0 + $0x178] sm:$0xff]  ;;  %v71_v48 = vpack.c.bf16 %v35_v43, %v29_v42 }
  0x26   :  { %915 = vmatprep.subr.bf16.mxu1 %v964_v46  ;;  %508 = vmatprep.mubr.bf16.mxu0 %v67_v52  ;;  %v64_v46 = vpack.c.bf16 %v22_v39, %v16_v38  ;;  %v83_v49 = vpack.c.bf16 %v59_v45, %v53_v44  ;;  %v52_v52 = vld [vmem:[%s1294_s0 + $0x140] sm:$0xff] }
  0x27   :  { %573 = vmatprep.mubr.bf16.mxu1 %v69_v53  ;;  %v58_v53 = vld [vmem:[%s1294_s0 + $0x170] sm:$0xff] }
  0x28   :  { %877 = vmatpush3.bf16.msra.mxu0 %v965_v47  ;;  %v82_v55 = vpack.c.bf16 %v58_v53, %v52_v52 }
  0x29   :  { %923 = vmatpush3.bf16.msra.mxu1 %v965_v47  ;;  %878 = vmatprep.subr.bf16.mxu0 %v966_v60  ;;  %v76_v47 = vpack.c.bf16 %v46_v41, %v40_v40 }
  0x2a   :  { %916 = vmatprep.subr.bf16.mxu1 %v966_v60 }
  0x2b   :  { %509 = vmatmul.mubr.bf16.gmra.mxu0 %v66_v57 }
  0x2c   :  { %574 = vmatmul.mubr.bf16.gmra.mxu1 %v68_v59  ;;  %879 = vmatpush3.bf16.msra.mxu0 %v967_v61 }
  0x2d   :  { %924 = vmatpush3.bf16.msra.mxu1 %v967_v61  ;;  %880 = vmatprep.subr.bf16.mxu0 %v968_v62 }
  0x2e   :  { %917 = vmatprep.subr.bf16.mxu1 %v968_v62  ;;  %516 = vmatprep.mubr.bf16.mxu0 %v73_v2 }
  0x2f   :  { %581 = vmatprep.mubr.bf16.mxu1 %v75_v6 }
  0x30   :  { %881 = vmatpush3.bf16.msra.mxu0 %v969_v63 }
  0x31   :  { %925 = vmatpush3.bf16.msra.mxu1 %v969_v63  ;;  %882 = vmatprep.subr.bf16.mxu0 %v970_v11 }
  0x32   :  { %918 = vmatprep.subr.bf16.mxu1 %v970_v11 }
  0x33   :  { %517 = vmatmul.mubr.bf16.gmra.mxu0 %v72_v10 }
  0x34   :  { %582 = vmatmul.mubr.bf16.gmra.mxu1 %v74_v12  ;;  %883 = vmatpush3.bf16.msra.mxu0 %v971_v13 }
  0x35   :  { %926 = vmatpush3.bf16.msra.mxu1 %v971_v13  ;;  %884 = vmatprep.subr.bf16.mxu0 %v972_v14 }
  0x36   :  { %919 = vmatprep.subr.bf16.mxu1 %v972_v14  ;;  %524 = vmatprep.mubr.bf16.mxu0 %v79_v19 }
  0x37   :  { %589 = vmatprep.mubr.bf16.mxu1 %v81_v23 }
  0x38   :  { %885 = vmatpush3.bf16.msra.mxu0 %v973_v15 }
  0x39   :  { %927 = vmatpush3.bf16.msra.mxu1 %v973_v15  ;;  %886 = vmatprep.subr.bf16.mxu0 %v974_v26 }
  0x3a   :  { %920 = vmatprep.subr.bf16.mxu1 %v974_v26 }
  0x3b   :  { %525 = vmatmul.mubr.bf16.gmra.mxu0 %v78_v27 }
  0x3c   :  { %590 = vmatmul.mubr.bf16.gmra.mxu1 %v80_v28  ;;  %887 = vmatpush3.bf16.msra.mxu0 %v975_v29 }
  0x3d   :  { %630 = vmatprep.mubr.bf16.mxu0 %v65_v35  ;;  %928 = vmatpush3.bf16.msra.mxu1 %v975_v29 }
  0x3e   :  { %888 = vmatprep.subr.bf16.mxu0 %v976_v30  ;;  %921 = vmatprep.subr.bf16.mxu1 %v976_v30 }
  0x3f   :  { %646 = vmatprep.mubr.bf16.mxu1 %v77_v36 }
  0x40   :  { %889 = vmatpush3.bf16.msra.mxu0 %v977_v37 }
  0x41   :  { %929 = vmatpush3.bf16.msra.mxu1 %v977_v37 }
  0x43   :  { %631 = vmatmul.mubr.bf16.vlgmr.msra.gmra.mxu0 %v64_v46 }
  0x44   :  { %647 = vmatmul.mubr.bf16.vlgmr.msra.gmra.mxu1 %v76_v47  ;;  %638 = vmatprep.mubr.bf16.mxu0 %v71_v48 }
  0x45   :  { %654 = vmatprep.mubr.bf16.mxu1 %v83_v49 }
  0x4b   :  { %639 = vmatmul.mubr.bf16.gmra.mxu0 %v70_v54 }
  0x4c   :  { %655 = vmatmul.mubr.bf16.gmra.mxu1 %v82_v55 }
  0xe3   :  { %v810_v56 = vpop.f32.mrf.mxu0 }
  0xe4   :  { %v850_v57 = vpop.f32.mrf.mxu1 }
  0xe5   :  { %v811_v58 = vpop.f32.mrf.mxu0 }
  0xe6   :  { %v851_v59 = vpop.f32.mrf.mxu1  ;;  %v812_v27 = vadd.f32 %v811_v58, %v810_v56 }
  0xe7   :  { %v813_v60 = vpop.f32.mrf.mxu0  ;;  %v852_v28 = vadd.f32 %v851_v59, %v850_v57 }
  0xe8   :  { %v853_v61 = vpop.f32.mrf.mxu1 }
  0xe9   :  { %v814_v62 = vpop.f32.mrf.mxu0  ;;  %v568_v41 = vadd.f32 %v852_v28, %v812_v27 }
  0xea   :  { %v854_v63 = vpop.f32.mrf.mxu1  ;;  %v815_v29 = vadd.f32 %v814_v62, %v813_v60 }
  0xeb   :  { %v816_v0 = vpop.f32.mrf.mxu0  ;;  %v855_v30 = vadd.f32 %v854_v63, %v853_v61 }
  0xec   :  { %v856_v1 = vpop.f32.mrf.mxu1 }
  0xed   :  { %v817_v2 = vpop.f32.mrf.mxu0  ;;  %v571_v42 = vadd.f32 %v855_v30, %v815_v29 }
  0xee   :  { %v857_v3 = vpop.f32.mrf.mxu1  ;;  %v818_v52 = vadd.f32 %v817_v2, %v816_v0 }
  0xef   :  { %v819_v4 = vpop.f32.mrf.mxu0  ;;  %v858_v53 = vadd.f32 %v857_v3, %v856_v1 }
  0xf0   :  { %v859_v5 = vpop.f32.mrf.mxu1 }
  0xf1   :  { %v820_v6 = vpop.f32.mrf.mxu0  ;;  %v576_v3 = vadd.f32 %v858_v53, %v818_v52 }
  0xf2   :  { %v860_v7 = vpop.f32.mrf.mxu1  ;;  %v821_v57 = vadd.f32 %v820_v6, %v819_v4 }
  0xf3   :  { %v822_v8 = vpop.f32.mrf.mxu0  ;;  %v861_v58 = vadd.f32 %v860_v7, %v859_v5 }
  0xf4   :  { %v862_v9 = vpop.f32.mrf.mxu1 }
  0xf5   :  { %v823_v10 = vpop.f32.mrf.mxu0  ;;  %v579_v4 = vadd.f32 %v861_v58, %v821_v57 }
  0xf6   :  { %v863_v11 = vpop.f32.mrf.mxu1  ;;  %v824_v32 = vadd.f32 %v823_v10, %v822_v8 }
  0xf7   :  { %v825_v12 = vpop.f32.mrf.mxu0  ;;  %v864_v33 = vadd.f32 %v863_v11, %v862_v9 }
  0xf8   :  { %v865_v13 = vpop.f32.mrf.mxu1 }
  0xf9   :  { %v826_v14 = vpop.f32.mrf.mxu0  ;;  %v584_v45 = vadd.f32 %v864_v33, %v824_v32 }
  0xfa   :  { %v866_v15 = vpop.f32.mrf.mxu1  ;;  %v827_v34 = vadd.f32 %v826_v14, %v825_v12 }
  0xfb   :  { %v828_v16 = vpop.f32.mrf.mxu0  ;;  %v867_v35 = vadd.f32 %v866_v15, %v865_v13 }
  0xfc   :  { %v868_v17 = vpop.f32.mrf.mxu1 }
  0xfd   :  { %v829_v18 = vpop.f32.mrf.mxu0  ;;  %v587_v46 = vadd.f32 %v867_v35, %v827_v34 }
  0xfe   :  { %v869_v19 = vpop.f32.mrf.mxu1  ;;  %v830_v59 = vadd.f32 %v829_v18, %v828_v16 }
  0xff   :  { %v831_v20 = vpop.f32.mrf.mxu0  ;;  %v870_v62 = vadd.f32 %v869_v19, %v868_v17 }
 0x100   :  { %v871_v21 = vpop.f32.mrf.mxu1 }
 0x101   :  { %v832_v22 = vpop.f32.mrf.mxu0  ;;  %v592_v7 = vadd.f32 %v870_v62, %v830_v59 }
 0x102   :  { %v872_v23 = vpop.f32.mrf.mxu1  ;;  %v833_v63 = vadd.f32 %v832_v22, %v831_v20 }
 0x103   :  { %v890_v24 = vpop.f32.mrf.mxu0  ;;  %v873_v8 = vadd.f32 %v872_v23, %v871_v21 }
 0x104   :  { %v902_v25 = vpop.f32.mrf.mxu1 }
 0x105   :  { %v891_v26 = vpop.f32.mrf.mxu0  ;;  %v595_v12 = vadd.f32 %v873_v8, %v833_v63 }
 0x106   :  { %v903_v31 = vpop.f32.mrf.mxu1  ;;  %v892_v37 = vadd.f32 %v891_v26, %v890_v24 }
 0x107   :  { %v893_v36 = vpop.f32.mrf.mxu0  ;;  %v904_v39 = vadd.f32 %v903_v31, %v902_v25 }
 0x108   :  { %v905_v38 = vpop.f32.mrf.mxu1  ;;  %v633_v49 = vadd.f32 %v892_v37, %v568_v41 }
 0x109   :  { %v894_v40 = vpop.f32.mrf.mxu0  ;;  %v649_v54 = vadd.f32 %v904_v39, %v584_v45 }
 0x10a   :  { %v895_v43 = vadd.f32 %v894_v40, %v893_v36  ;;  %v906_v44 = vpop.f32.mrf.mxu1 }
 0x10b   :  { %v907_v47 = vadd.f32 %v906_v44, %v905_v38  ;;  %v896_v48 = vpop.f32.mrf.mxu0 }
 0x10c   :  { %v636_v50 = vadd.f32 %v895_v43, %v571_v42  ;;  %v908_v51 = vpop.f32.mrf.mxu1 }
 0x10d   :  { %v652_v55 = vadd.f32 %v907_v47, %v587_v46  ;;  %v897_v56 = vpop.f32.mrf.mxu0 }
 0x10e   :  { %v774_v60 = vpack.c.bf16 %v636_v50, %v633_v49  ;;  %v909_v61 = vpop.f32.mrf.mxu1  ;;  %v898_v11 = vadd.f32 %v897_v56, %v896_v48 }
 0x10f   :  { %v784_v9 = vpack.c.bf16 %v652_v55, %v649_v54  ;;  %v899_v10 = vpop.f32.mrf.mxu0  ;;  %v910_v1 = vadd.f32 %v909_v61, %v908_v51 }
 0x110   :  { %775 = vst [vmem:[%s1295_s2] sm:$0xff] %v774_v60   ;;  %v911_v0 = vpop.f32.mrf.mxu1  ;;  %v641_v14 = vadd.f32 %v898_v11, %v576_v3 }
 0x111   :  { %792 = vst [vmem:[%s1295_s2 + $0x10] sm:$0xff] %v784_v9   ;;  %v900_v2 = vpop.f32.mrf.mxu0  ;;  %v657_v16 = vadd.f32 %v910_v1, %v592_v7 }
 0x112   :  { %v901_v5 = vadd.f32 %v900_v2, %v899_v10  ;;  %v912_v6 = vpop.f32.mrf.mxu1 }
 0x113   :  { %v913_v13 = vadd.f32 %v912_v6, %v911_v0 }
 0x114   :  { %v644_v15 = vadd.f32 %v901_v5, %v579_v4 }
 0x115   :  { %v660_v17 = vadd.f32 %v913_v13, %v595_v12 }
 0x116   :  { %v779_v18 = vpack.c.bf16 %v644_v15, %v641_v14 }
 0x117   :  { %v789_v19 = vpack.c.bf16 %v660_v17, %v657_v16 }
 0x118   :  { %791 = vst [vmem:[%s1295_s2 + $0x8] sm:$0xff] %v779_v18  }
 0x119   :  { %793 = vst [vmem:[%s1295_s2 + $0x18] sm:$0xff] %v789_v19  }

// kernel: cct_forward.20
= control target key start
LH: loop header
LB: loop body
LE: loop exit
PB: predicated region body
PF: predicated region fallthrough
CT: control target
= control target key end

     0   :  { %s415_s0 = inlined_call_operand.vmem [shape: f32[80,128], index: 0, kind: input, shape index: {}]   ;;  %s416_s1 = inlined_call_operand.vmem [shape: f32[1,128], index: 1, kind: input, shape index: {}]   ;;  %s417_s2 = inlined_call_operand.vmem [shape: f32[1,128], index: 2, kind: input, shape index: {}]   ;;  %s418_s3 = inlined_call_operand.vmem [shape: bf16[80,128], index: 3, kind: output, shape index: {}]  }
   0x1   :  { %v14_v0 = vld [vmem:[%s415_s0] sm:$0xff]  ;;  %v16_v1 = vld [vmem:[%s415_s0 + $0x10] sm:$0xff]  ;;  %v15_v2 = vld [vmem:[%s415_s0 + $0x8] sm:$0xff] }
   0x2   :  { %24 = vadd.xlane.f32.xlu0 %v14_v0  ;;  %28 = vadd.xlane.f32.xlu1 %v16_v1  ;;  %v17_v3 = vld [vmem:[%s415_s0 + $0x18] sm:$0xff]  ;;  %v18_v4 = vld [vmem:[%s415_s0 + $0x20] sm:$0xff]  ;;  %v19_v5 = vld [vmem:[%s415_s0 + $0x28] sm:$0xff] }
   0x3   :  { %v20_v6 = vld [vmem:[%s415_s0 + $0x30] sm:$0xff]  ;;  %v21_v7 = vld [vmem:[%s415_s0 + $0x38] sm:$0xff]  ;;  %v22_v8 = vld [vmem:[%s415_s0 + $0x40] sm:$0xff] }
   0x4   :  { %v23_v9 = vld [vmem:[%s415_s0 + $0x48] sm:$0xff] }
   0x6   :  { %26 = vadd.xlane.f32.xlu0 %v15_v2  ;;  %30 = vadd.xlane.f32.xlu1 %v17_v3 }
   0xa   :  { %32 = vadd.xlane.f32.xlu0 %v18_v4  ;;  %34 = vadd.xlane.f32.xlu1 %v19_v5 }
   0xe   :  { %36 = vadd.xlane.f32.xlu0 %v20_v6  ;;  %38 = vadd.xlane.f32.xlu1 %v21_v7 }
  0x12   :  { %40 = vadd.xlane.f32.xlu0 %v22_v8  ;;  %42 = vadd.xlane.f32.xlu1 %v23_v9 }
  0x8b   :  { %v25_v10 = vpop.xlane.xlu0 %24  ;;  %v29_v11 = vpop.xlane.xlu1 %28 }
  0x8c   :  { %v45_v12 = vmul.f32 0.0078125, %v25_v10  ;;  %v47_v13 = vmul.f32 0.0078125, %v29_v11 }
  0x8e   :  { %v344_v14 = vsub.f32 %v14_v0, %v45_v12  ;;  %v346_v15 = vsub.f32 %v16_v1, %v47_v13 }
  0x8f   :  { %v27_v16 = vpop.xlane.xlu0 %26  ;;  %v31_v17 = vpop.xlane.xlu1 %30 }
  0x90   :  { %v46_v18 = vmul.f32 0.0078125, %v27_v16  ;;  %v65_v19 = vmul.f32 %v344_v14, %v344_v14  ;;  %v48_v20 = vmul.f32 0.0078125, %v31_v17  ;;  %v67_v23 = vmul.f32 %v346_v15, %v346_v15  ;;  %v223_v17 = vld [vmem:[%s416_s1] ss:$0 sm:$0xff] }
  0x92   :  { %v350_v21 = vsub.f32 %v15_v2, %v46_v18  ;;  %75 = vadd.xlane.f32.xlu0 %v65_v19  ;;  %v352_v22 = vsub.f32 %v17_v3, %v48_v20 }
  0x93   :  { %v33_v24 = vpop.xlane.xlu0 %32  ;;  %v35_v25 = vpop.xlane.xlu1 %34 }
  0x94   :  { %v49_v26 = vmul.f32 0.0078125, %v33_v24  ;;  %v66_v27 = vmul.f32 %v350_v21, %v350_v21  ;;  %v50_v28 = vmul.f32 0.0078125, %v35_v25  ;;  %v68_v31 = vmul.f32 %v352_v22, %v352_v22 }
  0x96   :  { %v358_v29 = vsub.f32 %v18_v4, %v49_v26  ;;  %79 = vadd.xlane.f32.xlu0 %v67_v23  ;;  %77 = vadd.xlane.f32.xlu1 %v66_v27  ;;  %v360_v30 = vsub.f32 %v19_v5, %v50_v28 }
  0x97   :  { %v37_v32 = vpop.xlane.xlu0 %36  ;;  %v39_v33 = vpop.xlane.xlu1 %38 }
  0x98   :  { %v51_v34 = vmul.f32 0.0078125, %v37_v32  ;;  %v69_v35 = vmul.f32 %v358_v29, %v358_v29  ;;  %v52_v36 = vmul.f32 0.0078125, %v39_v33  ;;  %v70_v39 = vmul.f32 %v360_v30, %v360_v30 }
  0x9a   :  { %v366_v37 = vsub.f32 %v20_v6, %v51_v34  ;;  %81 = vadd.xlane.f32.xlu1 %v68_v31  ;;  %83 = vadd.xlane.f32.xlu0 %v69_v35  ;;  %v368_v38 = vsub.f32 %v21_v7, %v52_v36 }
  0x9b   :  { %v41_v40 = vpop.xlane.xlu0 %40  ;;  %v43_v41 = vpop.xlane.xlu1 %42 }
  0x9c   :  { %v53_v42 = vmul.f32 0.0078125, %v41_v40  ;;  %v71_v43 = vmul.f32 %v366_v37, %v366_v37  ;;  %v54_v44 = vmul.f32 0.0078125, %v43_v41  ;;  %v72_v47 = vmul.f32 %v368_v38, %v368_v38 }
  0x9e   :  { %v374_v45 = vsub.f32 %v22_v8, %v53_v42  ;;  %85 = vadd.xlane.f32.xlu1 %v70_v39  ;;  %87 = vadd.xlane.f32.xlu0 %v71_v43  ;;  %v376_v46 = vsub.f32 %v23_v9, %v54_v44 }
  0xa0   :  { %v73_v48 = vmul.f32 %v374_v45, %v374_v45  ;;  %v74_v49 = vmul.f32 %v376_v46, %v376_v46 }
  0xa2   :  { %89 = vadd.xlane.f32.xlu1 %v72_v47  ;;  %91 = vadd.xlane.f32.xlu0 %v73_v48 }
  0xa6   :  { %93 = vadd.xlane.f32.xlu1 %v74_v49 }
 0x11b   :  { %v76_v50 = vpop.xlane.xlu0 %75 }
 0x11c   :  { %v95_v51 = vmul.f32 0.0078125, %v76_v50 }
 0x11e   :  { %v105_v52 = vadd.f32 1e-05, %v95_v51 }
 0x11f   :  { %v78_v53 = vpop.xlane.xlu1 %77  ;;  %v80_v54 = vpop.xlane.xlu0 %79 }
 0x120   :  { %274 = vrsqrt.f32 %v105_v52  ;;  %v96_v55 = vmul.f32 0.0078125, %v78_v53  ;;  %v97_v56 = vmul.f32 0.0078125, %v80_v54 }
 0x122   :  { %v106_v57 = vadd.f32 1e-05, %v96_v55  ;;  %v107_v58 = vadd.f32 1e-05, %v97_v56 }
 0x123   :  { %v82_v59 = vpop.xlane.xlu1 %81  ;;  %v84_v60 = vpop.xlane.xlu0 %83 }
 0x124   :  { %276 = vrsqrt.f32 %v106_v57  ;;  %v98_v61 = vmul.f32 0.0078125, %v82_v59  ;;  %v99_v62 = vmul.f32 0.0078125, %v84_v60 }
 0x125   :  { %278 = vrsqrt.f32 %v107_v58 }
 0x126   :  { %v108_v63 = vadd.f32 1e-05, %v98_v61  ;;  %v109_v0 = vadd.f32 1e-05, %v99_v62 }
 0x127   :  { %v86_v1 = vpop.xlane.xlu1 %85  ;;  %v88_v2 = vpop.xlane.xlu0 %87 }
 0x128   :  { %280 = vrsqrt.f32 %v108_v63  ;;  %v100_v3 = vmul.f32 0.0078125, %v86_v1  ;;  %v101_v4 = vmul.f32 0.0078125, %v88_v2 }
 0x129   :  { %282 = vrsqrt.f32 %v109_v0 }
 0x12a   :  { %v110_v5 = vadd.f32 1e-05, %v100_v3  ;;  %v111_v6 = vadd.f32 1e-05, %v101_v4 }
 0x12b   :  { %v90_v7 = vpop.xlane.xlu1 %89  ;;  %v92_v8 = vpop.xlane.xlu0 %91 }
 0x12c   :  { %284 = vrsqrt.f32 %v110_v5  ;;  %v102_v9 = vmul.f32 0.0078125, %v90_v7  ;;  %v103_v10 = vmul.f32 0.0078125, %v92_v8 }
 0x12d   :  { %v275_v11 = vpop.eup %274  ;;  %286 = vrsqrt.f32 %v111_v6 }
 0x12e   :  { %v125_v12 = vmul.f32 %v275_v11, %v344_v14  ;;  %v112_v13 = vadd.f32 1e-05, %v102_v9  ;;  %v113_v16 = vadd.f32 1e-05, %v103_v10  ;;  %v224_v14 = vld [vmem:[%s417_s2] ss:$0 sm:$0xff] }
 0x12f   :  { %v94_v18 = vpop.xlane.xlu1 %93 }
 0x130   :  { %288 = vrsqrt.f32 %v112_v13  ;;  %v104_v19 = vmul.f32 0.0078125, %v94_v18  ;;  %v142_v24 = vmul.f32 %v223_v17, %v125_v12 }
 0x131   :  { %v277_v20 = vpop.eup %276  ;;  %290 = vrsqrt.f32 %v113_v16 }
 0x132   :  { %v279_v23 = vpop.eup %278  ;;  %v126_v25 = vmul.f32 %v277_v20, %v350_v21  ;;  %v114_v26 = vadd.f32 1e-05, %v104_v19  ;;  %v159_v33 = vadd.f32 %v224_v14, %v142_v24 }
 0x133   :  { %v127_v27 = vmul.f32 %v279_v23, %v346_v15 }
 0x134   :  { %v143_v28 = vmul.f32 %v223_v17, %v126_v25  ;;  %292 = vrsqrt.f32 %v114_v26 }
 0x135   :  { %v281_v31 = vpop.eup %280  ;;  %v144_v35 = vmul.f32 %v223_v17, %v127_v27 }
 0x136   :  { %v283_v32 = vpop.eup %282  ;;  %v160_v34 = vadd.f32 %v224_v14, %v143_v28  ;;  %v128_v36 = vmul.f32 %v281_v31, %v352_v22 }
 0x137   :  { %v129_v39 = vmul.f32 %v283_v32, %v358_v29  ;;  %v161_v15 = vadd.f32 %v224_v14, %v144_v35 }
 0x138   :  { %v248_v40 = vpack.c.bf16 %v160_v34, %v159_v33  ;;  %v145_v21 = vmul.f32 %v223_v17, %v128_v36 }
 0x139   :  { %v285_v41 = vpop.eup %284  ;;  %v146_v44 = vmul.f32 %v223_v17, %v129_v39 }
 0x13a   :  { %v287_v42 = vpop.eup %286  ;;  %249 = vst [vmem:[%s418_s3] sm:$0xff] %v248_v40   ;;  %v162_v43 = vadd.f32 %v224_v14, %v145_v21  ;;  %v130_v47 = vmul.f32 %v285_v41, %v360_v30 }
 0x13b   :  { %v131_v48 = vmul.f32 %v287_v42, %v366_v37  ;;  %v163_v29 = vadd.f32 %v224_v14, %v146_v44 }
 0x13c   :  { %v253_v49 = vpack.c.bf16 %v162_v43, %v161_v15  ;;  %v147_v50 = vmul.f32 %v223_v17, %v130_v47 }
 0x13d   :  { %v289_v22 = vpop.eup %288  ;;  %v148_v53 = vmul.f32 %v223_v17, %v131_v48 }
 0x13e   :  { %v291_v51 = vpop.eup %290  ;;  %270 = vst [vmem:[%s418_s3 + $0x8] sm:$0xff] %v253_v49   ;;  %v164_v52 = vadd.f32 %v224_v14, %v147_v50  ;;  %v132_v54 = vmul.f32 %v289_v22, %v368_v38 }
 0x13f   :  { %v133_v55 = vmul.f32 %v291_v51, %v374_v45  ;;  %v165_v37 = vadd.f32 %v224_v14, %v148_v53 }
 0x140   :  { %v258_v56 = vpack.c.bf16 %v164_v52, %v163_v29  ;;  %v149_v57 = vmul.f32 %v223_v17, %v132_v54 }
 0x141   :  { %v293_v30 = vpop.eup %292  ;;  %v150_v59 = vmul.f32 %v223_v17, %v133_v55 }
 0x142   :  { %271 = vst [vmem:[%s418_s3 + $0x10] sm:$0xff] %v258_v56   ;;  %v166_v58 = vadd.f32 %v224_v14, %v149_v57  ;;  %v134_v60 = vmul.f32 %v293_v30, %v376_v46 }
 0x143   :  { %v167_v38 = vadd.f32 %v224_v14, %v150_v59 }
 0x144   :  { %v263_v61 = vpack.c.bf16 %v166_v58, %v165_v37  ;;  %v151_v62 = vmul.f32 %v223_v17, %v134_v60 }
 0x146   :  { %272 = vst [vmem:[%s418_s3 + $0x18] sm:$0xff] %v263_v61   ;;  %v168_v45 = vadd.f32 %v224_v14, %v151_v62 }
 0x148   :  { %v268_v63 = vpack.c.bf16 %v168_v45, %v167_v38 }
 0x14a   :  { %273 = vst [vmem:[%s418_s3 + $0x20] sm:$0xff] %v268_v63  }

// kernel: cct_forward.21
= control target key start
LH: loop header
LB: loop body
LE: loop exit
PB: predicated region body
PF: predicated region fallthrough
CT: control target
= control target key end

     0   :  { %v208_v0 = vmov 0.0   ;;  %vm209_vm0 = vmmov 0   ;;  %s263_s1 = inlined_call_operand.vmem [shape: bf16[128,128], index: 1, kind: input, shape index: {}]   ;;  %s264_s0 = inlined_call_operand.vmem [shape: bf16[16,128], index: 0, kind: input, shape index: {}]   ;;  %s265_s2 = inlined_call_operand.vmem [shape: f32[1,128], index: 2, kind: input, shape index: {}]   ;;  %s266_s3 = inlined_call_operand.vmem [shape: bf16[16,128], index: 3, kind: output, shape index: {}]  }
   0x1   :  { %177 = vmatprep.subr.bf16.mxu0 %v208_v0  ;;  %v199_v1 = vld [vmem:[%s263_s1 + $0x38] sm:$0xff]   ;;  %193 = vmatprep.mubr.msk.bf16.mxu0 %vm209_vm0, %v208_v0  ;;  %v200_v2 = vld [vmem:[%s263_s1 + $0x30] sm:$0xff]   ;;  %v201_v3 = vld [vmem:[%s263_s1 + $0x28] sm:$0xff]  }
   0x2   :  { %178 = vmatpush3.bf16.msra.mxu0 %v199_v1  ;;  %v202_v4 = vld [vmem:[%s263_s1 + $0x20] sm:$0xff]   ;;  %v203_v5 = vld [vmem:[%s263_s1 + $0x18] sm:$0xff]   ;;  %v204_v6 = vld [vmem:[%s263_s1 + $0x10] sm:$0xff]  }
   0x3   :  { %179 = vmatprep.subr.bf16.mxu0 %v208_v0  ;;  %v205_v7 = vld [vmem:[%s263_s1 + $0x8] sm:$0xff]   ;;  %v206_v8 = vld [vmem:[%s263_s1] sm:$0xff]  }
   0x4   :  { %v207_v9 = vld [vmem:[%s264_s0] sm:$0xff]  }
   0x5   :  { %v149_v11 = vld [vmem:[%s265_s2] ss:$0 sm:$0xff] }
   0x6   :  { %180 = vmatpush3.bf16.msra.mxu0 %v200_v2 }
   0x7   :  { %181 = vmatprep.subr.bf16.mxu0 %v208_v0 }
   0xa   :  { %182 = vmatpush3.bf16.msra.mxu0 %v201_v3 }
   0xb   :  { %183 = vmatprep.subr.bf16.mxu0 %v208_v0 }
   0xe   :  { %184 = vmatpush3.bf16.msra.mxu0 %v202_v4 }
   0xf   :  { %185 = vmatprep.subr.bf16.mxu0 %v208_v0 }
  0x12   :  { %186 = vmatpush3.bf16.msra.mxu0 %v203_v5 }
  0x13   :  { %187 = vmatprep.subr.bf16.mxu0 %v208_v0 }
  0x16   :  { %188 = vmatpush3.bf16.msra.mxu0 %v204_v6 }
  0x17   :  { %189 = vmatprep.subr.bf16.mxu0 %v208_v0 }
  0x1a   :  { %190 = vmatpush3.bf16.msra.mxu0 %v205_v7 }
  0x1b   :  { %191 = vmatprep.subr.bf16.mxu0 %v208_v0 }
  0x1e   :  { %192 = vmatpush3.bf16.msra.mxu0 %v206_v8 }
  0x21   :  { %194 = vmatmul.mubr.bf16.vlgmr.msra.gmra.mxu0 %v207_v9 }
  0xe1   :  { %v128_v10 = vpop.f32.mrf.mxu0 }
  0xe2   :  { %v129_v14 = vadd.f32 %v149_v11, %v128_v10 }
  0xe3   :  { %v195_v12 = vpop.f32.mrf.mxu0 }
  0xe5   :  { %v131_v13 = vpop.f32.mrf.mxu0 }
  0xe6   :  { %v132_v15 = vadd.f32 %v149_v11, %v131_v13 }
  0xe7   :  { %v196_v16 = vpop.f32.mrf.mxu0 }
  0xe8   :  { %v166_v17 = vpack.c.bf16 %v132_v15, %v129_v14 }
  0xea   :  { %167 = vst [vmem:[%s266_s3] sm:$0xff] %v166_v17  }

// kernel: cct_forward.23
= control target key start
LH: loop header
LB: loop body
LE: loop exit
PB: predicated region body
PF: predicated region fallthrough
CT: control target
= control target key end

     0   :  { %s495_s6 = smov 0   ;;  %s537_s0 = inlined_call_operand.vmem [shape: bf16[2,8,384], index: 0, kind: input, shape index: {}]   ;;  %s538_s1 = inlined_call_operand.vmem [shape: bf16[2,8,128], index: 1, kind: output, shape index: {}]  }
   0x1 LB: > { %s405_s7 = sadd.s32 4294967295, %s480_s6   ;;  %p409_p0 = scmp.ge.s32.totalorder %s480_s6, 1  ;;  %s480_s6 = sphi %s495_s6, %s11_s6  }
   0x2   : > { %p87_p1 = scmp.lt.s32.totalorder %s480_s6, 3 }
   0x4   : > { %p88_p2 = pnand %p409_p0, %p87_p1 }
   0x5   : > { %p106_p3 = scmp.lt.s32.totalorder (!%p88_p2), %s405_s7, 1  ;;  %s484_s12 = smov (!%p88_p2), 64  }
   0x6   : > { %91 = sbr.rel (%p88_p2) target bundleno = 1360 (0x550), region = 24 }
   0xb   : > { %v482_v0 = vmov 0.0   ;;  %vm483_vm0 = vmmov 0   ;;  %s540_s7 = smov (!%p106_p3, %s405_s7), 1  ;;  %vm124_vm1 = vcmask 523264   ;;  %vm171_vm2 = vcmask 64512  }
   0xc   : > { %428 = vmatprep.subr.bf16.mxu0 %v482_v0  ;;  %430 = vmatprep.mubr.msk.bf16.mxu0 %vm483_vm0, %v482_v0  ;;  %s452_s8 = smul.u32 12, %s540_s7  ;;  %vm187_vm3 = vcmask 1043456   ;;  %s411_s13 = sshll.u32 %s540_s7, 2 }
   0xd   : > { %434 = vmatprep.subr.bf16.mxu1 %v482_v0  ;;  %436 = vmatprep.mubr.msk.bf16.mxu1 %vm483_vm0, %v482_v0  ;;  %s114_s16 = scalar_lea.vmem %s538_s1, %s411_s13 }
   0xe   : > { %s110_s11 = scalar_lea.vmem %s537_s0, %s452_s8 }
   0xf   : > { %v116_v1 = vld [vmem:[%s110_s11] sm:$0xff]  ;;  %v117_v17 = vld [vmem:[%s110_s11 + $0x8] sm:$0xf] }
  0x10   : > { %v118_v2 = vunpack.c.l.bf16 %v116_v1  ;;  %v412_v3 = vcombine.high %v116_v1, %v116_v1  ;;  %v189_v18 = vsel %vm187_vm3, %v117_v17, 0  ;;  %v416_v35 = vcombine.low %v117_v17, %v117_v17 }
  0x11   : > { %435 = vmatpush3.bf16.msra.mxu1 %v189_v18 }
  0x12   : > { %v119_v4 = vmul.f32 0.125, %v118_v2  ;;  %v129_v5 = vsel %vm124_vm1, %v412_v3, 0  ;;  %234 = vrot.lane.b32.xlu1 %v412_v3, %s484_s12  ;;  %440 = vmatprep.subr.bf16.mxu1 %v482_v0 }
  0x13   : > { %429 = vmatpush3.bf16.xpose.msra.mxu0 %v129_v5 }
  0x14   : > { %446 = vmatprep.subr.bf16.mxu0 %v482_v0  ;;  %v120_v6 = vpack.c.bf16 %v119_v4, %v119_v4 }
  0x16   : > { %232 = vrot.lane.b32.xlu1 %v120_v6, %s484_s12 }
  0x1a   : > { %431 = vmatmul.mubr.msk.bf16.vlgmr.msra.gmra.mxu0 %vm124_vm1, %v120_v6 }
  0x1b   : > { %448 = vmatprep.mubr.msk.bf16.mxu0 %vm483_vm0, %v482_v0 }
  0x84   : > { %v235_v21 = vpop.permute.xlu1 %234 }
  0x85   : > { %v240_v23 = vsel %vm124_vm1, %v235_v21, 0 }
  0x88   : > { %v233_v25 = vpop.permute.xlu1 %232 }
  0xda   : > { %v165_v7 = vpop.f32.mrf.mxu0 }
  0xdb   : > { %v172_v8 = vsel %vm171_vm2, %v165_v7, -inf }
  0xdc   : > { %173 = vmax.xlane.f32.xlu0 %v172_v8  ;;  %v432_v9 = vpop.f32.mrf.mxu0 }
  0xde   : > { %v168_v10 = vpop.f32.mrf.mxu0 }
  0xe0   : > { %v433_v11 = vpop.f32.mrf.mxu0 }
 0x165   : > { %v174_v12 = vpop.xlane.xlu0 %173 }
 0x166   : > { %v175_v13 = vsub.f32 %v165_v7, %v174_v12 }
 0x168   : > { %v176_v14 = vmul.f32 1.442695, %v175_v13 }
 0x16a   : > { %466 = vpow2.f32 %v176_v14 }
 0x177   : > { %v467_v15 = vpop.eup %466 }
 0x178   : > { %v178_v16 = vsel %vm171_vm2, %v467_v15, 0.0 }
 0x179   : > { %179 = vadd.xlane.f32.xlu0 %v178_v16 }
 0x202   : > { %v180_v19 = vpop.xlane.xlu0 %179 }
 0x203   : > { %468 = vrcp.f32 %v180_v19 }
 0x210   : > { %v469_v20 = vpop.eup %468 }
 0x211   : > { %v182_v22 = vmul.f32 %v469_v20, %v467_v15 }
 0x213   : > { %v183_v24 = vpack.c.bf16 %v182_v22, %v182_v22 }
 0x215   : > { %437 = vmatmul.mubr.msk.bf16.vlgmr.msra.gmra.mxu1 %vm171_vm2, %v183_v24 }
 0x216   : > { %441 = vmatpush3.bf16.xpose.msra.mxu1 %v240_v23  ;;  %442 = vmatprep.mubr.msk.bf16.mxu1 %vm483_vm0, %v482_v0 }
 0x21d   : > { %443 = vmatmul.mubr.msk.bf16.vlgmr.msra.gmra.mxu1 %vm124_vm1, %v233_v25 }
 0x2d5   : > { %v225_v26 = vpop.f32.mrf.mxu1 }
 0x2d7   : > { %v438_v27 = vpop.f32.mrf.mxu1 }
 0x2d9   : > { %v228_v28 = vpop.f32.mrf.mxu1 }
 0x2db   : > { %v439_v29 = vpop.f32.mrf.mxu1 }
 0x2dd   : > { %v276_v30 = vpop.f32.mrf.mxu1 }
 0x2de   : > { %v282_v31 = vsel %vm171_vm2, %v276_v30, -inf }
 0x2df   : > { %283 = vmax.xlane.f32.xlu0 %v282_v31  ;;  %v444_v32 = vpop.f32.mrf.mxu1 }
 0x2e1   : > { %v279_v33 = vpop.f32.mrf.mxu1 }
 0x2e3   : > { %v445_v34 = vpop.f32.mrf.mxu1 }
 0x2f5   : > { %297 = vrot.lane.b32.xlu0 %v416_v35, %s484_s12 }
 0x368   : > { %v284_v36 = vpop.xlane.xlu0 %283 }
 0x369   : > { %v285_v37 = vsub.f32 %v276_v30, %v284_v36 }
 0x36b   : > { %v286_v38 = vmul.f32 1.442695, %v285_v37 }
 0x36c   : > { %v298_v41 = vpop.permute.xlu0 %297 }
 0x36d   : > { %470 = vpow2.f32 %v286_v38  ;;  %v303_v42 = vsel %vm187_vm3, %v298_v41, 0 }
 0x36e   : > { %447 = vmatpush3.bf16.msra.mxu0 %v303_v42 }
 0x37a   : > { %v471_v39 = vpop.eup %470 }
 0x37b   : > { %v288_v40 = vsel %vm171_vm2, %v471_v39, 0.0 }
 0x37c   : > { %289 = vadd.xlane.f32.xlu1 %v288_v40 }
 0x405   : > { %v290_v43 = vpop.xlane.xlu1 %289 }
 0x406   : > { %472 = vrcp.f32 %v290_v43 }
 0x413   : > { %v473_v44 = vpop.eup %472 }
 0x414   : > { %v292_v45 = vmul.f32 %v473_v44, %v471_v39 }
 0x416   : > { %v293_v46 = vpack.c.bf16 %v292_v45, %v292_v45 }
 0x418   : > { %449 = vmatmul.mubr.msk.bf16.vlgmr.msra.gmra.mxu0 %vm171_vm2, %v293_v46 }
 0x4d8   : > { %v339_v47 = vpop.f32.mrf.mxu0 }
 0x4d9   : > { %346 = vrot.lane.b32.xlu0 %v339_v47, %s484_s12 }
 0x4da   : > { %v450_v48 = vpop.f32.mrf.mxu0 }
 0x4dc   : > { %v342_v49 = vpop.f32.mrf.mxu0 }
 0x4de   : > { %v451_v50 = vpop.f32.mrf.mxu0 }
 0x54b   : > { %v347_v51 = vpop.permute.xlu0 %346 }
 0x54c   : > { %v349_v52 = vsel %vm124_vm1, %v225_v26, %v347_v51 }
 0x54d   : > { %v350_v53 = vpack.c.bf16 %v349_v52, %v349_v52 }
 0x54f   : > { %351 = vst [vmem:[%s114_s16] sm:$0xf] %v350_v53 }
 0x550 PF: > { %s11_s6 = sadd.s32 1, %s480_s6  }
 0x551   : > { %p8_p4 = scmp.ge.s32.totalorder %s11_s6, 4  }
 0x553   :  { %10 = sbr.rel (!%p8_p4) target bundleno = 1 (0x1), region = 54 }

// kernel: cct_forward.22
= control target key start
LH: loop header
LB: loop body
LE: loop exit
PB: predicated region body
PF: predicated region fallthrough
CT: control target
= control target key end

     0   :  { %10 = vsyncpa [#allocation3], 0  ;;  %s498_s18 = smov [#allocation2]   ;;  %s647_s0 = inlined_call_operand.vmem [shape: bf16[16,128], index: 0, kind: input, shape index: {}]   ;;  %s648_s1 = inlined_call_operand.vmem [shape: f32[1,128], index: 1, kind: input, shape index: {}]   ;;  %s649_s2 = inlined_call_operand.hbm [shape: f32[1,128], index: 2, kind: input, shape index: {}]   ;;  %s650_s3 = inlined_call_operand.vmem [shape: bf16[128,384], index: 3, kind: input, shape index: {}]   ;;  %s651_s4 = inlined_call_operand.vmem [shape: f32[1,384], index: 4, kind: input, shape index: {}]   ;;  %s652_s5 = inlined_call_operand.vmem [shape: bf16[16,384], index: 5, kind: output, shape index: {}]  }
   0x1   :  { %s21_s19 = sshll.u32 %s498_s18, 4  ;;  %s22_s19 = int_to_ptr.vmem [resolvable:$true] %s21_s19 }
   0x2   :  { %s484_s20 = scalar_lea.vmem %s22_s19, 16  ;;  %s488_s21 = scalar_lea.vmem %s22_s19, 32 }
   0x3   :  { %p485_p0 = scmp.ne.s32.totalorder %s22_s19, %s484_s20  ;;  %p489_p1 = scmp.lt.s32.totalorder %s22_s19, %s22_s19 }
   0x4   :  { %p490_p2 = scmp.lt.s32.totalorder %s488_s21, %s484_s20 }
   0x6   :  { %p491_p3 = por %p490_p2, %p489_p1 }
   0x8   :  { %p492_p4 = pnand %p491_p3, %p485_p0 }
   0xa   :  { %495 = shalt.err (!%p492_p4)
}
   0xb   :  { %24 = dma.hbm_to_vmem [thread:$0]  %s649_s2, 16, %s22_s19, [#allocation3]  }
   0xc   :  { %496 = dma.done.wait [#allocation3], 16  }
   0xd   :  { %497 = vsyncadd [#allocation3], 4294967280  ;;  %v404_v0 = vld [vmem:[%s647_s0] sm:$0xff]   ;;  %v440_v3 = vld [vmem:[%s650_s3 + $0xac] ss:$12 sps:$4 sm:$0xff]   ;;  %v499_v5 = vmov 0.0   ;;  %v113_v54 = vlaneseq }
   0xe   :  { %v405_v1 = vunpack.c.l.bf16 %v404_v0  ;;  %v406_v2 = vunpack.c.h.bf16 %v404_v0  ;;  %v442_v4 = vld [vmem:[%s650_s3 + $0xa8] ss:$12 sps:$4 sm:$0xff]   ;;  %416 = vmatprep.subr.bf16.mxu1 %v499_v5  ;;  %v443_v6 = vld [vmem:[%s650_s3 + $0xb0] ss:$12 sps:$4 sm:$0xff]   ;;  %256 = vmatprep.subr.bf16.mxu0 %v440_v3  ;;  %v447_v17 = vld [vmem:[%s650_s3 + $0x98] ss:$12 sps:$4 sm:$0xff]  }
   0xf   :  { %257 = vmatpush1.bf16.msra.mxu0 %v442_v4  ;;  %417 = vmatpush3.bf16.msra.mxu1 %v443_v6  ;;  %v444_v15 = vld [vmem:[%s650_s3 + $0x94] ss:$12 sps:$4 sm:$0xff]   ;;  %v446_v16 = vld [vmem:[%s650_s3 + $0x90] ss:$12 sps:$4 sm:$0xff]   ;;  %v450_v19 = vld [vmem:[%s650_s3 + $0x78] ss:$12 sps:$4 sm:$0xff]  }
  0x10   :  { %37 = vadd.xlane.f32.xlu0 %v405_v1  ;;  %418 = vmatprep.subr.bf16.mxu1 %v499_v5  ;;  %v448_v18 = vld [vmem:[%s650_s3 + $0x7c] ss:$12 sps:$4 sm:$0xff]   ;;  %v451_v20 = vld [vmem:[%s650_s3 + $0x80] ss:$12 sps:$4 sm:$0xff]   ;;  %v452_v21 = vld [vmem:[%s650_s3 + $0x64] ss:$12 sps:$4 sm:$0xff]  }
  0x11   :  { %258 = vmatprep.subr.bf16.mxu0 %v444_v15  ;;  %v454_v22 = vld [vmem:[%s650_s3 + $0x60] ss:$12 sps:$4 sm:$0xff]   ;;  %v455_v23 = vld [vmem:[%s650_s3 + $0x68] ss:$12 sps:$4 sm:$0xff]   ;;  %v459_v26 = vld [vmem:[%s650_s3 + $0x50] ss:$12 sps:$4 sm:$0xff]  }
  0x12   :  { %v456_v24 = vld [vmem:[%s650_s3 + $0x4c] ss:$12 sps:$4 sm:$0xff]   ;;  %v458_v25 = vld [vmem:[%s650_s3 + $0x48] ss:$12 sps:$4 sm:$0xff]   ;;  %v500_v28 = vmov 0   ;;  %vm501_vm0 = vmmov 0  }
  0x13   :  { %259 = vmatpush1.bf16.msra.mxu0 %v446_v16  ;;  %419 = vmatpush3.bf16.msra.mxu1 %v447_v17  ;;  %v460_v27 = vld [vmem:[%s650_s3 + $0x34] ss:$12 sps:$4 sm:$0xff]   ;;  %v462_v29 = vld [vmem:[%s650_s3 + $0x30] ss:$12 sps:$4 sm:$0xff]   ;;  %v463_v30 = vld [vmem:[%s650_s3 + $0x38] ss:$12 sps:$4 sm:$0xff]  }
  0x14   :  { %39 = vadd.xlane.f32.xlu0 %v406_v2  ;;  %420 = vmatprep.subr.bf16.mxu1 %v499_v5  ;;  %v464_v31 = vld [vmem:[%s650_s3 + $0x1c] ss:$12 sps:$4 sm:$0xff]   ;;  %v466_v32 = vld [vmem:[%s650_s3 + $0x18] ss:$12 sps:$4 sm:$0xff]   ;;  %v467_v33 = vld [vmem:[%s650_s3 + $0x20] ss:$12 sps:$4 sm:$0xff]  }
  0x15   :  { %260 = vmatprep.subr.bf16.mxu0 %v448_v18  ;;  %288 = vmatprep.mubr.bf16.mxu0 %v500_v28  ;;  %v468_v34 = vld [vmem:[%s650_s3 + $0x4] ss:$12 sps:$4 sm:$0xff]   ;;  %v470_v35 = vld [vmem:[%s650_s3] ss:$12 sps:$4 sm:$0xff]   ;;  %v471_v36 = vld [vmem:[%s650_s3 + $0x8] ss:$12 sps:$4 sm:$0xff]  }
  0x16   :  { %432 = vmatprep.mubr.msk.bf16.mxu1 %vm501_vm0, %v499_v5  ;;  %v369_v45 = vld [vmem:[%s648_s1] ss:$0 sm:$0xff]  ;;  %v114_v55 = vshrl.u32 %v113_v54, 7 }
  0x17   :  { %261 = vmatpush1.bf16.msra.mxu0 %v450_v19  ;;  %421 = vmatpush3.bf16.msra.mxu1 %v451_v20  ;;  %v370_v49 = vld [vmem:[#allocation2] ss:$0 sm:$0xff] }
  0x18   :  { %422 = vmatprep.subr.bf16.mxu1 %v499_v5  ;;  %262 = vmatprep.subr.bf16.mxu0 %v452_v21  ;;  %v123_v56 = vsub.s32 2, %v114_v55  ;;  %v111_v57 = vld [vmem:[%s651_s4] sm:$0x7]  ;;  %v115_v58 = vsub.s32 0, %v114_v55  ;;  %v119_v59 = vsub.s32 1, %v114_v55 }
  0x1a   :  { %v124_v60 = vrot.slane %v111_v57, %v123_v56  ;;  %v116_v61 = vrot.slane %v111_v57, %v115_v58  ;;  %v120_v62 = vrot.slane %v111_v57, %v119_v59 }
  0x1b   :  { %263 = vmatpush1.bf16.msra.mxu0 %v454_v22  ;;  %423 = vmatpush3.bf16.msra.mxu1 %v455_v23 }
  0x1c   :  { %264 = vmatprep.subr.bf16.mxu0 %v456_v24  ;;  %424 = vmatprep.subr.bf16.mxu1 %v499_v5 }
  0x1f   :  { %265 = vmatpush1.bf16.msra.mxu0 %v458_v25  ;;  %425 = vmatpush3.bf16.msra.mxu1 %v459_v26 }
  0x20   :  { %266 = vmatprep.subr.bf16.mxu0 %v460_v27  ;;  %426 = vmatprep.subr.bf16.mxu1 %v499_v5 }
  0x23   :  { %267 = vmatpush1.bf16.msra.mxu0 %v462_v29  ;;  %427 = vmatpush3.bf16.msra.mxu1 %v463_v30 }
  0x24   :  { %268 = vmatprep.subr.bf16.mxu0 %v464_v31  ;;  %428 = vmatprep.subr.bf16.mxu1 %v499_v5 }
  0x27   :  { %269 = vmatpush1.bf16.msra.mxu0 %v466_v32  ;;  %429 = vmatpush3.bf16.msra.mxu1 %v467_v33 }
  0x28   :  { %270 = vmatprep.subr.bf16.mxu0 %v468_v34  ;;  %430 = vmatprep.subr.bf16.mxu1 %v499_v5 }
  0x2b   :  { %271 = vmatpush1.bf16.msra.mxu0 %v470_v35  ;;  %431 = vmatpush3.bf16.msra.mxu1 %v471_v36 }
  0x99   :  { %v38_v7 = vpop.xlane.xlu0 %37 }
  0x9a   :  { %v42_v8 = vmul.f32 0.0078125, %v38_v7 }
  0x9c   :  { %v549_v9 = vsub.f32 %v405_v1, %v42_v8 }
  0x9d   :  { %v40_v10 = vpop.xlane.xlu0 %39 }
  0x9e   :  { %v43_v11 = vmul.f32 0.0078125, %v40_v10  ;;  %v46_v12 = vmul.f32 %v549_v9, %v549_v9 }
  0xa0   :  { %v553_v13 = vsub.f32 %v406_v2, %v43_v11  ;;  %48 = vadd.xlane.f32.xlu1 %v46_v12 }
  0xa2   :  { %v47_v14 = vmul.f32 %v553_v13, %v553_v13 }
  0xa4   :  { %50 = vadd.xlane.f32.xlu1 %v47_v14 }
 0x129   :  { %v49_v37 = vpop.xlane.xlu1 %48 }
 0x12a   :  { %v52_v38 = vmul.f32 0.0078125, %v49_v37 }
 0x12c   :  { %v54_v39 = vadd.f32 1e-05, %v52_v38 }
 0x12d   :  { %v51_v40 = vpop.xlane.xlu1 %50 }
 0x12e   :  { %472 = vrsqrt.f32 %v54_v39  ;;  %v53_v41 = vmul.f32 0.0078125, %v51_v40 }
 0x130   :  { %v55_v42 = vadd.f32 1e-05, %v53_v41 }
 0x132   :  { %474 = vrsqrt.f32 %v55_v42 }
 0x13b   :  { %v473_v43 = vpop.eup %472 }
 0x13c   :  { %v58_v44 = vmul.f32 %v473_v43, %v549_v9 }
 0x13e   :  { %v67_v48 = vmul.f32 %v369_v45, %v58_v44 }
 0x13f   :  { %v475_v46 = vpop.eup %474 }
 0x140   :  { %v59_v47 = vmul.f32 %v475_v46, %v553_v13  ;;  %v76_v51 = vadd.f32 %v370_v49, %v67_v48 }
 0x142   :  { %v68_v50 = vmul.f32 %v369_v45, %v59_v47 }
 0x144   :  { %v77_v52 = vadd.f32 %v370_v49, %v68_v50 }
 0x146   :  { %v78_v53 = vpack.c.bf16 %v77_v52, %v76_v51 }
 0x148   :  { %289 = vmatmul.mubr.bf16.vlgmr.msra.gmra.mxu0 %v78_v53  ;;  %433 = vmatmul.mubr.bf16.vlgmr.msra.gmra.mxu1 %v78_v53 }
 0x208   :  { %v290_v63 = vpop.f32.mrf.mxu0  ;;  %v333_v0 = vpop.f32.mrf.mxu1 }
 0x209   :  { %v334_v1 = vadd.f32 %v333_v0, %v124_v60  ;;  %v291_v4 = vadd.f32 %v290_v63, %v116_v61 }
 0x20a   :  { %v292_v2 = vpop.f32.mrf.mxu0  ;;  %v434_v3 = vpop.f32.mrf.mxu1 }
 0x20b   :  { %v400_v5 = vpack.c.bf16 %v334_v1, %v334_v1  ;;  %v293_v6 = vadd.f32 %v292_v2, %v120_v62 }
 0x20c   :  { %v294_v7 = vpop.f32.mrf.mxu0  ;;  %v336_v8 = vpop.f32.mrf.mxu1 }
 0x20d   :  { %361 = vst [vmem:[%s652_s5 + $0x8] sm:$0xf] %v400_v5  ;;  %v399_v9 = vpack.c.bf16 %v293_v6, %v291_v4  ;;  %v337_v10 = vadd.f32 %v336_v8, %v124_v60  ;;  %v295_v13 = vadd.f32 %v294_v7, %v116_v61 }
 0x20e   :  { %v296_v11 = vpop.f32.mrf.mxu0  ;;  %v435_v12 = vpop.f32.mrf.mxu1 }
 0x20f   :  { %360 = vst [vmem:[%s652_s5] sm:$0xff] %v399_v9  ;;  %v402_v14 = vpack.c.bf16 %v337_v10, %v337_v10  ;;  %v297_v15 = vadd.f32 %v296_v11, %v120_v62 }
 0x211   :  { %363 = vst [vmem:[%s652_s5 + $0x14] sm:$0xf] %v402_v14  ;;  %v401_v16 = vpack.c.bf16 %v297_v15, %v295_v13 }
 0x213   :  { %362 = vst [vmem:[%s652_s5 + $0xc] sm:$0xff] %v401_v16 }
 0x214   :  { %368 = vsyncpa [#allocation3], 1 }

// kernel: cct_forward.24
= control target key start
LH: loop header
LB: loop body
LE: loop exit
PB: predicated region body
PF: predicated region fallthrough
CT: control target
= control target key end

     0   :  { %v221_v0 = vmov 0.0   ;;  %vm222_vm0 = vmmov 0   ;;  %s284_s1 = inlined_call_operand.vmem [shape: bf16[128,128], index: 1, kind: input, shape index: {}]   ;;  %s285_s0 = inlined_call_operand.vmem [shape: bf16[16,128], index: 0, kind: input, shape index: {}]   ;;  %s286_s2 = inlined_call_operand.vmem [shape: f32[1,128], index: 2, kind: input, shape index: {}]   ;;  %s287_s3 = inlined_call_operand.vmem [shape: bf16[16,128], index: 3, kind: input, shape index: {}]   ;;  %s288_s4 = inlined_call_operand.vmem [shape: bf16[16,128], index: 4, kind: output, shape index: {}]  }
   0x1   :  { %190 = vmatprep.subr.bf16.mxu0 %v221_v0  ;;  %v212_v1 = vld [vmem:[%s284_s1 + $0x38] sm:$0xff]   ;;  %206 = vmatprep.mubr.msk.bf16.mxu0 %vm222_vm0, %v221_v0  ;;  %v213_v2 = vld [vmem:[%s284_s1 + $0x30] sm:$0xff]   ;;  %v214_v3 = vld [vmem:[%s284_s1 + $0x28] sm:$0xff]  }
   0x2   :  { %191 = vmatpush3.bf16.msra.mxu0 %v212_v1  ;;  %v215_v4 = vld [vmem:[%s284_s1 + $0x20] sm:$0xff]   ;;  %v216_v5 = vld [vmem:[%s284_s1 + $0x18] sm:$0xff]   ;;  %v217_v6 = vld [vmem:[%s284_s1 + $0x10] sm:$0xff]  }
   0x3   :  { %192 = vmatprep.subr.bf16.mxu0 %v221_v0  ;;  %v218_v7 = vld [vmem:[%s284_s1 + $0x8] sm:$0xff]   ;;  %v219_v8 = vld [vmem:[%s284_s1] sm:$0xff]  }
   0x4   :  { %v220_v9 = vld [vmem:[%s285_s0] sm:$0xff]  }
   0x5   :  { %v158_v10 = vld [vmem:[%s286_s2] ss:$0 sm:$0xff] }
   0x6   :  { %193 = vmatpush3.bf16.msra.mxu0 %v213_v2  ;;  %v173_v12 = vld [vmem:[%s287_s3] sm:$0xff]  }
   0x7   :  { %194 = vmatprep.subr.bf16.mxu0 %v221_v0  ;;  %v174_v15 = vunpack.c.l.bf16 %v173_v12  ;;  %v175_v16 = vunpack.c.h.bf16 %v173_v12 }
   0xa   :  { %195 = vmatpush3.bf16.msra.mxu0 %v214_v3 }
   0xb   :  { %196 = vmatprep.subr.bf16.mxu0 %v221_v0 }
   0xe   :  { %197 = vmatpush3.bf16.msra.mxu0 %v215_v4 }
   0xf   :  { %198 = vmatprep.subr.bf16.mxu0 %v221_v0 }
  0x12   :  { %199 = vmatpush3.bf16.msra.mxu0 %v216_v5 }
  0x13   :  { %200 = vmatprep.subr.bf16.mxu0 %v221_v0 }
  0x16   :  { %201 = vmatpush3.bf16.msra.mxu0 %v217_v6 }
  0x17   :  { %202 = vmatprep.subr.bf16.mxu0 %v221_v0 }
  0x1a   :  { %203 = vmatpush3.bf16.msra.mxu0 %v218_v7 }
  0x1b   :  { %204 = vmatprep.subr.bf16.mxu0 %v221_v0 }
  0x1e   :  { %205 = vmatpush3.bf16.msra.mxu0 %v219_v8 }
  0x21   :  { %207 = vmatmul.mubr.bf16.vlgmr.msra.gmra.mxu0 %v220_v9 }
  0xe1   :  { %v131_v11 = vpop.f32.mrf.mxu0 }
  0xe2   :  { %v132_v14 = vadd.f32 %v158_v10, %v131_v11 }
  0xe3   :  { %v208_v13 = vpop.f32.mrf.mxu0 }
  0xe4   :  { %v142_v20 = vadd.f32 %v174_v15, %v132_v14 }
  0xe5   :  { %v134_v17 = vpop.f32.mrf.mxu0 }
  0xe6   :  { %v135_v18 = vadd.f32 %v158_v10, %v134_v17 }
  0xe7   :  { %v209_v19 = vpop.f32.mrf.mxu0 }
  0xe8   :  { %v143_v21 = vadd.f32 %v175_v16, %v135_v18 }
  0xea   :  { %v179_v22 = vpack.c.bf16 %v143_v21, %v142_v20 }
  0xec   :  { %180 = vst [vmem:[%s288_s4] sm:$0xff] %v179_v22  }

// kernel: cct_forward.26
= control target key start
LH: loop header
LB: loop body
LE: loop exit
PB: predicated region body
PF: predicated region fallthrough
CT: control target
= control target key end

     0   :  { %s500_s6 = smov 0   ;;  %s548_s0 = inlined_call_operand.vmem [shape: bf16[16,8,384], index: 0, kind: input, shape index: {}]   ;;  %s549_s1 = inlined_call_operand.vmem [shape: bf16[16,8,128], index: 1, kind: output, shape index: {}]  }
   0x1 LB: > { %s410_s7 = sadd.s32 4294967295, %s485_s6   ;;  %p414_p0 = scmp.ge.s32.totalorder %s485_s6, 1  ;;  %s485_s6 = sphi %s500_s6, %s11_s6  }
   0x2   : > { %p87_p1 = scmp.lt.s32.totalorder %s485_s6, 17 }
   0x4   : > { %p88_p2 = pnand %p414_p0, %p87_p1 }
   0x5   : > { %p106_p3 = scmp.lt.s32.totalorder (!%p88_p2), %s410_s7, 15  ;;  %s489_s12 = smov (!%p88_p2), 64  }
   0x6   : > { %91 = sbr.rel (%p88_p2) target bundleno = 1362 (0x552), region = 24 }
   0xb   : > { %v487_v0 = vmov 0.0   ;;  %vm488_vm0 = vmmov 0   ;;  %s551_s7 = smov (!%p106_p3, %s410_s7), 15  ;;  %vm127_vm1 = vcmask 523264   ;;  %v118_v7 = vlaneseq }
   0xc   : > { %433 = vmatprep.subr.bf16.mxu0 %v487_v0  ;;  %435 = vmatprep.mubr.msk.bf16.mxu0 %vm488_vm0, %v487_v0  ;;  %s457_s8 = smul.u32 12, %s551_s7  ;;  %vm175_vm3 = vcmask 64512   ;;  %vm191_vm4 = vcmask 1043456   ;;  %s416_s13 = sshll.u32 %s551_s7, 2 }
   0xd   : > { %439 = vmatprep.subr.bf16.mxu1 %v487_v0  ;;  %441 = vmatprep.mubr.msk.bf16.mxu1 %vm488_vm0, %v487_v0  ;;  %v119_v8 = vand.u32 127, %v118_v7  ;;  %s114_s16 = scalar_lea.vmem %s549_s1, %s416_s13 }
   0xe   : > { %s516_s11 = scalar_lea.vmem %s548_s0, %s457_s8 }
   0xf   : > { %v116_v1 = vld [vmem:[%s516_s11] sm:$0xff]  ;;  %vm120_vm2 = vcmp.lt.s32.totalorder %v119_v8, 6  ;;  %v117_v20 = vld [vmem:[%s516_s11 + $0x8] sm:$0xf] }
  0x10   : > { %v121_v2 = vunpack.c.l.bf16 %v116_v1  ;;  %v417_v3 = vcombine.high %v116_v1, %v116_v1  ;;  %v193_v21 = vsel %vm191_vm4, %v117_v20, 0  ;;  %v421_v39 = vcombine.low %v117_v20, %v117_v20 }
  0x11   : > { %440 = vmatpush3.bf16.msra.mxu1 %v193_v21 }
  0x12   : > { %v122_v4 = vmul.f32 0.125, %v121_v2  ;;  %v132_v5 = vsel %vm127_vm1, %v417_v3, 0  ;;  %238 = vrot.lane.b32.xlu1 %v417_v3, %s489_s12  ;;  %445 = vmatprep.subr.bf16.mxu1 %v487_v0 }
  0x13   : > { %434 = vmatpush3.bf16.xpose.msra.mxu0 %v132_v5 }
  0x14   : > { %451 = vmatprep.subr.bf16.mxu0 %v487_v0  ;;  %v123_v6 = vpack.c.bf16 %v122_v4, %v122_v4 }
  0x16   : > { %236 = vrot.lane.b32.xlu1 %v123_v6, %s489_s12 }
  0x1a   : > { %436 = vmatmul.mubr.msk.bf16.vlgmr.msra.gmra.mxu0 %vm127_vm1, %v123_v6 }
  0x1b   : > { %453 = vmatprep.mubr.msk.bf16.mxu0 %vm488_vm0, %v487_v0 }
  0x84   : > { %v239_v24 = vpop.permute.xlu1 %238 }
  0x85   : > { %v244_v26 = vsel %vm127_vm1, %v239_v24, 0 }
  0x88   : > { %v237_v28 = vpop.permute.xlu1 %236 }
  0xda   : > { %v168_v9 = vpop.f32.mrf.mxu0 }
  0xdb   : > { %v174_v10 = vsel %vm120_vm2, %v168_v9, -1e+30 }
  0xdc   : > { %v437_v11 = vpop.f32.mrf.mxu0  ;;  %v176_v12 = vsel %vm175_vm3, %v174_v10, -inf }
  0xdd   : > { %177 = vmax.xlane.f32.xlu0 %v176_v12 }
  0xde   : > { %v171_v13 = vpop.f32.mrf.mxu0 }
  0xe0   : > { %v438_v14 = vpop.f32.mrf.mxu0 }
 0x166   : > { %v178_v15 = vpop.xlane.xlu0 %177 }
 0x167   : > { %v179_v16 = vsub.f32 %v174_v10, %v178_v15 }
 0x169   : > { %v180_v17 = vmul.f32 1.442695, %v179_v16 }
 0x16b   : > { %471 = vpow2.f32 %v180_v17 }
 0x178   : > { %v472_v18 = vpop.eup %471 }
 0x179   : > { %v182_v19 = vsel %vm175_vm3, %v472_v18, 0.0 }
 0x17a   : > { %183 = vadd.xlane.f32.xlu0 %v182_v19 }
 0x203   : > { %v184_v22 = vpop.xlane.xlu0 %183 }
 0x204   : > { %473 = vrcp.f32 %v184_v22 }
 0x211   : > { %v474_v23 = vpop.eup %473 }
 0x212   : > { %v186_v25 = vmul.f32 %v474_v23, %v472_v18 }
 0x214   : > { %v187_v27 = vpack.c.bf16 %v186_v25, %v186_v25 }
 0x216   : > { %442 = vmatmul.mubr.msk.bf16.vlgmr.msra.gmra.mxu1 %vm175_vm3, %v187_v27 }
 0x217   : > { %446 = vmatpush3.bf16.xpose.msra.mxu1 %v244_v26  ;;  %447 = vmatprep.mubr.msk.bf16.mxu1 %vm488_vm0, %v487_v0 }
 0x21e   : > { %448 = vmatmul.mubr.msk.bf16.vlgmr.msra.gmra.mxu1 %vm127_vm1, %v237_v28 }
 0x2d6   : > { %v229_v29 = vpop.f32.mrf.mxu1 }
 0x2d8   : > { %v443_v30 = vpop.f32.mrf.mxu1 }
 0x2da   : > { %v232_v31 = vpop.f32.mrf.mxu1 }
 0x2dc   : > { %v444_v32 = vpop.f32.mrf.mxu1 }
 0x2de   : > { %v280_v33 = vpop.f32.mrf.mxu1 }
 0x2df   : > { %v286_v34 = vsel %vm120_vm2, %v280_v33, -1e+30 }
 0x2e0   : > { %v449_v35 = vpop.f32.mrf.mxu1  ;;  %v287_v36 = vsel %vm175_vm3, %v286_v34, -inf }
 0x2e1   : > { %288 = vmax.xlane.f32.xlu0 %v287_v36 }
 0x2e2   : > { %v283_v37 = vpop.f32.mrf.mxu1 }
 0x2e4   : > { %v450_v38 = vpop.f32.mrf.mxu1 }
 0x2f7   : > { %302 = vrot.lane.b32.xlu0 %v421_v39, %s489_s12 }
 0x36a   : > { %v289_v40 = vpop.xlane.xlu0 %288 }
 0x36b   : > { %v290_v41 = vsub.f32 %v286_v34, %v289_v40 }
 0x36d   : > { %v291_v42 = vmul.f32 1.442695, %v290_v41 }
 0x36e   : > { %v303_v45 = vpop.permute.xlu0 %302 }
 0x36f   : > { %475 = vpow2.f32 %v291_v42  ;;  %v308_v46 = vsel %vm191_vm4, %v303_v45, 0 }
 0x370   : > { %452 = vmatpush3.bf16.msra.mxu0 %v308_v46 }
 0x37c   : > { %v476_v43 = vpop.eup %475 }
 0x37d   : > { %v293_v44 = vsel %vm175_vm3, %v476_v43, 0.0 }
 0x37e   : > { %294 = vadd.xlane.f32.xlu1 %v293_v44 }
 0x407   : > { %v295_v47 = vpop.xlane.xlu1 %294 }
 0x408   : > { %477 = vrcp.f32 %v295_v47 }
 0x415   : > { %v478_v48 = vpop.eup %477 }
 0x416   : > { %v297_v49 = vmul.f32 %v478_v48, %v476_v43 }
 0x418   : > { %v298_v50 = vpack.c.bf16 %v297_v49, %v297_v49 }
 0x41a   : > { %454 = vmatmul.mubr.msk.bf16.vlgmr.msra.gmra.mxu0 %vm175_vm3, %v298_v50 }
 0x4da   : > { %v344_v51 = vpop.f32.mrf.mxu0 }
 0x4db   : > { %351 = vrot.lane.b32.xlu0 %v344_v51, %s489_s12 }
 0x4dc   : > { %v455_v52 = vpop.f32.mrf.mxu0 }
 0x4de   : > { %v347_v53 = vpop.f32.mrf.mxu0 }
 0x4e0   : > { %v456_v54 = vpop.f32.mrf.mxu0 }
 0x54d   : > { %v352_v55 = vpop.permute.xlu0 %351 }
 0x54e   : > { %v354_v56 = vsel %vm127_vm1, %v229_v29, %v352_v55 }
 0x54f   : > { %v355_v57 = vpack.c.bf16 %v354_v56, %v354_v56 }
 0x551   : > { %356 = vst [vmem:[%s114_s16] sm:$0xf] %v355_v57 }
 0x552 PF: > { %s11_s6 = sadd.s32 1, %s485_s6  }
 0x553   : > { %p8_p4 = scmp.ge.s32.totalorder %s11_s6, 18  }
 0x555   :  { %10 = sbr.rel (!%p8_p4) target bundleno = 1 (0x1), region = 54 }

// kernel: cct_forward.25
= control target key start
LH: loop header
LB: loop body
LE: loop exit
PB: predicated region body
PF: predicated region fallthrough
CT: control target
= control target key end

     0   :  { %10 = vsyncpa [#allocation3], 0  ;;  %s1337_s0 = inlined_call_operand.vmem [shape: bf16[96,128], index: 0, kind: input, shape index: {}]   ;;  %s1338_s1 = inlined_call_operand.hbm [shape: f32[1,128], index: 1, kind: input, shape index: {}]   ;;  %s1339_s2 = inlined_call_operand.hbm [shape: f32[1,128], index: 2, kind: input, shape index: {}]   ;;  %s1340_s3 = inlined_call_operand.vmem [shape: bf16[128,384], index: 3, kind: input, shape index: {}]   ;;  %s1341_s4 = inlined_call_operand.vmem [shape: f32[1,384], index: 4, kind: input, shape index: {}]   ;;  %s1342_s5 = inlined_call_operand.vmem [shape: bf16[96,384], index: 5, kind: output, shape index: {}]  }
   0x1   :  { %11 = vsyncpa [#allocation5], 0  ;;  %s995_s18 = smov [#allocation2]   ;;  %s996_s20 = smov [#allocation4]  }
   0x2   :  { %s20_s19 = sshll.u32 %s995_s18, 4  ;;  %s30_s21 = sshll.u32 %s996_s20, 4  ;;  %s21_s19 = int_to_ptr.vmem [resolvable:$true] %s20_s19  ;;  %s31_s21 = int_to_ptr.vmem [resolvable:$true] %s30_s21 }
   0x3   :  { %s959_s22 = scalar_lea.vmem %s21_s19, 16  ;;  %s963_s23 = scalar_lea.vmem %s21_s19, 32 }
   0x4   :  { %p960_p0 = scmp.ne.s32.totalorder %s21_s19, %s959_s22  ;;  %p964_p1 = scmp.lt.s32.totalorder %s21_s19, %s21_s19 }
   0x5   :  { %p965_p2 = scmp.lt.s32.totalorder %s963_s23, %s959_s22 }
   0x7   :  { %p966_p3 = por %p965_p2, %p964_p1 }
   0x9   :  { %p967_p4 = pnand %p966_p3, %p960_p0 }
   0xb   :  { %970 = shalt.err (!%p967_p4)
}
   0xc   :  { %23 = dma.hbm_to_vmem [thread:$0]  %s1338_s1, 16, %s21_s19, [#allocation3]  }
   0xd   :  { %s979_s26 = scalar_lea.vmem %s31_s21, 16  ;;  %s983_s27 = scalar_lea.vmem %s31_s21, 32 }
   0xe   :  { %p980_p5 = scmp.ne.s32.totalorder %s31_s21, %s979_s26  ;;  %p984_p6 = scmp.lt.s32.totalorder %s31_s21, %s31_s21 }
   0xf   :  { %p985_p7 = scmp.lt.s32.totalorder %s983_s27, %s979_s26 }
  0x11   :  { %p986_p8 = por %p985_p7, %p984_p6 }
  0x13   :  { %p987_p9 = pnand %p986_p8, %p980_p5 }
  0x15   :  { %990 = shalt.err (!%p987_p9)
}
  0x16   :  { %33 = dma.hbm_to_vmem [thread:$0]  %s1339_s2, 16, %s31_s21, [#allocation5]  }
  0x17   :  { %991 = dma.done.wait [#allocation3], 16  }
  0x18   :  { %992 = vsyncadd [#allocation3], 4294967280 }
  0x19   :  { %993 = dma.done.wait [#allocation5], 16  }
  0x1a   :  { %994 = vsyncadd [#allocation5], 4294967280  ;;  %v822_v0 = vld [vmem:[%s1337_s0] sm:$0xff]   ;;  %v845_v1 = vld [vmem:[%s1337_s0 + $0x8] sm:$0xff]  }
  0x1b   :  { %v823_v2 = vunpack.c.l.bf16 %v822_v0  ;;  %v827_v3 = vunpack.c.l.bf16 %v845_v1  ;;  %v846_v4 = vld [vmem:[%s1337_s0 + $0x10] sm:$0xff]   ;;  %v824_v5 = vunpack.c.h.bf16 %v822_v0  ;;  %v828_v6 = vunpack.c.h.bf16 %v845_v1  ;;  %v847_v7 = vld [vmem:[%s1337_s0 + $0x18] sm:$0xff]   ;;  %v1049_v12 = vld [vmem:[%s1337_s0 + $0x20] sm:$0xff]  }
  0x1c   :  { %v831_v8 = vunpack.c.l.bf16 %v846_v4  ;;  %v832_v9 = vunpack.c.h.bf16 %v846_v4  ;;  %v835_v10 = vunpack.c.l.bf16 %v847_v7  ;;  %v836_v11 = vunpack.c.h.bf16 %v847_v7  ;;  %v1056_v15 = vld [vmem:[%s1337_s0 + $0x28] sm:$0xff]   ;;  %v898_v55 = vld [vmem:[%s1340_s3 + $0x94] ss:$12 sps:$4 sm:$0xff]   ;;  %v900_v56 = vld [vmem:[%s1340_s3 + $0xb0] ss:$12 sps:$4 sm:$0xff]  }
  0x1d   :  { %69 = vadd.xlane.f32.xlu0 %v823_v2  ;;  %73 = vadd.xlane.f32.xlu1 %v827_v3  ;;  %v839_v13 = vunpack.c.l.bf16 %v1049_v12  ;;  %v840_v14 = vunpack.c.h.bf16 %v1049_v12  ;;  %v843_v16 = vunpack.c.l.bf16 %v1056_v15  ;;  %v844_v17 = vunpack.c.h.bf16 %v1056_v15  ;;  %v895_v18 = vld [vmem:[%s1340_s3 + $0xac] ss:$12 sps:$4 sm:$0xff]   ;;  %v897_v19 = vld [vmem:[%s1340_s3 + $0xa8] ss:$12 sps:$4 sm:$0xff]   ;;  %v901_v57 = vld [vmem:[%s1340_s3 + $0x90] ss:$12 sps:$4 sm:$0xff]  }
  0x1e   :  { %423 = vmatprep.subr.bf16.mxu0 %v895_v18  ;;  %864 = vmatprep.subr.bf16.mxu1 %v900_v56  ;;  %v905_v7 = vld [vmem:[%s1340_s3 + $0x78] ss:$12 sps:$4 sm:$0xff]   ;;  %v909_v12 = vld [vmem:[%s1340_s3 + $0x60] ss:$12 sps:$4 sm:$0xff]   ;;  %v913_v15 = vld [vmem:[%s1340_s3 + $0x48] ss:$12 sps:$4 sm:$0xff]  }
  0x1f   :  { %424 = vmatpush1.bf16.msra.mxu0 %v897_v19  ;;  %865 = vmatpush3.bf16.msra.mxu1 %v900_v56  ;;  %v917_v18 = vld [vmem:[%s1340_s3 + $0x30] ss:$12 sps:$4 sm:$0xff]  }
  0x20   :  { %425 = vmatprep.subr.bf16.mxu0 %v898_v55  ;;  %v918_v19 = vld [vmem:[%s1340_s3 + $0x1c] ss:$12 sps:$4 sm:$0xff]  }
  0x21   :  { %71 = vadd.xlane.f32.xlu0 %v824_v5  ;;  %75 = vadd.xlane.f32.xlu1 %v828_v6 }
  0x23   :  { %426 = vmatpush1.bf16.msra.mxu0 %v901_v57 }
  0x25   :  { %77 = vadd.xlane.f32.xlu0 %v831_v8  ;;  %79 = vadd.xlane.f32.xlu1 %v832_v9 }
  0x29   :  { %81 = vadd.xlane.f32.xlu0 %v835_v10  ;;  %83 = vadd.xlane.f32.xlu1 %v836_v11 }
  0x2d   :  { %85 = vadd.xlane.f32.xlu0 %v839_v13  ;;  %87 = vadd.xlane.f32.xlu1 %v840_v14 }
  0x31   :  { %89 = vadd.xlane.f32.xlu0 %v843_v16  ;;  %91 = vadd.xlane.f32.xlu1 %v844_v17 }
  0xa6   :  { %v70_v20 = vpop.xlane.xlu0 %69  ;;  %v74_v21 = vpop.xlane.xlu1 %73 }
  0xa7   :  { %v94_v22 = vmul.f32 0.0078125, %v70_v20  ;;  %v96_v23 = vmul.f32 0.0078125, %v74_v21  ;;  %v920_v20 = vld [vmem:[%s1340_s3 + $0x38] ss:$12 sps:$4 sm:$0xff]  }
  0xa8   :  { %v921_v21 = vld [vmem:[%s1340_s3 + $0x18] ss:$12 sps:$4 sm:$0xff]  }
  0xa9   :  { %v1070_v24 = vsub.f32 %v823_v2, %v94_v22  ;;  %v1072_v25 = vsub.f32 %v827_v3, %v96_v23  ;;  %v902_v2 = vld [vmem:[%s1340_s3 + $0x7c] ss:$12 sps:$4 sm:$0xff]   ;;  %v904_v3 = vld [vmem:[%s1340_s3 + $0x98] ss:$12 sps:$4 sm:$0xff]   ;;  %v924_v23 = vld [vmem:[%s1340_s3 + $0x20] ss:$12 sps:$4 sm:$0xff]  }
  0xaa   :  { %v72_v26 = vpop.xlane.xlu0 %71  ;;  %v76_v27 = vpop.xlane.xlu1 %75  ;;  %427 = vmatprep.subr.bf16.mxu0 %v902_v2  ;;  %866 = vmatprep.subr.bf16.mxu1 %v904_v3  ;;  %v922_v22 = vld [vmem:[%s1340_s3 + $0x4] ss:$12 sps:$4 sm:$0xff]  }
  0xab   :  { %v95_v28 = vmul.f32 0.0078125, %v72_v26  ;;  %v118_v29 = vmul.f32 %v1070_v24, %v1070_v24  ;;  %v97_v30 = vmul.f32 0.0078125, %v76_v27  ;;  %v120_v33 = vmul.f32 %v1072_v25, %v1072_v25  ;;  %428 = vmatpush1.bf16.msra.mxu0 %v905_v7  ;;  %867 = vmatpush3.bf16.msra.mxu1 %v904_v3  ;;  %v925_v26 = vld [vmem:[%s1340_s3] ss:$12 sps:$4 sm:$0xff]  }
  0xac   :  { %v997_v27 = vmov 0  }
  0xad   :  { %v1076_v31 = vsub.f32 %v824_v5, %v95_v28  ;;  %130 = vadd.xlane.f32.xlu0 %v118_v29  ;;  %v1078_v32 = vsub.f32 %v828_v6, %v97_v30  ;;  %455 = vmatprep.mubr.bf16.mxu0 %v997_v27  ;;  %v926_v28 = vld [vmem:[%s1340_s3 + $0x8] ss:$12 sps:$4 sm:$0xff]  }
  0xae   :  { %v78_v34 = vpop.xlane.xlu0 %77  ;;  %v80_v35 = vpop.xlane.xlu1 %79 }
  0xaf   :  { %v98_v36 = vmul.f32 0.0078125, %v78_v34  ;;  %v119_v37 = vmul.f32 %v1076_v31, %v1076_v31  ;;  %v99_v38 = vmul.f32 0.0078125, %v80_v35  ;;  %v121_v41 = vmul.f32 %v1078_v32, %v1078_v32 }
  0xb1   :  { %v1084_v39 = vsub.f32 %v831_v8, %v98_v36  ;;  %134 = vadd.xlane.f32.xlu0 %v120_v33  ;;  %132 = vadd.xlane.f32.xlu1 %v119_v37  ;;  %v1086_v40 = vsub.f32 %v832_v9, %v99_v38  ;;  %v906_v9 = vld [vmem:[%s1340_s3 + $0x64] ss:$12 sps:$4 sm:$0xff]  }
  0xb2   :  { %v82_v42 = vpop.xlane.xlu0 %81  ;;  %v84_v43 = vpop.xlane.xlu1 %83  ;;  %429 = vmatprep.subr.bf16.mxu0 %v906_v9 }
  0xb3   :  { %v100_v44 = vmul.f32 0.0078125, %v82_v42  ;;  %v122_v45 = vmul.f32 %v1084_v39, %v1084_v39  ;;  %v101_v46 = vmul.f32 0.0078125, %v84_v43  ;;  %v123_v49 = vmul.f32 %v1086_v40, %v1086_v40  ;;  %430 = vmatpush1.bf16.msra.mxu0 %v909_v12 }
  0xb5   :  { %v1092_v47 = vsub.f32 %v835_v10, %v100_v44  ;;  %136 = vadd.xlane.f32.xlu1 %v121_v41  ;;  %138 = vadd.xlane.f32.xlu0 %v122_v45  ;;  %v1094_v48 = vsub.f32 %v836_v11, %v101_v46  ;;  %v908_v10 = vld [vmem:[%s1340_s3 + $0x80] ss:$12 sps:$4 sm:$0xff]  }
  0xb6   :  { %v86_v50 = vpop.xlane.xlu0 %85  ;;  %v88_v51 = vpop.xlane.xlu1 %87  ;;  %868 = vmatprep.subr.bf16.mxu1 %v908_v10 }
  0xb7   :  { %v102_v52 = vmul.f32 0.0078125, %v86_v50  ;;  %v124_v53 = vmul.f32 %v1092_v47, %v1092_v47  ;;  %v103_v54 = vmul.f32 0.0078125, %v88_v51  ;;  %v125_v60 = vmul.f32 %v1094_v48, %v1094_v48  ;;  %869 = vmatpush3.bf16.msra.mxu1 %v908_v10 }
  0xb9   :  { %v1109_v58 = vsub.f32 %v839_v13, %v102_v52  ;;  %140 = vadd.xlane.f32.xlu1 %v123_v49  ;;  %142 = vadd.xlane.f32.xlu0 %v124_v53  ;;  %v1111_v59 = vsub.f32 %v840_v14, %v103_v54  ;;  %v910_v13 = vld [vmem:[%s1340_s3 + $0x4c] ss:$12 sps:$4 sm:$0xff]   ;;  %v912_v14 = vld [vmem:[%s1340_s3 + $0x68] ss:$12 sps:$4 sm:$0xff]  }
  0xba   :  { %v90_v61 = vpop.xlane.xlu0 %89  ;;  %v92_v62 = vpop.xlane.xlu1 %91  ;;  %431 = vmatprep.subr.bf16.mxu0 %v910_v13  ;;  %870 = vmatprep.subr.bf16.mxu1 %v912_v14 }
  0xbb   :  { %v104_v63 = vmul.f32 0.0078125, %v90_v61  ;;  %v126_v0 = vmul.f32 %v1109_v58, %v1109_v58  ;;  %v105_v1 = vmul.f32 0.0078125, %v92_v62  ;;  %v127_v6 = vmul.f32 %v1111_v59, %v1111_v59  ;;  %432 = vmatpush1.bf16.msra.mxu0 %v913_v15  ;;  %871 = vmatpush3.bf16.msra.mxu1 %v912_v14 }
  0xbd   :  { %v1125_v4 = vsub.f32 %v843_v16, %v104_v63  ;;  %144 = vadd.xlane.f32.xlu1 %v125_v60  ;;  %146 = vadd.xlane.f32.xlu0 %v126_v0  ;;  %v1129_v5 = vsub.f32 %v844_v17, %v105_v1  ;;  %v914_v16 = vld [vmem:[%s1340_s3 + $0x34] ss:$12 sps:$4 sm:$0xff]   ;;  %v916_v17 = vld [vmem:[%s1340_s3 + $0x50] ss:$12 sps:$4 sm:$0xff]  }
  0xbe   :  { %433 = vmatprep.subr.bf16.mxu0 %v914_v16  ;;  %872 = vmatprep.subr.bf16.mxu1 %v916_v17  ;;  %v748_v16 = vld [vmem:[#allocation4] ss:$0 sm:$0xff] }
  0xbf   :  { %v128_v8 = vmul.f32 %v1125_v4, %v1125_v4  ;;  %v129_v11 = vmul.f32 %v1129_v5, %v1129_v5  ;;  %434 = vmatpush1.bf16.msra.mxu0 %v917_v18  ;;  %873 = vmatpush3.bf16.msra.mxu1 %v916_v17 }
  0xc0   :  { %435 = vmatprep.subr.bf16.mxu0 %v918_v19  ;;  %874 = vmatprep.subr.bf16.mxu1 %v920_v20 }
  0xc1   :  { %148 = vadd.xlane.f32.xlu1 %v127_v6  ;;  %150 = vadd.xlane.f32.xlu0 %v128_v8  ;;  %v1190_v6 = vld [vmem:[#allocation2] ss:$0 sm:$0xff] }
  0xc3   :  { %436 = vmatpush1.bf16.msra.mxu0 %v921_v21  ;;  %875 = vmatpush3.bf16.msra.mxu1 %v920_v20 }
  0xc4   :  { %437 = vmatprep.subr.bf16.mxu0 %v922_v22  ;;  %876 = vmatprep.subr.bf16.mxu1 %v924_v23 }
  0xc5   :  { %152 = vadd.xlane.f32.xlu1 %v129_v11 }
  0xc7   :  { %438 = vmatpush1.bf16.msra.mxu0 %v925_v26  ;;  %877 = vmatpush3.bf16.msra.mxu1 %v924_v23 }
  0xc8   :  { %878 = vmatprep.subr.bf16.mxu1 %v926_v28 }
  0xcb   :  { %879 = vmatpush3.bf16.msra.mxu1 %v926_v28 }
 0x136   :  { %v131_v29 = vpop.xlane.xlu0 %130 }
 0x137   :  { %v154_v30 = vmul.f32 0.0078125, %v131_v29 }
 0x139   :  { %v166_v33 = vadd.f32 1e-05, %v154_v30 }
 0x13a   :  { %v133_v34 = vpop.xlane.xlu1 %132  ;;  %v135_v35 = vpop.xlane.xlu0 %134 }
 0x13b   :  { %927 = vrsqrt.f32 %v166_v33  ;;  %v155_v36 = vmul.f32 0.0078125, %v133_v34  ;;  %v156_v37 = vmul.f32 0.0078125, %v135_v35 }
 0x13d   :  { %v167_v38 = vadd.f32 1e-05, %v155_v36  ;;  %v168_v41 = vadd.f32 1e-05, %v156_v37 }
 0x13e   :  { %v137_v42 = vpop.xlane.xlu1 %136  ;;  %v139_v43 = vpop.xlane.xlu0 %138 }
 0x13f   :  { %929 = vrsqrt.f32 %v167_v38  ;;  %v157_v44 = vmul.f32 0.0078125, %v137_v42  ;;  %v158_v45 = vmul.f32 0.0078125, %v139_v43 }
 0x140   :  { %931 = vrsqrt.f32 %v168_v41 }
 0x141   :  { %v169_v46 = vadd.f32 1e-05, %v157_v44  ;;  %v170_v49 = vadd.f32 1e-05, %v158_v45 }
 0x142   :  { %v141_v50 = vpop.xlane.xlu1 %140  ;;  %v143_v51 = vpop.xlane.xlu0 %142 }
 0x143   :  { %933 = vrsqrt.f32 %v169_v46  ;;  %v159_v52 = vmul.f32 0.0078125, %v141_v50  ;;  %v160_v53 = vmul.f32 0.0078125, %v143_v51 }
 0x144   :  { %935 = vrsqrt.f32 %v170_v49 }
 0x145   :  { %v171_v54 = vadd.f32 1e-05, %v159_v52  ;;  %v172_v55 = vadd.f32 1e-05, %v160_v53 }
 0x146   :  { %v145_v56 = vpop.xlane.xlu1 %144  ;;  %v147_v57 = vpop.xlane.xlu0 %146 }
 0x147   :  { %937 = vrsqrt.f32 %v171_v54  ;;  %v161_v60 = vmul.f32 0.0078125, %v145_v56  ;;  %v162_v61 = vmul.f32 0.0078125, %v147_v57 }
 0x148   :  { %v928_v62 = vpop.eup %927  ;;  %939 = vrsqrt.f32 %v172_v55 }
 0x149   :  { %v173_v63 = vadd.f32 1e-05, %v161_v60  ;;  %v174_v0 = vadd.f32 1e-05, %v162_v61  ;;  %v190_v1 = vmul.f32 %v928_v62, %v1070_v24 }
 0x14a   :  { %v149_v2 = vpop.xlane.xlu1 %148  ;;  %v151_v3 = vpop.xlane.xlu0 %150 }
 0x14b   :  { %941 = vrsqrt.f32 %v173_v63  ;;  %v163_v7 = vmul.f32 0.0078125, %v149_v2  ;;  %v164_v8 = vmul.f32 0.0078125, %v151_v3  ;;  %v209_v14 = vmul.f32 %v1190_v6, %v190_v1 }
 0x14c   :  { %v930_v9 = vpop.eup %929  ;;  %943 = vrsqrt.f32 %v174_v0 }
 0x14d   :  { %v932_v10 = vpop.eup %931  ;;  %v175_v11 = vadd.f32 1e-05, %v163_v7  ;;  %v176_v12 = vadd.f32 1e-05, %v164_v8  ;;  %v191_v13 = vmul.f32 %v930_v9, %v1076_v31  ;;  %v228_v23 = vadd.f32 %v748_v16, %v209_v14 }
 0x14e   :  { %v153_v15 = vpop.xlane.xlu1 %152  ;;  %v192_v24 = vmul.f32 %v932_v10, %v1072_v25 }
 0x14f   :  { %945 = vrsqrt.f32 %v175_v11  ;;  %v165_v17 = vmul.f32 0.0078125, %v153_v15  ;;  %v210_v18 = vmul.f32 %v1190_v6, %v191_v13 }
 0x150   :  { %v934_v19 = vpop.eup %933  ;;  %947 = vrsqrt.f32 %v176_v12  ;;  %v211_v20 = vmul.f32 %v1190_v6, %v192_v24 }
 0x151   :  { %v936_v21 = vpop.eup %935  ;;  %v177_v22 = vadd.f32 1e-05, %v165_v17  ;;  %v229_v26 = vadd.f32 %v748_v16, %v210_v18  ;;  %v193_v31 = vmul.f32 %v934_v19, %v1078_v32 }
 0x152   :  { %v194_v28 = vmul.f32 %v936_v21, %v1084_v39  ;;  %v230_v33 = vadd.f32 %v748_v16, %v211_v20 }
 0x153   :  { %949 = vrsqrt.f32 %v177_v22  ;;  %v240_v29 = vpack.c.bf16 %v229_v26, %v228_v23  ;;  %v212_v25 = vmul.f32 %v1190_v6, %v193_v31 }
 0x154   :  { %v938_v30 = vpop.eup %937  ;;  %v213_v37 = vmul.f32 %v1190_v6, %v194_v28 }
 0x155   :  { %v940_v34 = vpop.eup %939  ;;  %456 = vmatmul.mubr.bf16.vlgmr.msra.gmra.mxu0 %v240_v29  ;;  %880 = vmatprep.mubr.bf16.mxu1 %v240_v29  ;;  %v231_v35 = vadd.f32 %v748_v16, %v212_v25  ;;  %v195_v36 = vmul.f32 %v938_v30, %v1086_v40 }
 0x156   :  { %465 = vmatprep.mubr.bf16.mxu0 %v997_v27  ;;  %v196_v32 = vmul.f32 %v940_v34, %v1092_v47  ;;  %v232_v44 = vadd.f32 %v748_v16, %v213_v37 }
 0x157   :  { %v241_v38 = vpack.c.bf16 %v231_v35, %v230_v33  ;;  %v214_v39 = vmul.f32 %v1190_v6, %v195_v36 }
 0x158   :  { %v942_v41 = vpop.eup %941  ;;  %v215_v42 = vmul.f32 %v1190_v6, %v196_v32 }
 0x159   :  { %v944_v43 = vpop.eup %943  ;;  %881 = vmatmul.mubr.bf16.vlgmr.msra.gmra.mxu1 %v241_v38  ;;  %v233_v45 = vadd.f32 %v748_v16, %v214_v39  ;;  %v197_v46 = vmul.f32 %v942_v41, %v1094_v48 }
 0x15a   :  { %v198_v40 = vmul.f32 %v944_v43, %v1109_v58  ;;  %v234_v52 = vadd.f32 %v748_v16, %v215_v42 }
 0x15b   :  { %v242_v49 = vpack.c.bf16 %v233_v45, %v232_v44  ;;  %v216_v50 = vmul.f32 %v1190_v6, %v197_v46 }
 0x15c   :  { %v946_v51 = vpop.eup %945  ;;  %v217_v55 = vmul.f32 %v1190_v6, %v198_v40 }
 0x15d   :  { %v948_v47 = vpop.eup %947  ;;  %466 = vmatmul.mubr.bf16.gmra.mxu0 %v241_v38  ;;  %884 = vmatprep.mubr.bf16.mxu1 %v242_v49  ;;  %v235_v53 = vadd.f32 %v748_v16, %v216_v50  ;;  %v199_v54 = vmul.f32 %v946_v51, %v1111_v59 }
 0x15e   :  { %475 = vmatprep.mubr.bf16.mxu0 %v997_v27  ;;  %v200_v56 = vmul.f32 %v948_v47, %v1125_v4  ;;  %v236_v60 = vadd.f32 %v748_v16, %v217_v55 }
 0x15f   :  { %v243_v48 = vpack.c.bf16 %v235_v53, %v234_v52  ;;  %v218_v58 = vmul.f32 %v1190_v6, %v199_v54 }
 0x160   :  { %v950_v57 = vpop.eup %949  ;;  %v219_v63 = vmul.f32 %v1190_v6, %v200_v56 }
 0x161   :  { %885 = vmatmul.mubr.bf16.gmra.mxu1 %v243_v48  ;;  %v237_v61 = vadd.f32 %v748_v16, %v218_v58  ;;  %v201_v62 = vmul.f32 %v950_v57, %v1129_v5  ;;  %v280_v5 = vlaneseq }
 0x162   :  { %v238_v1 = vadd.f32 %v748_v16, %v219_v63 }
 0x163   :  { %v244_v0 = vpack.c.bf16 %v237_v61, %v236_v60  ;;  %v220_v59 = vmul.f32 %v1190_v6, %v201_v62  ;;  %v281_v3 = vshrl.u32 %v280_v5, 7  ;;  %v278_v6 = vld [vmem:[%s1341_s4] sm:$0x7] }
 0x165   :  { %476 = vmatmul.mubr.bf16.gmra.mxu0 %v242_v49  ;;  %888 = vmatprep.mubr.bf16.mxu1 %v244_v0  ;;  %v239_v2 = vadd.f32 %v748_v16, %v220_v59  ;;  %v282_v7 = vsub.s32 0, %v281_v3  ;;  %v286_v8 = vsub.s32 1, %v281_v3  ;;  %v290_v9 = vsub.s32 2, %v281_v3 }
 0x166   :  { %485 = vmatprep.mubr.bf16.mxu0 %v997_v27 }
 0x167   :  { %v245_v4 = vpack.c.bf16 %v239_v2, %v238_v1  ;;  %v1223_v10 = vrot.slane %v278_v6, %v282_v7  ;;  %v1225_v11 = vrot.slane %v278_v6, %v286_v8  ;;  %v1227_v13 = vrot.slane %v278_v6, %v290_v9 }
 0x169   :  { %889 = vmatmul.mubr.bf16.gmra.mxu1 %v245_v4 }
 0x16d   :  { %486 = vmatmul.mubr.bf16.gmra.mxu0 %v243_v48 }
 0x16e   :  { %495 = vmatprep.mubr.bf16.mxu0 %v997_v27 }
 0x175   :  { %496 = vmatmul.mubr.bf16.gmra.mxu0 %v244_v0 }
 0x176   :  { %505 = vmatprep.mubr.bf16.mxu0 %v997_v27 }
 0x17d   :  { %506 = vmatmul.mubr.bf16.gmra.mxu0 %v245_v4 }
 0x215   :  { %v457_v12 = vpop.f32.mrf.mxu0 }
 0x216   :  { %v458_v27 = vadd.f32 %v457_v12, %v1223_v10 }
 0x217   :  { %v459_v14 = vpop.f32.mrf.mxu0 }
 0x218   :  { %v460_v15 = vadd.f32 %v459_v14, %v1225_v11 }
 0x219   :  { %v461_v16 = vpop.f32.mrf.mxu0  ;;  %v882_v24 = vpop.f32.mrf.mxu1 }
 0x21a   :  { %v797_v17 = vpack.c.bf16 %v460_v15, %v458_v27  ;;  %v559_v18 = vadd.f32 %v882_v24, %v1227_v13  ;;  %v462_v21 = vadd.f32 %v461_v16, %v1223_v10 }
 0x21b   :  { %v463_v19 = vpop.f32.mrf.mxu0  ;;  %v550_v20 = vpop.f32.mrf.mxu1 }
 0x21c   :  { %717 = vst [vmem:[%s1342_s5] sm:$0xff] %v797_v17  ;;  %v802_v22 = vpack.c.bf16 %v559_v18, %v559_v18  ;;  %v464_v23 = vadd.f32 %v463_v19, %v1225_v11  ;;  %v551_v26 = vadd.f32 %v550_v20, %v1227_v13 }
 0x21d   :  { %v467_v31 = vpop.f32.mrf.mxu0  ;;  %v883_v28 = vpop.f32.mrf.mxu1 }
 0x21e   :  { %722 = vst [vmem:[%s1342_s5 + $0x20] sm:$0xf] %v802_v22  ;;  %v799_v29 = vpack.c.bf16 %v464_v23, %v462_v21  ;;  %v798_v25 = vpack.c.bf16 %v551_v26, %v551_v26  ;;  %v562_v30 = vadd.f32 %v883_v28, %v1227_v13  ;;  %v468_v35 = vadd.f32 %v467_v31, %v1223_v10 }
 0x21f   :  { %v469_v33 = vpop.f32.mrf.mxu0  ;;  %v553_v34 = vpop.f32.mrf.mxu1 }
 0x220   :  { %719 = vst [vmem:[%s1342_s5 + $0xc] sm:$0xff] %v799_v29  ;;  %718 = vst [vmem:[%s1342_s5 + $0x8] sm:$0xf] %v798_v25  ;;  %v804_v36 = vpack.c.bf16 %v562_v30, %v562_v30  ;;  %v470_v37 = vadd.f32 %v469_v33, %v1225_v11  ;;  %v554_v32 = vadd.f32 %v553_v34, %v1227_v13 }
 0x221   :  { %v471_v38 = vpop.f32.mrf.mxu0  ;;  %v886_v39 = vpop.f32.mrf.mxu1 }
 0x222   :  { %724 = vst [vmem:[%s1342_s5 + $0x2c] sm:$0xf] %v804_v36  ;;  %v801_v41 = vpack.c.bf16 %v470_v37, %v468_v35  ;;  %v800_v42 = vpack.c.bf16 %v554_v32, %v554_v32  ;;  %v575_v43 = vadd.f32 %v886_v39, %v1227_v13  ;;  %v472_v46 = vadd.f32 %v471_v38, %v1223_v10 }
 0x223   :  { %v473_v44 = vpop.f32.mrf.mxu0  ;;  %v566_v45 = vpop.f32.mrf.mxu1 }
 0x224   :  { %721 = vst [vmem:[%s1342_s5 + $0x18] sm:$0xff] %v801_v41  ;;  %720 = vst [vmem:[%s1342_s5 + $0x14] sm:$0xf] %v800_v42  ;;  %v810_v40 = vpack.c.bf16 %v575_v43, %v575_v43  ;;  %v474_v49 = vadd.f32 %v473_v44, %v1225_v11  ;;  %v567_v50 = vadd.f32 %v566_v45, %v1227_v13 }
 0x225   :  { %v477_v51 = vpop.f32.mrf.mxu0  ;;  %v887_v52 = vpop.f32.mrf.mxu1 }
 0x226   :  { %730 = vst [vmem:[%s1342_s5 + $0x50] sm:$0xf] %v810_v40  ;;  %v803_v47 = vpack.c.bf16 %v474_v49, %v472_v46  ;;  %v806_v53 = vpack.c.bf16 %v567_v50, %v567_v50  ;;  %v578_v54 = vadd.f32 %v887_v52, %v1227_v13  ;;  %v478_v48 = vadd.f32 %v477_v51, %v1223_v10 }
 0x227   :  { %v479_v55 = vpop.f32.mrf.mxu0  ;;  %v569_v56 = vpop.f32.mrf.mxu1 }
 0x228   :  { %723 = vst [vmem:[%s1342_s5 + $0x24] sm:$0xff] %v803_v47  ;;  %726 = vst [vmem:[%s1342_s5 + $0x38] sm:$0xf] %v806_v53  ;;  %v812_v58 = vpack.c.bf16 %v578_v54, %v578_v54  ;;  %v480_v57 = vadd.f32 %v479_v55, %v1225_v11  ;;  %v570_v60 = vadd.f32 %v569_v56, %v1227_v13 }
 0x229   :  { %v481_v61 = vpop.f32.mrf.mxu0  ;;  %v890_v62 = vpop.f32.mrf.mxu1 }
 0x22a   :  { %732 = vst [vmem:[%s1342_s5 + $0x5c] sm:$0xf] %v812_v58  ;;  %v805_v63 = vpack.c.bf16 %v480_v57, %v478_v48  ;;  %v808_v0 = vpack.c.bf16 %v570_v60, %v570_v60  ;;  %v591_v59 = vadd.f32 %v890_v62, %v1227_v13  ;;  %v482_v4 = vadd.f32 %v481_v61, %v1223_v10 }
 0x22b   :  { %v483_v1 = vpop.f32.mrf.mxu0  ;;  %v582_v2 = vpop.f32.mrf.mxu1 }
 0x22c   :  { %725 = vst [vmem:[%s1342_s5 + $0x30] sm:$0xff] %v805_v63  ;;  %728 = vst [vmem:[%s1342_s5 + $0x44] sm:$0xf] %v808_v0  ;;  %v818_v5 = vpack.c.bf16 %v591_v59, %v591_v59  ;;  %v484_v3 = vadd.f32 %v483_v1, %v1225_v11  ;;  %v583_v7 = vadd.f32 %v582_v2, %v1227_v13 }
 0x22d   :  { %v487_v8 = vpop.f32.mrf.mxu0  ;;  %v891_v6 = vpop.f32.mrf.mxu1 }
 0x22e   :  { %738 = vst [vmem:[%s1342_s5 + $0x80] sm:$0xf] %v818_v5  ;;  %v807_v9 = vpack.c.bf16 %v484_v3, %v482_v4  ;;  %v814_v12 = vpack.c.bf16 %v583_v7, %v583_v7  ;;  %v594_v14 = vadd.f32 %v891_v6, %v1227_v13  ;;  %v488_v16 = vadd.f32 %v487_v8, %v1223_v10 }
 0x22f   :  { %v489_v27 = vpop.f32.mrf.mxu0  ;;  %v585_v15 = vpop.f32.mrf.mxu1 }
 0x230   :  { %727 = vst [vmem:[%s1342_s5 + $0x3c] sm:$0xff] %v807_v9  ;;  %734 = vst [vmem:[%s1342_s5 + $0x68] sm:$0xf] %v814_v12  ;;  %v820_v24 = vpack.c.bf16 %v594_v14, %v594_v14  ;;  %v490_v17 = vadd.f32 %v489_v27, %v1225_v11  ;;  %v586_v18 = vadd.f32 %v585_v15, %v1227_v13 }
 0x231   :  { %v491_v19 = vpop.f32.mrf.mxu0 }
 0x232   :  { %740 = vst [vmem:[%s1342_s5 + $0x8c] sm:$0xf] %v820_v24  ;;  %v809_v20 = vpack.c.bf16 %v490_v17, %v488_v16  ;;  %v816_v21 = vpack.c.bf16 %v586_v18, %v586_v18  ;;  %v492_v23 = vadd.f32 %v491_v19, %v1223_v10 }
 0x233   :  { %v493_v22 = vpop.f32.mrf.mxu0 }
 0x234   :  { %729 = vst [vmem:[%s1342_s5 + $0x48] sm:$0xff] %v809_v20  ;;  %736 = vst [vmem:[%s1342_s5 + $0x74] sm:$0xf] %v816_v21  ;;  %v494_v13 = vadd.f32 %v493_v22, %v1225_v11 }
 0x235   :  { %v497_v26 = vpop.f32.mrf.mxu0 }
 0x236   :  { %v811_v31 = vpack.c.bf16 %v494_v13, %v492_v23  ;;  %v498_v29 = vadd.f32 %v497_v26, %v1223_v10 }
 0x237   :  { %v499_v28 = vpop.f32.mrf.mxu0 }
 0x238   :  { %731 = vst [vmem:[%s1342_s5 + $0x54] sm:$0xff] %v811_v31  ;;  %v500_v25 = vadd.f32 %v499_v28, %v1225_v11 }
 0x239   :  { %v501_v30 = vpop.f32.mrf.mxu0 }
 0x23a   :  { %v813_v33 = vpack.c.bf16 %v500_v25, %v498_v29  ;;  %v502_v35 = vadd.f32 %v501_v30, %v1223_v10 }
 0x23b   :  { %v503_v34 = vpop.f32.mrf.mxu0 }
 0x23c   :  { %733 = vst [vmem:[%s1342_s5 + $0x60] sm:$0xff] %v813_v33  ;;  %v504_v36 = vadd.f32 %v503_v34, %v1225_v11 }
 0x23d   :  { %v507_v37 = vpop.f32.mrf.mxu0 }
 0x23e   :  { %v815_v32 = vpack.c.bf16 %v504_v36, %v502_v35  ;;  %v508_v39 = vadd.f32 %v507_v37, %v1223_v10 }
 0x23f   :  { %v509_v38 = vpop.f32.mrf.mxu0 }
 0x240   :  { %735 = vst [vmem:[%s1342_s5 + $0x6c] sm:$0xff] %v815_v32  ;;  %v510_v41 = vadd.f32 %v509_v38, %v1225_v11 }
 0x241   :  { %v511_v42 = vpop.f32.mrf.mxu0 }
 0x242   :  { %v817_v43 = vpack.c.bf16 %v510_v41, %v508_v39  ;;  %v512_v45 = vadd.f32 %v511_v42, %v1223_v10 }
 0x243   :  { %v513_v44 = vpop.f32.mrf.mxu0 }
 0x244   :  { %737 = vst [vmem:[%s1342_s5 + $0x78] sm:$0xff] %v817_v43  ;;  %v514_v46 = vadd.f32 %v513_v44, %v1225_v11 }
 0x246   :  { %v819_v40 = vpack.c.bf16 %v514_v46, %v512_v45 }
 0x248   :  { %739 = vst [vmem:[%s1342_s5 + $0x84] sm:$0xff] %v819_v40 }
 0x249   :  { %745 = vsyncpa [#allocation3], 1 }
 0x24a   :  { %746 = vsyncpa [#allocation5], 1 }

// kernel: cct_forward.27
= control target key start
LH: loop header
LB: loop body
LE: loop exit
PB: predicated region body
PF: predicated region fallthrough
CT: control target
= control target key end

     0   :  { %v453_v0 = vmov 0.0   ;;  %vm454_vm0 = vmmov 0   ;;  %s557_s1 = inlined_call_operand.vmem [shape: bf16[128,128], index: 1, kind: input, shape index: {}]   ;;  %s558_s0 = inlined_call_operand.vmem [shape: bf16[80,128], index: 0, kind: input, shape index: {}]   ;;  %s559_s2 = inlined_call_operand.vmem [shape: f32[1,128], index: 2, kind: input, shape index: {}]   ;;  %s560_s3 = inlined_call_operand.vmem [shape: bf16[80,128], index: 3, kind: input, shape index: {}]   ;;  %s561_s4 = inlined_call_operand.vmem [shape: bf16[80,128], index: 4, kind: output, shape index: {}]  }
   0x1   :  { %386 = vmatprep.subr.bf16.mxu0 %v453_v0  ;;  %v440_v1 = vld [vmem:[%s557_s1 + $0x38] sm:$0xff]   ;;  %422 = vmatprep.subr.bf16.mxu1 %v453_v0  ;;  %v441_v2 = vld [vmem:[%s557_s1 + $0x30] sm:$0xff]   ;;  %v442_v3 = vld [vmem:[%s557_s1 + $0x28] sm:$0xff]  }
   0x2   :  { %402 = vmatprep.mubr.msk.bf16.mxu0 %vm454_vm0, %v453_v0  ;;  %414 = vmatprep.mubr.msk.bf16.mxu1 %vm454_vm0, %v453_v0  ;;  %v443_v4 = vld [vmem:[%s557_s1 + $0x20] sm:$0xff]   ;;  %v444_v5 = vld [vmem:[%s557_s1 + $0x18] sm:$0xff]   ;;  %v445_v6 = vld [vmem:[%s557_s1 + $0x10] sm:$0xff]  }
   0x3   :  { %387 = vmatpush3.bf16.msra.mxu0 %v440_v1  ;;  %430 = vmatpush3.bf16.msra.mxu1 %v440_v1  ;;  %v446_v7 = vld [vmem:[%s557_s1 + $0x8] sm:$0xff]   ;;  %v447_v8 = vld [vmem:[%s557_s1] sm:$0xff]   ;;  %v449_v10 = vld [vmem:[%s558_s0 + $0x18] sm:$0xff]  }
   0x4   :  { %388 = vmatprep.subr.bf16.mxu0 %v453_v0  ;;  %423 = vmatprep.subr.bf16.mxu1 %v453_v0  ;;  %v448_v9 = vld [vmem:[%s558_s0] sm:$0xff]   ;;  %v450_v11 = vld [vmem:[%s558_s0 + $0x8] sm:$0xff]   ;;  %v452_v13 = vld [vmem:[%s558_s0 + $0x10] sm:$0xff]  }
   0x5   :  { %v451_v12 = vld [vmem:[%s558_s0 + $0x20] sm:$0xff]   ;;  %v367_v14 = vld [vmem:[%s560_s3 + $0x18] sm:$0xff]   ;;  %v365_v39 = vld [vmem:[%s560_s3 + $0x8] sm:$0xff]  }
   0x6   :  { %v286_v15 = vld [vmem:[%s559_s2] ss:$0 sm:$0xff]  ;;  %v334_v20 = vunpack.c.l.bf16 %v367_v14  ;;  %v335_v26 = vunpack.c.h.bf16 %v367_v14  ;;  %v326_v48 = vunpack.c.l.bf16 %v365_v39  ;;  %v327_v49 = vunpack.c.h.bf16 %v365_v39  ;;  %v366_v62 = vld [vmem:[%s560_s3 + $0x10] sm:$0xff]  }
   0x7   :  { %389 = vmatpush3.bf16.msra.mxu0 %v441_v2  ;;  %431 = vmatpush3.bf16.msra.mxu1 %v441_v2  ;;  %v321_v17 = vld [vmem:[%s560_s3] sm:$0xff]  }
   0x8   :  { %390 = vmatprep.subr.bf16.mxu0 %v453_v0  ;;  %424 = vmatprep.subr.bf16.mxu1 %v453_v0  ;;  %v322_v24 = vunpack.c.l.bf16 %v321_v17  ;;  %v323_v25 = vunpack.c.h.bf16 %v321_v17  ;;  %v368_v34 = vld [vmem:[%s560_s3 + $0x20] sm:$0xff]  }
   0x9   :  { %v338_v44 = vunpack.c.l.bf16 %v368_v34  ;;  %v339_v50 = vunpack.c.h.bf16 %v368_v34 }
   0xb   :  { %391 = vmatpush3.bf16.msra.mxu0 %v442_v3  ;;  %432 = vmatpush3.bf16.msra.mxu1 %v442_v3  ;;  %v330_v3 = vunpack.c.l.bf16 %v366_v62 }
   0xc   :  { %392 = vmatprep.subr.bf16.mxu0 %v453_v0  ;;  %425 = vmatprep.subr.bf16.mxu1 %v453_v0 }
   0xf   :  { %393 = vmatpush3.bf16.msra.mxu0 %v443_v4  ;;  %433 = vmatpush3.bf16.msra.mxu1 %v443_v4  ;;  %v331_v4 = vunpack.c.h.bf16 %v366_v62 }
  0x10   :  { %394 = vmatprep.subr.bf16.mxu0 %v453_v0  ;;  %426 = vmatprep.subr.bf16.mxu1 %v453_v0 }
  0x13   :  { %395 = vmatpush3.bf16.msra.mxu0 %v444_v5  ;;  %434 = vmatpush3.bf16.msra.mxu1 %v444_v5 }
  0x14   :  { %396 = vmatprep.subr.bf16.mxu0 %v453_v0  ;;  %427 = vmatprep.subr.bf16.mxu1 %v453_v0 }
  0x17   :  { %397 = vmatpush3.bf16.msra.mxu0 %v445_v6  ;;  %435 = vmatpush3.bf16.msra.mxu1 %v445_v6 }
  0x18   :  { %398 = vmatprep.subr.bf16.mxu0 %v453_v0  ;;  %428 = vmatprep.subr.bf16.mxu1 %v453_v0 }
  0x1b   :  { %399 = vmatpush3.bf16.msra.mxu0 %v446_v7  ;;  %436 = vmatpush3.bf16.msra.mxu1 %v446_v7 }
  0x1c   :  { %400 = vmatprep.subr.bf16.mxu0 %v453_v0  ;;  %429 = vmatprep.subr.bf16.mxu1 %v453_v0 }
  0x1f   :  { %401 = vmatpush3.bf16.msra.mxu0 %v447_v8  ;;  %437 = vmatpush3.bf16.msra.mxu1 %v447_v8 }
  0x22   :  { %403 = vmatmul.mubr.bf16.vlgmr.msra.gmra.mxu0 %v448_v9  ;;  %415 = vmatmul.mubr.bf16.vlgmr.msra.gmra.mxu1 %v449_v10 }
  0x23   :  { %406 = vmatprep.mubr.msk.bf16.mxu0 %vm454_vm0, %v453_v0  ;;  %418 = vmatprep.mubr.msk.bf16.mxu1 %vm454_vm0, %v453_v0 }
  0x2a   :  { %407 = vmatmul.mubr.bf16.gmra.mxu0 %v450_v11  ;;  %419 = vmatmul.mubr.bf16.gmra.mxu1 %v451_v12 }
  0x2b   :  { %410 = vmatprep.mubr.msk.bf16.mxu0 %vm454_vm0, %v453_v0 }
  0x32   :  { %411 = vmatmul.mubr.bf16.gmra.mxu0 %v452_v13 }
  0xe2   :  { %v163_v16 = vpop.f32.mrf.mxu0  ;;  %v187_v18 = vpop.f32.mrf.mxu1 }
  0xe3   :  { %v188_v19 = vadd.f32 %v286_v15, %v187_v18  ;;  %v164_v23 = vadd.f32 %v286_v15, %v163_v16 }
  0xe4   :  { %v404_v21 = vpop.f32.mrf.mxu0  ;;  %v416_v22 = vpop.f32.mrf.mxu1 }
  0xe5   :  { %v228_v29 = vadd.f32 %v334_v20, %v188_v19  ;;  %v222_v35 = vadd.f32 %v322_v24, %v164_v23 }
  0xe6   :  { %v166_v27 = vpop.f32.mrf.mxu0  ;;  %v190_v28 = vpop.f32.mrf.mxu1 }
  0xe7   :  { %v167_v30 = vadd.f32 %v286_v15, %v166_v27  ;;  %v191_v31 = vadd.f32 %v286_v15, %v190_v28 }
  0xe8   :  { %v405_v32 = vpop.f32.mrf.mxu0  ;;  %v417_v33 = vpop.f32.mrf.mxu1 }
  0xe9   :  { %v223_v36 = vadd.f32 %v323_v25, %v167_v30  ;;  %v229_v37 = vadd.f32 %v335_v26, %v191_v31 }
  0xea   :  { %v171_v38 = vpop.f32.mrf.mxu0  ;;  %v195_v40 = vpop.f32.mrf.mxu1 }
  0xeb   :  { %v343_v41 = vpack.c.bf16 %v223_v36, %v222_v35  ;;  %v358_v42 = vpack.c.bf16 %v229_v37, %v228_v29  ;;  %v196_v43 = vadd.f32 %v286_v15, %v195_v40  ;;  %v172_v47 = vadd.f32 %v286_v15, %v171_v38 }
  0xec   :  { %v408_v45 = vpop.f32.mrf.mxu0  ;;  %v420_v46 = vpop.f32.mrf.mxu1 }
  0xed   :  { %344 = vst [vmem:[%s561_s4] sm:$0xff] %v343_v41   ;;  %371 = vst [vmem:[%s561_s4 + $0x18] sm:$0xff] %v358_v42   ;;  %v230_v53 = vadd.f32 %v338_v44, %v196_v43  ;;  %v224_v58 = vadd.f32 %v326_v48, %v172_v47 }
  0xee   :  { %v174_v51 = vpop.f32.mrf.mxu0  ;;  %v198_v52 = vpop.f32.mrf.mxu1 }
  0xef   :  { %v175_v54 = vadd.f32 %v286_v15, %v174_v51  ;;  %v199_v55 = vadd.f32 %v286_v15, %v198_v52 }
  0xf0   :  { %v409_v56 = vpop.f32.mrf.mxu0  ;;  %v421_v57 = vpop.f32.mrf.mxu1 }
  0xf1   :  { %v225_v59 = vadd.f32 %v327_v49, %v175_v54  ;;  %v231_v60 = vadd.f32 %v339_v50, %v199_v55 }
  0xf2   :  { %v179_v61 = vpop.f32.mrf.mxu0 }
  0xf3   :  { %v348_v63 = vpack.c.bf16 %v225_v59, %v224_v58  ;;  %v363_v0 = vpack.c.bf16 %v231_v60, %v230_v53  ;;  %v180_v2 = vadd.f32 %v286_v15, %v179_v61 }
  0xf4   :  { %v412_v1 = vpop.f32.mrf.mxu0 }
  0xf5   :  { %369 = vst [vmem:[%s561_s4 + $0x8] sm:$0xff] %v348_v63   ;;  %372 = vst [vmem:[%s561_s4 + $0x20] sm:$0xff] %v363_v0   ;;  %v226_v8 = vadd.f32 %v330_v3, %v180_v2 }
  0xf6   :  { %v182_v5 = vpop.f32.mrf.mxu0 }
  0xf7   :  { %v183_v6 = vadd.f32 %v286_v15, %v182_v5 }
  0xf8   :  { %v413_v7 = vpop.f32.mrf.mxu0 }
  0xf9   :  { %v227_v9 = vadd.f32 %v331_v4, %v183_v6 }
  0xfb   :  { %v353_v10 = vpack.c.bf16 %v227_v9, %v226_v8 }
  0xfd   :  { %370 = vst [vmem:[%s561_s4 + $0x10] sm:$0xff] %v353_v10  }

// kernel: cct_forward.30
= control target key start
LH: loop header
LB: loop body
LE: loop exit
PB: predicated region body
PF: predicated region fallthrough
CT: control target
= control target key end

     0   :  { %v462_v4 = vmov 0.0   ;;  %v463_v28 = vmov 0   ;;  %vm464_vm0 = vmmov 0   ;;  %v101_v54 = vlaneseq  ;;  %s610_s0 = inlined_call_operand.vmem [shape: bf16[16,128], index: 0, kind: input, shape index: {}]   ;;  %s611_s3 = inlined_call_operand.vmem [shape: bf16[128,384], index: 3, kind: input, shape index: {}]   ;;  %s612_s1 = inlined_call_operand.vmem [shape: f32[1,128], index: 1, kind: input, shape index: {}]   ;;  %s613_s2 = inlined_call_operand.vmem [shape: f32[1,128], index: 2, kind: input, shape index: {}]   ;;  %s614_s4 = inlined_call_operand.vmem [shape: f32[1,384], index: 4, kind: input, shape index: {}]   ;;  %s615_s5 = inlined_call_operand.vmem [shape: bf16[16,384], index: 5, kind: output, shape index: {}]  }
   0x1   :  { %v391_v0 = vld [vmem:[%s610_s0] sm:$0xff]   ;;  %v426_v3 = vld [vmem:[%s611_s3 + $0xac] ss:$12 sps:$4 sm:$0xff]   ;;  %403 = vmatprep.subr.bf16.mxu1 %v462_v4  ;;  %v428_v5 = vld [vmem:[%s611_s3 + $0xa8] ss:$12 sps:$4 sm:$0xff]   ;;  %276 = vmatprep.mubr.bf16.mxu0 %v463_v28 }
   0x2   :  { %v392_v1 = vunpack.c.l.bf16 %v391_v0  ;;  %v393_v2 = vunpack.c.h.bf16 %v391_v0  ;;  %244 = vmatprep.subr.bf16.mxu0 %v426_v3  ;;  %v429_v6 = vld [vmem:[%s611_s3 + $0xb0] ss:$12 sps:$4 sm:$0xff]   ;;  %v430_v15 = vld [vmem:[%s611_s3 + $0x94] ss:$12 sps:$4 sm:$0xff]   ;;  %v433_v17 = vld [vmem:[%s611_s3 + $0x98] ss:$12 sps:$4 sm:$0xff]   ;;  %419 = vmatprep.mubr.msk.bf16.mxu1 %vm464_vm0, %v462_v4 }
   0x3   :  { %245 = vmatpush1.bf16.msra.mxu0 %v428_v5  ;;  %404 = vmatpush3.bf16.msra.mxu1 %v429_v6  ;;  %v432_v16 = vld [vmem:[%s611_s3 + $0x90] ss:$12 sps:$4 sm:$0xff]   ;;  %v436_v19 = vld [vmem:[%s611_s3 + $0x78] ss:$12 sps:$4 sm:$0xff]   ;;  %v437_v20 = vld [vmem:[%s611_s3 + $0x80] ss:$12 sps:$4 sm:$0xff]  }
   0x4   :  { %25 = vadd.xlane.f32.xlu0 %v392_v1  ;;  %405 = vmatprep.subr.bf16.mxu1 %v462_v4  ;;  %v434_v18 = vld [vmem:[%s611_s3 + $0x7c] ss:$12 sps:$4 sm:$0xff]   ;;  %v438_v21 = vld [vmem:[%s611_s3 + $0x64] ss:$12 sps:$4 sm:$0xff]   ;;  %v440_v22 = vld [vmem:[%s611_s3 + $0x60] ss:$12 sps:$4 sm:$0xff]  }
   0x5   :  { %246 = vmatprep.subr.bf16.mxu0 %v430_v15  ;;  %v441_v23 = vld [vmem:[%s611_s3 + $0x68] ss:$12 sps:$4 sm:$0xff]   ;;  %v442_v24 = vld [vmem:[%s611_s3 + $0x4c] ss:$12 sps:$4 sm:$0xff]   ;;  %v445_v26 = vld [vmem:[%s611_s3 + $0x50] ss:$12 sps:$4 sm:$0xff]  }
   0x6   :  { %v444_v25 = vld [vmem:[%s611_s3 + $0x48] ss:$12 sps:$4 sm:$0xff]   ;;  %v448_v29 = vld [vmem:[%s611_s3 + $0x30] ss:$12 sps:$4 sm:$0xff]   ;;  %v449_v30 = vld [vmem:[%s611_s3 + $0x38] ss:$12 sps:$4 sm:$0xff]  }
   0x7   :  { %247 = vmatpush1.bf16.msra.mxu0 %v432_v16  ;;  %406 = vmatpush3.bf16.msra.mxu1 %v433_v17  ;;  %v446_v27 = vld [vmem:[%s611_s3 + $0x34] ss:$12 sps:$4 sm:$0xff]   ;;  %v450_v31 = vld [vmem:[%s611_s3 + $0x1c] ss:$12 sps:$4 sm:$0xff]   ;;  %v452_v32 = vld [vmem:[%s611_s3 + $0x18] ss:$12 sps:$4 sm:$0xff]  }
   0x8   :  { %27 = vadd.xlane.f32.xlu0 %v393_v2  ;;  %407 = vmatprep.subr.bf16.mxu1 %v462_v4  ;;  %v453_v33 = vld [vmem:[%s611_s3 + $0x20] ss:$12 sps:$4 sm:$0xff]   ;;  %v454_v34 = vld [vmem:[%s611_s3 + $0x4] ss:$12 sps:$4 sm:$0xff]   ;;  %v457_v36 = vld [vmem:[%s611_s3 + $0x8] ss:$12 sps:$4 sm:$0xff]  }
   0x9   :  { %248 = vmatprep.subr.bf16.mxu0 %v434_v18  ;;  %v456_v35 = vld [vmem:[%s611_s3] ss:$12 sps:$4 sm:$0xff]   ;;  %v102_v55 = vshrl.u32 %v101_v54, 7 }
   0xa   :  { %v356_v45 = vld [vmem:[%s612_s1] ss:$0 sm:$0xff] }
   0xb   :  { %249 = vmatpush1.bf16.msra.mxu0 %v436_v19  ;;  %408 = vmatpush3.bf16.msra.mxu1 %v437_v20  ;;  %v357_v49 = vld [vmem:[%s613_s2] ss:$0 sm:$0xff]  ;;  %v111_v56 = vsub.s32 2, %v102_v55  ;;  %v103_v58 = vsub.s32 0, %v102_v55  ;;  %v107_v59 = vsub.s32 1, %v102_v55 }
   0xc   :  { %409 = vmatprep.subr.bf16.mxu1 %v462_v4  ;;  %250 = vmatprep.subr.bf16.mxu0 %v438_v21  ;;  %v99_v57 = vld [vmem:[%s614_s4] sm:$0x7] }
   0xd   :  { %v112_v60 = vrot.slane %v99_v57, %v111_v56  ;;  %v104_v61 = vrot.slane %v99_v57, %v103_v58  ;;  %v108_v62 = vrot.slane %v99_v57, %v107_v59 }
   0xf   :  { %251 = vmatpush1.bf16.msra.mxu0 %v440_v22  ;;  %410 = vmatpush3.bf16.msra.mxu1 %v441_v23 }
  0x10   :  { %252 = vmatprep.subr.bf16.mxu0 %v442_v24  ;;  %411 = vmatprep.subr.bf16.mxu1 %v462_v4 }
  0x13   :  { %253 = vmatpush1.bf16.msra.mxu0 %v444_v25  ;;  %412 = vmatpush3.bf16.msra.mxu1 %v445_v26 }
  0x14   :  { %254 = vmatprep.subr.bf16.mxu0 %v446_v27  ;;  %413 = vmatprep.subr.bf16.mxu1 %v462_v4 }
  0x17   :  { %255 = vmatpush1.bf16.msra.mxu0 %v448_v29  ;;  %414 = vmatpush3.bf16.msra.mxu1 %v449_v30 }
  0x18   :  { %256 = vmatprep.subr.bf16.mxu0 %v450_v31  ;;  %415 = vmatprep.subr.bf16.mxu1 %v462_v4 }
  0x1b   :  { %257 = vmatpush1.bf16.msra.mxu0 %v452_v32  ;;  %416 = vmatpush3.bf16.msra.mxu1 %v453_v33 }
  0x1c   :  { %258 = vmatprep.subr.bf16.mxu0 %v454_v34  ;;  %417 = vmatprep.subr.bf16.mxu1 %v462_v4 }
  0x1f   :  { %259 = vmatpush1.bf16.msra.mxu0 %v456_v35  ;;  %418 = vmatpush3.bf16.msra.mxu1 %v457_v36 }
  0x8d   :  { %v26_v7 = vpop.xlane.xlu0 %25 }
  0x8e   :  { %v30_v8 = vmul.f32 0.0078125, %v26_v7 }
  0x90   :  { %v509_v9 = vsub.f32 %v392_v1, %v30_v8 }
  0x91   :  { %v28_v10 = vpop.xlane.xlu0 %27 }
  0x92   :  { %v31_v11 = vmul.f32 0.0078125, %v28_v10  ;;  %v34_v12 = vmul.f32 %v509_v9, %v509_v9 }
  0x94   :  { %v513_v13 = vsub.f32 %v393_v2, %v31_v11  ;;  %36 = vadd.xlane.f32.xlu1 %v34_v12 }
  0x96   :  { %v35_v14 = vmul.f32 %v513_v13, %v513_v13 }
  0x98   :  { %38 = vadd.xlane.f32.xlu1 %v35_v14 }
 0x11d   :  { %v37_v37 = vpop.xlane.xlu1 %36 }
 0x11e   :  { %v40_v38 = vmul.f32 0.0078125, %v37_v37 }
 0x120   :  { %v42_v39 = vadd.f32 1e-05, %v40_v38 }
 0x121   :  { %v39_v40 = vpop.xlane.xlu1 %38 }
 0x122   :  { %458 = vrsqrt.f32 %v42_v39  ;;  %v41_v41 = vmul.f32 0.0078125, %v39_v40 }
 0x124   :  { %v43_v42 = vadd.f32 1e-05, %v41_v41 }
 0x126   :  { %460 = vrsqrt.f32 %v43_v42 }
 0x12f   :  { %v459_v43 = vpop.eup %458 }
 0x130   :  { %v46_v44 = vmul.f32 %v459_v43, %v509_v9 }
 0x132   :  { %v55_v48 = vmul.f32 %v356_v45, %v46_v44 }
 0x133   :  { %v461_v46 = vpop.eup %460 }
 0x134   :  { %v47_v47 = vmul.f32 %v461_v46, %v513_v13  ;;  %v64_v51 = vadd.f32 %v357_v49, %v55_v48 }
 0x136   :  { %v56_v50 = vmul.f32 %v356_v45, %v47_v47 }
 0x138   :  { %v65_v52 = vadd.f32 %v357_v49, %v56_v50 }
 0x13a   :  { %v66_v53 = vpack.c.bf16 %v65_v52, %v64_v51 }
 0x13c   :  { %277 = vmatmul.mubr.bf16.vlgmr.msra.gmra.mxu0 %v66_v53  ;;  %420 = vmatmul.mubr.bf16.vlgmr.msra.gmra.mxu1 %v66_v53 }
 0x1fc   :  { %v278_v63 = vpop.f32.mrf.mxu0  ;;  %v321_v0 = vpop.f32.mrf.mxu1 }
 0x1fd   :  { %v322_v1 = vadd.f32 %v321_v0, %v112_v60  ;;  %v279_v4 = vadd.f32 %v278_v63, %v104_v61 }
 0x1fe   :  { %v280_v2 = vpop.f32.mrf.mxu0  ;;  %v421_v3 = vpop.f32.mrf.mxu1 }
 0x1ff   :  { %v387_v5 = vpack.c.bf16 %v322_v1, %v322_v1  ;;  %v281_v6 = vadd.f32 %v280_v2, %v108_v62 }
 0x200   :  { %v282_v7 = vpop.f32.mrf.mxu0  ;;  %v324_v8 = vpop.f32.mrf.mxu1 }
 0x201   :  { %349 = vst [vmem:[%s615_s5 + $0x8] sm:$0xf] %v387_v5  ;;  %v386_v9 = vpack.c.bf16 %v281_v6, %v279_v4  ;;  %v325_v10 = vadd.f32 %v324_v8, %v112_v60  ;;  %v283_v13 = vadd.f32 %v282_v7, %v104_v61 }
 0x202   :  { %v284_v11 = vpop.f32.mrf.mxu0  ;;  %v422_v12 = vpop.f32.mrf.mxu1 }
 0x203   :  { %348 = vst [vmem:[%s615_s5] sm:$0xff] %v386_v9  ;;  %v389_v14 = vpack.c.bf16 %v325_v10, %v325_v10  ;;  %v285_v15 = vadd.f32 %v284_v11, %v108_v62 }
 0x205   :  { %351 = vst [vmem:[%s615_s5 + $0x14] sm:$0xf] %v389_v14  ;;  %v388_v16 = vpack.c.bf16 %v285_v15, %v283_v13 }
 0x207   :  { %350 = vst [vmem:[%s615_s5 + $0xc] sm:$0xff] %v388_v16 }

// kernel: cct_forward.37
= control target key start
LH: loop header
LB: loop body
LE: loop exit
PB: predicated region body
PF: predicated region fallthrough
CT: control target
= control target key end

     0   :  { %s336_s0 = inlined_call_operand.vmem [shape: bf16[16,128], index: 0, kind: input, shape index: {}]   ;;  %s337_s1 = inlined_call_operand.vmem [shape: f32[1,128], index: 1, kind: input, shape index: {}]   ;;  %s338_s2 = inlined_call_operand.vmem [shape: f32[1,128], index: 2, kind: input, shape index: {}]   ;;  %s339_s3 = inlined_call_operand.vmem [shape: bf16[128,128], index: 3, kind: input, shape index: {}]   ;;  %s340_s4 = inlined_call_operand.hbm [shape: f32[16,128], index: 4, kind: output, shape index: {}]  }
   0x1   :  { %v199_v0 = vld [vmem:[%s336_s0] sm:$0xff]  }
   0x2   :  { %v200_v1 = vunpack.c.l.bf16 %v199_v0  ;;  %v201_v2 = vunpack.c.h.bf16 %v199_v0 }
   0x4   :  { %23 = vadd.xlane.f32.xlu0 %v200_v1 }
   0x5   :  { %9 = vsyncpa [#allocation3], 0  ;;  %v236_v3 = vld [vmem:[%s339_s3 + $0x38] sm:$0xff]   ;;  %v270_v4 = vmov 0.0   ;;  %v237_v13 = vld [vmem:[%s339_s3 + $0x30] sm:$0xff]   ;;  %vm271_vm0 = vmmov 0  }
   0x6   :  { %211 = vmatprep.subr.bf16.mxu0 %v270_v4  ;;  %v238_v14 = vld [vmem:[%s339_s3 + $0x28] sm:$0xff]   ;;  %v239_v15 = vld [vmem:[%s339_s3 + $0x20] sm:$0xff]   ;;  %227 = vmatprep.mubr.msk.bf16.mxu0 %vm271_vm0, %v270_v4  ;;  %v240_v16 = vld [vmem:[%s339_s3 + $0x18] sm:$0xff]   ;;  %s272_s9 = smov [#allocation2]  }
   0x7   :  { %212 = vmatpush3.bf16.msra.mxu0 %v236_v3  ;;  %v241_v17 = vld [vmem:[%s339_s3 + $0x10] sm:$0xff]   ;;  %v242_v18 = vld [vmem:[%s339_s3 + $0x8] sm:$0xff]   ;;  %v243_v19 = vld [vmem:[%s339_s3] sm:$0xff]   ;;  %s177_s10 = sshll.u32 %s272_s9, 4  ;;  %s178_s10 = int_to_ptr.vmem [resolvable:$true] %s177_s10 }
   0x8   :  { %25 = vadd.xlane.f32.xlu0 %v201_v2  ;;  %213 = vmatprep.subr.bf16.mxu0 %v270_v4  ;;  %v188_v28 = vld [vmem:[%s337_s1] ss:$0 sm:$0xff]  ;;  %s248_s1 = scalar_lea.vmem %s178_s10, 256  ;;  %p253_p1 = scmp.lt.s32.totalorder %s178_s10, %s178_s10 }
   0x9   :  { %v189_v32 = vld [vmem:[%s338_s2] ss:$0 sm:$0xff]  ;;  %p249_p0 = scmp.ne.s32.totalorder %s178_s10, %s248_s1  ;;  %p254_p2 = scmp.lt.s32.totalorder %s248_s1, %s248_s1 }
   0xb   :  { %214 = vmatpush3.bf16.msra.mxu0 %v237_v13  ;;  %p255_p3 = por %p254_p2, %p253_p1 }
   0xc   :  { %215 = vmatprep.subr.bf16.mxu0 %v270_v4 }
   0xd   :  { %p256_p4 = pnand %p255_p3, %p249_p0 }
   0xf   :  { %216 = vmatpush3.bf16.msra.mxu0 %v238_v14 }
  0x10   :  { %217 = vmatprep.subr.bf16.mxu0 %v270_v4 }
  0x13   :  { %218 = vmatpush3.bf16.msra.mxu0 %v239_v15 }
  0x14   :  { %219 = vmatprep.subr.bf16.mxu0 %v270_v4 }
  0x17   :  { %220 = vmatpush3.bf16.msra.mxu0 %v240_v16 }
  0x18   :  { %221 = vmatprep.subr.bf16.mxu0 %v270_v4 }
  0x1b   :  { %222 = vmatpush3.bf16.msra.mxu0 %v241_v17 }
  0x1c   :  { %223 = vmatprep.subr.bf16.mxu0 %v270_v4 }
  0x1f   :  { %224 = vmatpush3.bf16.msra.mxu0 %v242_v18 }
  0x20   :  { %225 = vmatprep.subr.bf16.mxu0 %v270_v4 }
  0x23   :  { %226 = vmatpush3.bf16.msra.mxu0 %v243_v19 }
  0x8d   :  { %v24_v5 = vpop.xlane.xlu0 %23 }
  0x8e   :  { %v28_v6 = vmul.f32 0.0078125, %v24_v5 }
  0x90   :  { %v30_v7 = vsub.f32 %v200_v1, %v28_v6 }
  0x91   :  { %v26_v8 = vpop.xlane.xlu0 %25 }
  0x92   :  { %v29_v9 = vmul.f32 0.0078125, %v26_v8  ;;  %v32_v10 = vmul.f32 %v30_v7, %v30_v7 }
  0x94   :  { %v31_v11 = vsub.f32 %v201_v2, %v29_v9  ;;  %34 = vadd.xlane.f32.xlu1 %v32_v10 }
  0x96   :  { %v33_v12 = vmul.f32 %v31_v11, %v31_v11 }
  0x98   :  { %36 = vadd.xlane.f32.xlu1 %v33_v12 }
 0x11d   :  { %v35_v20 = vpop.xlane.xlu1 %34 }
 0x11e   :  { %v38_v21 = vmul.f32 0.0078125, %v35_v20 }
 0x120   :  { %v40_v22 = vadd.f32 1e-05, %v38_v21 }
 0x121   :  { %v37_v23 = vpop.xlane.xlu1 %36 }
 0x122   :  { %244 = vrsqrt.f32 %v40_v22  ;;  %v39_v24 = vmul.f32 0.0078125, %v37_v23 }
 0x124   :  { %v41_v25 = vadd.f32 1e-05, %v39_v24 }
 0x126   :  { %246 = vrsqrt.f32 %v41_v25 }
 0x12f   :  { %v245_v26 = vpop.eup %244 }
 0x130   :  { %v44_v27 = vmul.f32 %v245_v26, %v30_v7 }
 0x132   :  { %v53_v31 = vmul.f32 %v188_v28, %v44_v27 }
 0x133   :  { %v247_v29 = vpop.eup %246 }
 0x134   :  { %v45_v30 = vmul.f32 %v247_v29, %v31_v11  ;;  %v62_v34 = vadd.f32 %v189_v32, %v53_v31 }
 0x136   :  { %v54_v33 = vmul.f32 %v188_v28, %v45_v30 }
 0x138   :  { %v63_v35 = vadd.f32 %v189_v32, %v54_v33 }
 0x13a   :  { %v64_v36 = vpack.c.bf16 %v63_v35, %v62_v34 }
 0x13c   :  { %228 = vmatmul.mubr.bf16.vlgmr.msra.gmra.mxu0 %v64_v36 }
 0x1fc   :  { %v163_v37 = vpop.f32.mrf.mxu0 }
 0x1fd   :  { %170 = vst [vmem:[#allocation2] sm:$0xff] %v163_v37 }
 0x1fe   :  { %v229_v38 = vpop.f32.mrf.mxu0 }
 0x200   :  { %v166_v39 = vpop.f32.mrf.mxu0 }
 0x201   :  { %171 = vst [vmem:[#allocation2 + $0x8] sm:$0xff] %v166_v39 }
 0x202   :  { %v230_v40 = vpop.f32.mrf.mxu0 }
 0x203   :  { %259 = shalt.err (!%p256_p4)
}
 0x204   :  { %s273_s2 = smov 128   ;;  %s274_s11 = smov 8  }
 0x205   :  { %183 = dma.vmem_to_hbm [thread:$0]  %s178_s10, 256, %s340_s4, [#allocation3], %s273_s2, %s273_s2, %s274_s11  }
 0x206   :  { %268 = dma.done.wait [#allocation3], 256  }
 0x207   :  { %269 = vsyncadd [#allocation3], 4294967040 }
 0x208   :  { %187 = vsyncpa [#allocation3], 1 }

// kernel: cct_forward.33
= control target key start
LH: loop header
LB: loop body
LE: loop exit
PB: predicated region body
PF: predicated region fallthrough
CT: control target
= control target key end

     0   :  { %s1263_s0 = inlined_call_operand.vmem [shape: bf16[96,128], index: 0, kind: input, shape index: {}]   ;;  %s1264_s3 = inlined_call_operand.vmem [shape: bf16[128,384], index: 3, kind: input, shape index: {}]   ;;  %s1265_s1 = inlined_call_operand.vmem [shape: f32[1,128], index: 1, kind: input, shape index: {}]   ;;  %s1266_s2 = inlined_call_operand.vmem [shape: f32[1,128], index: 2, kind: input, shape index: {}]   ;;  %s1267_s4 = inlined_call_operand.vmem [shape: f32[1,384], index: 4, kind: input, shape index: {}]   ;;  %s1268_s5 = inlined_call_operand.vmem [shape: bf16[96,384], index: 5, kind: output, shape index: {}]  }
   0x1   :  { %v796_v0 = vld [vmem:[%s1263_s0] sm:$0xff]   ;;  %v819_v1 = vld [vmem:[%s1263_s0 + $0x8] sm:$0xff]   ;;  %v820_v6 = vld [vmem:[%s1263_s0 + $0x10] sm:$0xff]  }
   0x2   :  { %v797_v2 = vunpack.c.l.bf16 %v796_v0  ;;  %v801_v3 = vunpack.c.l.bf16 %v819_v1  ;;  %v798_v4 = vunpack.c.h.bf16 %v796_v0  ;;  %v802_v5 = vunpack.c.h.bf16 %v819_v1  ;;  %v821_v9 = vld [vmem:[%s1263_s0 + $0x18] sm:$0xff]   ;;  %v969_v12 = vld [vmem:[%s1263_s0 + $0x20] sm:$0xff]   ;;  %v976_v15 = vld [vmem:[%s1263_s0 + $0x28] sm:$0xff]  }
   0x3   :  { %v805_v7 = vunpack.c.l.bf16 %v820_v6  ;;  %v806_v8 = vunpack.c.h.bf16 %v820_v6  ;;  %v809_v10 = vunpack.c.l.bf16 %v821_v9  ;;  %v810_v11 = vunpack.c.h.bf16 %v821_v9  ;;  %v867_v18 = vld [vmem:[%s1264_s3 + $0xac] ss:$12 sps:$4 sm:$0xff]   ;;  %v869_v19 = vld [vmem:[%s1264_s3 + $0xa8] ss:$12 sps:$4 sm:$0xff]   ;;  %v872_v56 = vld [vmem:[%s1264_s3 + $0xb0] ss:$12 sps:$4 sm:$0xff]  }
   0x4   :  { %45 = vadd.xlane.f32.xlu0 %v797_v2  ;;  %49 = vadd.xlane.f32.xlu1 %v801_v3  ;;  %v813_v13 = vunpack.c.l.bf16 %v969_v12  ;;  %v814_v14 = vunpack.c.h.bf16 %v969_v12  ;;  %v817_v16 = vunpack.c.l.bf16 %v976_v15  ;;  %v818_v17 = vunpack.c.h.bf16 %v976_v15  ;;  %v870_v55 = vld [vmem:[%s1264_s3 + $0x94] ss:$12 sps:$4 sm:$0xff]   ;;  %v873_v57 = vld [vmem:[%s1264_s3 + $0x90] ss:$12 sps:$4 sm:$0xff]  }
   0x5   :  { %399 = vmatprep.subr.bf16.mxu0 %v867_v18  ;;  %838 = vmatprep.subr.bf16.mxu1 %v872_v56  ;;  %v878_v9 = vld [vmem:[%s1264_s3 + $0x64] ss:$12 sps:$4 sm:$0xff]   ;;  %v881_v12 = vld [vmem:[%s1264_s3 + $0x60] ss:$12 sps:$4 sm:$0xff]   ;;  %v885_v15 = vld [vmem:[%s1264_s3 + $0x48] ss:$12 sps:$4 sm:$0xff]  }
   0x6   :  { %400 = vmatpush1.bf16.msra.mxu0 %v869_v19  ;;  %839 = vmatpush3.bf16.msra.mxu1 %v872_v56  ;;  %v889_v18 = vld [vmem:[%s1264_s3 + $0x30] ss:$12 sps:$4 sm:$0xff]  }
   0x7   :  { %401 = vmatprep.subr.bf16.mxu0 %v870_v55  ;;  %v890_v19 = vld [vmem:[%s1264_s3 + $0x1c] ss:$12 sps:$4 sm:$0xff]  }
   0x8   :  { %47 = vadd.xlane.f32.xlu0 %v798_v4  ;;  %51 = vadd.xlane.f32.xlu1 %v802_v5 }
   0xa   :  { %402 = vmatpush1.bf16.msra.mxu0 %v873_v57 }
   0xc   :  { %53 = vadd.xlane.f32.xlu0 %v805_v7  ;;  %55 = vadd.xlane.f32.xlu1 %v806_v8 }
  0x10   :  { %57 = vadd.xlane.f32.xlu0 %v809_v10  ;;  %59 = vadd.xlane.f32.xlu1 %v810_v11 }
  0x14   :  { %61 = vadd.xlane.f32.xlu0 %v813_v13  ;;  %63 = vadd.xlane.f32.xlu1 %v814_v14 }
  0x18   :  { %65 = vadd.xlane.f32.xlu0 %v817_v16  ;;  %67 = vadd.xlane.f32.xlu1 %v818_v17 }
  0x8d   :  { %v46_v20 = vpop.xlane.xlu0 %45  ;;  %v50_v21 = vpop.xlane.xlu1 %49 }
  0x8e   :  { %v70_v22 = vmul.f32 0.0078125, %v46_v20  ;;  %v72_v23 = vmul.f32 0.0078125, %v50_v21  ;;  %v892_v20 = vld [vmem:[%s1264_s3 + $0x38] ss:$12 sps:$4 sm:$0xff]  }
  0x8f   :  { %v893_v21 = vld [vmem:[%s1264_s3 + $0x18] ss:$12 sps:$4 sm:$0xff]  }
  0x90   :  { %v990_v24 = vsub.f32 %v797_v2, %v70_v22  ;;  %v992_v25 = vsub.f32 %v801_v3, %v72_v23  ;;  %v874_v2 = vld [vmem:[%s1264_s3 + $0x7c] ss:$12 sps:$4 sm:$0xff]   ;;  %v876_v3 = vld [vmem:[%s1264_s3 + $0x98] ss:$12 sps:$4 sm:$0xff]   ;;  %v896_v23 = vld [vmem:[%s1264_s3 + $0x20] ss:$12 sps:$4 sm:$0xff]  }
  0x91   :  { %v48_v26 = vpop.xlane.xlu0 %47  ;;  %v52_v27 = vpop.xlane.xlu1 %51  ;;  %403 = vmatprep.subr.bf16.mxu0 %v874_v2  ;;  %840 = vmatprep.subr.bf16.mxu1 %v876_v3  ;;  %v894_v22 = vld [vmem:[%s1264_s3 + $0x4] ss:$12 sps:$4 sm:$0xff]  }
  0x92   :  { %v71_v28 = vmul.f32 0.0078125, %v48_v26  ;;  %v94_v29 = vmul.f32 %v990_v24, %v990_v24  ;;  %v73_v30 = vmul.f32 0.0078125, %v52_v27  ;;  %v96_v33 = vmul.f32 %v992_v25, %v992_v25  ;;  %841 = vmatpush3.bf16.msra.mxu1 %v876_v3  ;;  %v897_v26 = vld [vmem:[%s1264_s3] ss:$12 sps:$4 sm:$0xff]  }
  0x93   :  { %v923_v27 = vmov 0  }
  0x94   :  { %v996_v31 = vsub.f32 %v798_v4, %v71_v28  ;;  %106 = vadd.xlane.f32.xlu0 %v94_v29  ;;  %v998_v32 = vsub.f32 %v802_v5, %v73_v30  ;;  %431 = vmatprep.mubr.bf16.mxu0 %v923_v27  ;;  %v898_v28 = vld [vmem:[%s1264_s3 + $0x8] ss:$12 sps:$4 sm:$0xff]  }
  0x95   :  { %v54_v34 = vpop.xlane.xlu0 %53  ;;  %v56_v35 = vpop.xlane.xlu1 %55 }
  0x96   :  { %v74_v36 = vmul.f32 0.0078125, %v54_v34  ;;  %v95_v37 = vmul.f32 %v996_v31, %v996_v31  ;;  %v75_v38 = vmul.f32 0.0078125, %v56_v35  ;;  %v97_v41 = vmul.f32 %v998_v32, %v998_v32 }
  0x98   :  { %v1004_v39 = vsub.f32 %v805_v7, %v74_v36  ;;  %110 = vadd.xlane.f32.xlu0 %v96_v33  ;;  %108 = vadd.xlane.f32.xlu1 %v95_v37  ;;  %v1006_v40 = vsub.f32 %v806_v8, %v75_v38  ;;  %v877_v7 = vld [vmem:[%s1264_s3 + $0x78] ss:$12 sps:$4 sm:$0xff]  }
  0x99   :  { %v58_v42 = vpop.xlane.xlu0 %57  ;;  %v60_v43 = vpop.xlane.xlu1 %59  ;;  %404 = vmatpush1.bf16.msra.mxu0 %v877_v7 }
  0x9a   :  { %v76_v44 = vmul.f32 0.0078125, %v58_v42  ;;  %v98_v45 = vmul.f32 %v1004_v39, %v1004_v39  ;;  %v77_v46 = vmul.f32 0.0078125, %v60_v43  ;;  %v99_v49 = vmul.f32 %v1006_v40, %v1006_v40  ;;  %405 = vmatprep.subr.bf16.mxu0 %v878_v9 }
  0x9c   :  { %v1012_v47 = vsub.f32 %v809_v10, %v76_v44  ;;  %112 = vadd.xlane.f32.xlu1 %v97_v41  ;;  %114 = vadd.xlane.f32.xlu0 %v98_v45  ;;  %v1014_v48 = vsub.f32 %v810_v11, %v77_v46  ;;  %v880_v10 = vld [vmem:[%s1264_s3 + $0x80] ss:$12 sps:$4 sm:$0xff]  }
  0x9d   :  { %v62_v50 = vpop.xlane.xlu0 %61  ;;  %v64_v51 = vpop.xlane.xlu1 %63  ;;  %842 = vmatprep.subr.bf16.mxu1 %v880_v10  ;;  %406 = vmatpush1.bf16.msra.mxu0 %v881_v12 }
  0x9e   :  { %v78_v52 = vmul.f32 0.0078125, %v62_v50  ;;  %v100_v53 = vmul.f32 %v1012_v47, %v1012_v47  ;;  %v79_v54 = vmul.f32 0.0078125, %v64_v51  ;;  %v101_v60 = vmul.f32 %v1014_v48, %v1014_v48  ;;  %843 = vmatpush3.bf16.msra.mxu1 %v880_v10 }
  0xa0   :  { %v1029_v58 = vsub.f32 %v813_v13, %v78_v52  ;;  %116 = vadd.xlane.f32.xlu1 %v99_v49  ;;  %118 = vadd.xlane.f32.xlu0 %v100_v53  ;;  %v1031_v59 = vsub.f32 %v814_v14, %v79_v54  ;;  %v882_v13 = vld [vmem:[%s1264_s3 + $0x4c] ss:$12 sps:$4 sm:$0xff]   ;;  %v884_v14 = vld [vmem:[%s1264_s3 + $0x68] ss:$12 sps:$4 sm:$0xff]  }
  0xa1   :  { %v66_v61 = vpop.xlane.xlu0 %65  ;;  %v68_v62 = vpop.xlane.xlu1 %67  ;;  %407 = vmatprep.subr.bf16.mxu0 %v882_v13  ;;  %844 = vmatprep.subr.bf16.mxu1 %v884_v14 }
  0xa2   :  { %v80_v63 = vmul.f32 0.0078125, %v66_v61  ;;  %v102_v0 = vmul.f32 %v1029_v58, %v1029_v58  ;;  %v81_v1 = vmul.f32 0.0078125, %v68_v62  ;;  %v103_v6 = vmul.f32 %v1031_v59, %v1031_v59  ;;  %408 = vmatpush1.bf16.msra.mxu0 %v885_v15  ;;  %845 = vmatpush3.bf16.msra.mxu1 %v884_v14  ;;  %v722_v15 = vld [vmem:[%s1266_s2] ss:$0 sm:$0xff] }
  0xa4   :  { %v1045_v4 = vsub.f32 %v817_v16, %v80_v63  ;;  %120 = vadd.xlane.f32.xlu1 %v101_v60  ;;  %122 = vadd.xlane.f32.xlu0 %v102_v0  ;;  %v1049_v5 = vsub.f32 %v818_v17, %v81_v1  ;;  %v886_v16 = vld [vmem:[%s1264_s3 + $0x34] ss:$12 sps:$4 sm:$0xff]   ;;  %v888_v17 = vld [vmem:[%s1264_s3 + $0x50] ss:$12 sps:$4 sm:$0xff]  }
  0xa5   :  { %409 = vmatprep.subr.bf16.mxu0 %v886_v16  ;;  %846 = vmatprep.subr.bf16.mxu1 %v888_v17 }
  0xa6   :  { %v104_v8 = vmul.f32 %v1045_v4, %v1045_v4  ;;  %v105_v11 = vmul.f32 %v1049_v5, %v1049_v5  ;;  %410 = vmatpush1.bf16.msra.mxu0 %v889_v18  ;;  %847 = vmatpush3.bf16.msra.mxu1 %v888_v17 }
  0xa7   :  { %411 = vmatprep.subr.bf16.mxu0 %v890_v19  ;;  %848 = vmatprep.subr.bf16.mxu1 %v892_v20 }
  0xa8   :  { %124 = vadd.xlane.f32.xlu1 %v103_v6  ;;  %126 = vadd.xlane.f32.xlu0 %v104_v8  ;;  %v1113_v6 = vld [vmem:[%s1265_s1] ss:$0 sm:$0xff] }
  0xaa   :  { %412 = vmatpush1.bf16.msra.mxu0 %v893_v21  ;;  %849 = vmatpush3.bf16.msra.mxu1 %v892_v20 }
  0xab   :  { %413 = vmatprep.subr.bf16.mxu0 %v894_v22  ;;  %850 = vmatprep.subr.bf16.mxu1 %v896_v23 }
  0xac   :  { %128 = vadd.xlane.f32.xlu1 %v105_v11 }
  0xae   :  { %414 = vmatpush1.bf16.msra.mxu0 %v897_v26  ;;  %851 = vmatpush3.bf16.msra.mxu1 %v896_v23 }
  0xaf   :  { %852 = vmatprep.subr.bf16.mxu1 %v898_v28 }
  0xb2   :  { %853 = vmatpush3.bf16.msra.mxu1 %v898_v28 }
 0x11d   :  { %v107_v29 = vpop.xlane.xlu0 %106 }
 0x11e   :  { %v130_v30 = vmul.f32 0.0078125, %v107_v29 }
 0x120   :  { %v142_v33 = vadd.f32 1e-05, %v130_v30 }
 0x121   :  { %v109_v34 = vpop.xlane.xlu1 %108  ;;  %v111_v35 = vpop.xlane.xlu0 %110 }
 0x122   :  { %899 = vrsqrt.f32 %v142_v33  ;;  %v131_v36 = vmul.f32 0.0078125, %v109_v34  ;;  %v132_v37 = vmul.f32 0.0078125, %v111_v35 }
 0x124   :  { %v143_v38 = vadd.f32 1e-05, %v131_v36  ;;  %v144_v41 = vadd.f32 1e-05, %v132_v37 }
 0x125   :  { %v113_v42 = vpop.xlane.xlu1 %112  ;;  %v115_v43 = vpop.xlane.xlu0 %114 }
 0x126   :  { %901 = vrsqrt.f32 %v143_v38  ;;  %v133_v44 = vmul.f32 0.0078125, %v113_v42  ;;  %v134_v45 = vmul.f32 0.0078125, %v115_v43 }
 0x127   :  { %903 = vrsqrt.f32 %v144_v41 }
 0x128   :  { %v145_v46 = vadd.f32 1e-05, %v133_v44  ;;  %v146_v49 = vadd.f32 1e-05, %v134_v45 }
 0x129   :  { %v117_v50 = vpop.xlane.xlu1 %116  ;;  %v119_v51 = vpop.xlane.xlu0 %118 }
 0x12a   :  { %905 = vrsqrt.f32 %v145_v46  ;;  %v135_v52 = vmul.f32 0.0078125, %v117_v50  ;;  %v136_v53 = vmul.f32 0.0078125, %v119_v51 }
 0x12b   :  { %907 = vrsqrt.f32 %v146_v49 }
 0x12c   :  { %v147_v54 = vadd.f32 1e-05, %v135_v52  ;;  %v148_v55 = vadd.f32 1e-05, %v136_v53 }
 0x12d   :  { %v121_v56 = vpop.xlane.xlu1 %120  ;;  %v123_v57 = vpop.xlane.xlu0 %122 }
 0x12e   :  { %909 = vrsqrt.f32 %v147_v54  ;;  %v137_v60 = vmul.f32 0.0078125, %v121_v56  ;;  %v138_v61 = vmul.f32 0.0078125, %v123_v57 }
 0x12f   :  { %v900_v62 = vpop.eup %899  ;;  %911 = vrsqrt.f32 %v148_v55 }
 0x130   :  { %v149_v63 = vadd.f32 1e-05, %v137_v60  ;;  %v150_v0 = vadd.f32 1e-05, %v138_v61  ;;  %v166_v1 = vmul.f32 %v900_v62, %v990_v24 }
 0x131   :  { %v125_v2 = vpop.xlane.xlu1 %124  ;;  %v127_v3 = vpop.xlane.xlu0 %126 }
 0x132   :  { %913 = vrsqrt.f32 %v149_v63  ;;  %v139_v7 = vmul.f32 0.0078125, %v125_v2  ;;  %v140_v8 = vmul.f32 0.0078125, %v127_v3  ;;  %v185_v14 = vmul.f32 %v1113_v6, %v166_v1 }
 0x133   :  { %v902_v9 = vpop.eup %901  ;;  %915 = vrsqrt.f32 %v150_v0 }
 0x134   :  { %v904_v10 = vpop.eup %903  ;;  %v151_v11 = vadd.f32 1e-05, %v139_v7  ;;  %v152_v12 = vadd.f32 1e-05, %v140_v8  ;;  %v167_v13 = vmul.f32 %v902_v9, %v996_v31  ;;  %v204_v31 = vadd.f32 %v722_v15, %v185_v14 }
 0x135   :  { %v129_v24 = vpop.xlane.xlu1 %128  ;;  %v168_v16 = vmul.f32 %v904_v10, %v992_v25 }
 0x136   :  { %917 = vrsqrt.f32 %v151_v11  ;;  %v141_v17 = vmul.f32 0.0078125, %v129_v24  ;;  %v186_v18 = vmul.f32 %v1113_v6, %v167_v13 }
 0x137   :  { %v906_v19 = vpop.eup %905  ;;  %919 = vrsqrt.f32 %v152_v12  ;;  %v187_v20 = vmul.f32 %v1113_v6, %v168_v16 }
 0x138   :  { %v908_v21 = vpop.eup %907  ;;  %v153_v22 = vadd.f32 1e-05, %v141_v17  ;;  %v205_v23 = vadd.f32 %v722_v15, %v186_v18  ;;  %v169_v26 = vmul.f32 %v906_v19, %v998_v32 }
 0x139   :  { %v170_v28 = vmul.f32 %v908_v21, %v1004_v39  ;;  %v206_v33 = vadd.f32 %v722_v15, %v187_v20 }
 0x13a   :  { %921 = vrsqrt.f32 %v153_v22  ;;  %v216_v29 = vpack.c.bf16 %v205_v23, %v204_v31  ;;  %v188_v25 = vmul.f32 %v1113_v6, %v169_v26 }
 0x13b   :  { %v910_v30 = vpop.eup %909  ;;  %v189_v37 = vmul.f32 %v1113_v6, %v170_v28 }
 0x13c   :  { %v912_v34 = vpop.eup %911  ;;  %432 = vmatmul.mubr.bf16.vlgmr.msra.gmra.mxu0 %v216_v29  ;;  %854 = vmatprep.mubr.bf16.mxu1 %v216_v29  ;;  %v207_v35 = vadd.f32 %v722_v15, %v188_v25  ;;  %v171_v36 = vmul.f32 %v910_v30, %v1006_v40 }
 0x13d   :  { %441 = vmatprep.mubr.bf16.mxu0 %v923_v27  ;;  %v172_v32 = vmul.f32 %v912_v34, %v1012_v47  ;;  %v208_v44 = vadd.f32 %v722_v15, %v189_v37 }
 0x13e   :  { %v217_v38 = vpack.c.bf16 %v207_v35, %v206_v33  ;;  %v190_v39 = vmul.f32 %v1113_v6, %v171_v36 }
 0x13f   :  { %v914_v41 = vpop.eup %913  ;;  %v191_v42 = vmul.f32 %v1113_v6, %v172_v32 }
 0x140   :  { %v916_v43 = vpop.eup %915  ;;  %855 = vmatmul.mubr.bf16.vlgmr.msra.gmra.mxu1 %v217_v38  ;;  %v209_v45 = vadd.f32 %v722_v15, %v190_v39  ;;  %v173_v46 = vmul.f32 %v914_v41, %v1014_v48 }
 0x141   :  { %v174_v40 = vmul.f32 %v916_v43, %v1029_v58  ;;  %v210_v52 = vadd.f32 %v722_v15, %v191_v42 }
 0x142   :  { %v218_v49 = vpack.c.bf16 %v209_v45, %v208_v44  ;;  %v192_v50 = vmul.f32 %v1113_v6, %v173_v46 }
 0x143   :  { %v918_v51 = vpop.eup %917  ;;  %v193_v55 = vmul.f32 %v1113_v6, %v174_v40 }
 0x144   :  { %v920_v47 = vpop.eup %919  ;;  %442 = vmatmul.mubr.bf16.gmra.mxu0 %v217_v38  ;;  %858 = vmatprep.mubr.bf16.mxu1 %v218_v49  ;;  %v211_v53 = vadd.f32 %v722_v15, %v192_v50  ;;  %v175_v54 = vmul.f32 %v918_v51, %v1031_v59 }
 0x145   :  { %451 = vmatprep.mubr.bf16.mxu0 %v923_v27  ;;  %v176_v56 = vmul.f32 %v920_v47, %v1045_v4  ;;  %v212_v60 = vadd.f32 %v722_v15, %v193_v55 }
 0x146   :  { %v219_v48 = vpack.c.bf16 %v211_v53, %v210_v52  ;;  %v194_v58 = vmul.f32 %v1113_v6, %v175_v54 }
 0x147   :  { %v922_v57 = vpop.eup %921  ;;  %v195_v63 = vmul.f32 %v1113_v6, %v176_v56 }
 0x148   :  { %859 = vmatmul.mubr.bf16.gmra.mxu1 %v219_v48  ;;  %v213_v61 = vadd.f32 %v722_v15, %v194_v58  ;;  %v177_v62 = vmul.f32 %v922_v57, %v1049_v5  ;;  %v256_v5 = vlaneseq }
 0x149   :  { %v214_v1 = vadd.f32 %v722_v15, %v195_v63 }
 0x14a   :  { %v220_v0 = vpack.c.bf16 %v213_v61, %v212_v60  ;;  %v196_v59 = vmul.f32 %v1113_v6, %v177_v62  ;;  %v257_v3 = vshrl.u32 %v256_v5, 7  ;;  %v254_v6 = vld [vmem:[%s1267_s4] sm:$0x7] }
 0x14c   :  { %452 = vmatmul.mubr.bf16.gmra.mxu0 %v218_v49  ;;  %862 = vmatprep.mubr.bf16.mxu1 %v220_v0  ;;  %v215_v2 = vadd.f32 %v722_v15, %v196_v59  ;;  %v258_v7 = vsub.s32 0, %v257_v3  ;;  %v262_v8 = vsub.s32 1, %v257_v3  ;;  %v266_v9 = vsub.s32 2, %v257_v3 }
 0x14d   :  { %461 = vmatprep.mubr.bf16.mxu0 %v923_v27 }
 0x14e   :  { %v221_v4 = vpack.c.bf16 %v215_v2, %v214_v1  ;;  %v1149_v10 = vrot.slane %v254_v6, %v258_v7  ;;  %v1151_v11 = vrot.slane %v254_v6, %v262_v8  ;;  %v1153_v13 = vrot.slane %v254_v6, %v266_v9 }
 0x150   :  { %863 = vmatmul.mubr.bf16.gmra.mxu1 %v221_v4 }
 0x154   :  { %462 = vmatmul.mubr.bf16.gmra.mxu0 %v219_v48 }
 0x155   :  { %471 = vmatprep.mubr.bf16.mxu0 %v923_v27 }
 0x15c   :  { %472 = vmatmul.mubr.bf16.gmra.mxu0 %v220_v0 }
 0x15d   :  { %481 = vmatprep.mubr.bf16.mxu0 %v923_v27 }
 0x164   :  { %482 = vmatmul.mubr.bf16.gmra.mxu0 %v221_v4 }
 0x1fc   :  { %v433_v12 = vpop.f32.mrf.mxu0 }
 0x1fd   :  { %v434_v27 = vadd.f32 %v433_v12, %v1149_v10 }
 0x1fe   :  { %v435_v14 = vpop.f32.mrf.mxu0 }
 0x1ff   :  { %v436_v24 = vadd.f32 %v435_v14, %v1151_v11 }
 0x200   :  { %v437_v15 = vpop.f32.mrf.mxu0  ;;  %v856_v16 = vpop.f32.mrf.mxu1 }
 0x201   :  { %v771_v17 = vpack.c.bf16 %v436_v24, %v434_v27  ;;  %v535_v18 = vadd.f32 %v856_v16, %v1153_v13  ;;  %v438_v21 = vadd.f32 %v437_v15, %v1149_v10 }
 0x202   :  { %v439_v19 = vpop.f32.mrf.mxu0  ;;  %v526_v20 = vpop.f32.mrf.mxu1 }
 0x203   :  { %693 = vst [vmem:[%s1268_s5] sm:$0xff] %v771_v17  ;;  %v776_v22 = vpack.c.bf16 %v535_v18, %v535_v18  ;;  %v440_v31 = vadd.f32 %v439_v19, %v1151_v11  ;;  %v527_v23 = vadd.f32 %v526_v20, %v1153_v13 }
 0x204   :  { %v443_v26 = vpop.f32.mrf.mxu0  ;;  %v857_v28 = vpop.f32.mrf.mxu1 }
 0x205   :  { %698 = vst [vmem:[%s1268_s5 + $0x20] sm:$0xf] %v776_v22  ;;  %v773_v29 = vpack.c.bf16 %v440_v31, %v438_v21  ;;  %v772_v25 = vpack.c.bf16 %v527_v23, %v527_v23  ;;  %v538_v30 = vadd.f32 %v857_v28, %v1153_v13  ;;  %v444_v35 = vadd.f32 %v443_v26, %v1149_v10 }
 0x206   :  { %v445_v33 = vpop.f32.mrf.mxu0  ;;  %v529_v34 = vpop.f32.mrf.mxu1 }
 0x207   :  { %695 = vst [vmem:[%s1268_s5 + $0xc] sm:$0xff] %v773_v29  ;;  %694 = vst [vmem:[%s1268_s5 + $0x8] sm:$0xf] %v772_v25  ;;  %v778_v36 = vpack.c.bf16 %v538_v30, %v538_v30  ;;  %v446_v37 = vadd.f32 %v445_v33, %v1151_v11  ;;  %v530_v32 = vadd.f32 %v529_v34, %v1153_v13 }
 0x208   :  { %v447_v38 = vpop.f32.mrf.mxu0  ;;  %v860_v39 = vpop.f32.mrf.mxu1 }
 0x209   :  { %700 = vst [vmem:[%s1268_s5 + $0x2c] sm:$0xf] %v778_v36  ;;  %v775_v41 = vpack.c.bf16 %v446_v37, %v444_v35  ;;  %v774_v42 = vpack.c.bf16 %v530_v32, %v530_v32  ;;  %v551_v43 = vadd.f32 %v860_v39, %v1153_v13  ;;  %v448_v46 = vadd.f32 %v447_v38, %v1149_v10 }
 0x20a   :  { %v449_v44 = vpop.f32.mrf.mxu0  ;;  %v542_v45 = vpop.f32.mrf.mxu1 }
 0x20b   :  { %697 = vst [vmem:[%s1268_s5 + $0x18] sm:$0xff] %v775_v41  ;;  %696 = vst [vmem:[%s1268_s5 + $0x14] sm:$0xf] %v774_v42  ;;  %v784_v40 = vpack.c.bf16 %v551_v43, %v551_v43  ;;  %v450_v49 = vadd.f32 %v449_v44, %v1151_v11  ;;  %v543_v50 = vadd.f32 %v542_v45, %v1153_v13 }
 0x20c   :  { %v453_v51 = vpop.f32.mrf.mxu0  ;;  %v861_v52 = vpop.f32.mrf.mxu1 }
 0x20d   :  { %706 = vst [vmem:[%s1268_s5 + $0x50] sm:$0xf] %v784_v40  ;;  %v777_v47 = vpack.c.bf16 %v450_v49, %v448_v46  ;;  %v780_v53 = vpack.c.bf16 %v543_v50, %v543_v50  ;;  %v554_v54 = vadd.f32 %v861_v52, %v1153_v13  ;;  %v454_v48 = vadd.f32 %v453_v51, %v1149_v10 }
 0x20e   :  { %v455_v55 = vpop.f32.mrf.mxu0  ;;  %v545_v56 = vpop.f32.mrf.mxu1 }
 0x20f   :  { %699 = vst [vmem:[%s1268_s5 + $0x24] sm:$0xff] %v777_v47  ;;  %702 = vst [vmem:[%s1268_s5 + $0x38] sm:$0xf] %v780_v53  ;;  %v786_v58 = vpack.c.bf16 %v554_v54, %v554_v54  ;;  %v456_v57 = vadd.f32 %v455_v55, %v1151_v11  ;;  %v546_v60 = vadd.f32 %v545_v56, %v1153_v13 }
 0x210   :  { %v457_v61 = vpop.f32.mrf.mxu0  ;;  %v864_v62 = vpop.f32.mrf.mxu1 }
 0x211   :  { %708 = vst [vmem:[%s1268_s5 + $0x5c] sm:$0xf] %v786_v58  ;;  %v779_v63 = vpack.c.bf16 %v456_v57, %v454_v48  ;;  %v782_v0 = vpack.c.bf16 %v546_v60, %v546_v60  ;;  %v567_v59 = vadd.f32 %v864_v62, %v1153_v13  ;;  %v458_v4 = vadd.f32 %v457_v61, %v1149_v10 }
 0x212   :  { %v459_v1 = vpop.f32.mrf.mxu0  ;;  %v558_v2 = vpop.f32.mrf.mxu1 }
 0x213   :  { %701 = vst [vmem:[%s1268_s5 + $0x30] sm:$0xff] %v779_v63  ;;  %704 = vst [vmem:[%s1268_s5 + $0x44] sm:$0xf] %v782_v0  ;;  %v792_v5 = vpack.c.bf16 %v567_v59, %v567_v59  ;;  %v460_v3 = vadd.f32 %v459_v1, %v1151_v11  ;;  %v559_v7 = vadd.f32 %v558_v2, %v1153_v13 }
 0x214   :  { %v463_v8 = vpop.f32.mrf.mxu0  ;;  %v865_v6 = vpop.f32.mrf.mxu1 }
 0x215   :  { %714 = vst [vmem:[%s1268_s5 + $0x80] sm:$0xf] %v792_v5  ;;  %v781_v9 = vpack.c.bf16 %v460_v3, %v458_v4  ;;  %v788_v12 = vpack.c.bf16 %v559_v7, %v559_v7  ;;  %v570_v14 = vadd.f32 %v865_v6, %v1153_v13  ;;  %v464_v15 = vadd.f32 %v463_v8, %v1149_v10 }
 0x216   :  { %v465_v27 = vpop.f32.mrf.mxu0  ;;  %v561_v24 = vpop.f32.mrf.mxu1 }
 0x217   :  { %703 = vst [vmem:[%s1268_s5 + $0x3c] sm:$0xff] %v781_v9  ;;  %710 = vst [vmem:[%s1268_s5 + $0x68] sm:$0xf] %v788_v12  ;;  %v794_v16 = vpack.c.bf16 %v570_v14, %v570_v14  ;;  %v466_v17 = vadd.f32 %v465_v27, %v1151_v11  ;;  %v562_v18 = vadd.f32 %v561_v24, %v1153_v13 }
 0x218   :  { %v467_v19 = vpop.f32.mrf.mxu0 }
 0x219   :  { %716 = vst [vmem:[%s1268_s5 + $0x8c] sm:$0xf] %v794_v16  ;;  %v783_v20 = vpack.c.bf16 %v466_v17, %v464_v15  ;;  %v790_v21 = vpack.c.bf16 %v562_v18, %v562_v18  ;;  %v468_v31 = vadd.f32 %v467_v19, %v1149_v10 }
 0x21a   :  { %v469_v22 = vpop.f32.mrf.mxu0 }
 0x21b   :  { %705 = vst [vmem:[%s1268_s5 + $0x48] sm:$0xff] %v783_v20  ;;  %712 = vst [vmem:[%s1268_s5 + $0x74] sm:$0xf] %v790_v21  ;;  %v470_v13 = vadd.f32 %v469_v22, %v1151_v11 }
 0x21c   :  { %v473_v23 = vpop.f32.mrf.mxu0 }
 0x21d   :  { %v785_v26 = vpack.c.bf16 %v470_v13, %v468_v31  ;;  %v474_v29 = vadd.f32 %v473_v23, %v1149_v10 }
 0x21e   :  { %v475_v28 = vpop.f32.mrf.mxu0 }
 0x21f   :  { %707 = vst [vmem:[%s1268_s5 + $0x54] sm:$0xff] %v785_v26  ;;  %v476_v25 = vadd.f32 %v475_v28, %v1151_v11 }
 0x220   :  { %v477_v30 = vpop.f32.mrf.mxu0 }
 0x221   :  { %v787_v33 = vpack.c.bf16 %v476_v25, %v474_v29  ;;  %v478_v35 = vadd.f32 %v477_v30, %v1149_v10 }
 0x222   :  { %v479_v34 = vpop.f32.mrf.mxu0 }
 0x223   :  { %709 = vst [vmem:[%s1268_s5 + $0x60] sm:$0xff] %v787_v33  ;;  %v480_v36 = vadd.f32 %v479_v34, %v1151_v11 }
 0x224   :  { %v483_v37 = vpop.f32.mrf.mxu0 }
 0x225   :  { %v789_v32 = vpack.c.bf16 %v480_v36, %v478_v35  ;;  %v484_v39 = vadd.f32 %v483_v37, %v1149_v10 }
 0x226   :  { %v485_v38 = vpop.f32.mrf.mxu0 }
 0x227   :  { %711 = vst [vmem:[%s1268_s5 + $0x6c] sm:$0xff] %v789_v32  ;;  %v486_v41 = vadd.f32 %v485_v38, %v1151_v11 }
 0x228   :  { %v487_v42 = vpop.f32.mrf.mxu0 }
 0x229   :  { %v791_v43 = vpack.c.bf16 %v486_v41, %v484_v39  ;;  %v488_v45 = vadd.f32 %v487_v42, %v1149_v10 }
 0x22a   :  { %v489_v44 = vpop.f32.mrf.mxu0 }
 0x22b   :  { %713 = vst [vmem:[%s1268_s5 + $0x78] sm:$0xff] %v791_v43  ;;  %v490_v46 = vadd.f32 %v489_v44, %v1151_v11 }
 0x22d   :  { %v793_v40 = vpack.c.bf16 %v490_v46, %v488_v45 }
 0x22f   :  { %715 = vst [vmem:[%s1268_s5 + $0x84] sm:$0xff] %v793_v40 }

// kernel: cct_forward.28
= control target key start
LH: loop header
LB: loop body
LE: loop exit
PB: predicated region body
PF: predicated region fallthrough
CT: control target
= control target key end

     0   :  { %s2546_s0 = inlined_call_operand.vmem [shape: bf16[80,128], index: 0, kind: input, shape index: {}]   ;;  %s2547_s3 = inlined_call_operand.vmem [shape: bf16[128,512], index: 3, kind: input, shape index: {}]   ;;  %s2548_s1 = inlined_call_operand.vmem [shape: f32[1,128], index: 1, kind: input, shape index: {}]   ;;  %s2549_s2 = inlined_call_operand.vmem [shape: f32[1,128], index: 2, kind: input, shape index: {}]   ;;  %s2550_s5 = inlined_call_operand.vmem [shape: bf16[512,128], index: 5, kind: input, shape index: {}]   ;;  %s2551_s4 = inlined_call_operand.vmem [shape: f32[1,512], index: 4, kind: input, shape index: {}]   ;;  %s2552_s6 = inlined_call_operand.vmem [shape: f32[1,128], index: 6, kind: input, shape index: {}]   ;;  %s2553_s7 = inlined_call_operand.vmem [shape: bf16[80,128], index: 7, kind: output, shape index: {}]  }
   0x1   :  { %v1518_v0 = vld [vmem:[%s2546_s0] sm:$0xff]   ;;  %v1562_v1 = vld [vmem:[%s2546_s0 + $0x8] sm:$0xff]   ;;  %v1563_v6 = vld [vmem:[%s2546_s0 + $0x10] sm:$0xff]  }
   0x2   :  { %v1970_v2 = vunpack.c.l.bf16 %v1518_v0  ;;  %v1972_v3 = vunpack.c.l.bf16 %v1562_v1  ;;  %v1976_v4 = vunpack.c.h.bf16 %v1518_v0  ;;  %v1978_v5 = vunpack.c.h.bf16 %v1562_v1  ;;  %v1564_v9 = vld [vmem:[%s2546_s0 + $0x18] sm:$0xff]   ;;  %v1565_v12 = vld [vmem:[%s2546_s0 + $0x20] sm:$0xff]  }
   0x3   :  { %v1985_v7 = vunpack.c.l.bf16 %v1563_v6  ;;  %v1987_v8 = vunpack.c.h.bf16 %v1563_v6  ;;  %v1994_v10 = vunpack.c.l.bf16 %v1564_v9  ;;  %v1996_v11 = vunpack.c.h.bf16 %v1564_v9  ;;  %v1663_v15 = vld [vmem:[%s2547_s3 + $0xe4] ss:$16 sps:$4 sm:$0xff]   ;;  %v1665_v16 = vld [vmem:[%s2547_s3 + $0xec] ss:$16 sps:$4 sm:$0xff]   ;;  %v1667_v17 = vld [vmem:[%s2547_s3 + $0xe0] ss:$16 sps:$4 sm:$0xff]  }
   0x4   :  { %2568 = vst [vmem:[#allocation2_spill] sm:$0xff] %v1970_v2  ;;  %2569 = vst [vmem:[#allocation3_spill] sm:$0xff] %v1972_v3  ;;  %47 = vadd.xlane.f32.xlu0 %v1970_v2  ;;  %51 = vadd.xlane.f32.xlu1 %v1972_v3  ;;  %v2003_v13 = vunpack.c.l.bf16 %v1565_v12  ;;  %v2005_v14 = vunpack.c.h.bf16 %v1565_v12  ;;  %v1668_v18 = vld [vmem:[%s2547_s3 + $0xe8] ss:$16 sps:$4 sm:$0xff]   ;;  %v1669_v54 = vld [vmem:[%s2547_s3 + $0xc4] ss:$16 sps:$4 sm:$0xff]  }
   0x5   :  { %2570 = vst [vmem:[#allocation4_spill] sm:$0xff] %v1976_v4  ;;  %2571 = vst [vmem:[#allocation5_spill] sm:$0xff] %v1978_v5  ;;  %411 = vmatprep.subr.bf16.mxu0 %v1663_v15  ;;  %494 = vmatprep.subr.bf16.mxu1 %v1665_v16  ;;  %v1671_v55 = vld [vmem:[%s2547_s3 + $0xcc] ss:$16 sps:$4 sm:$0xff]   ;;  %v1673_v56 = vld [vmem:[%s2547_s3 + $0xc0] ss:$16 sps:$4 sm:$0xff]  }
   0x6   :  { %2572 = vst [vmem:[#allocation6_spill] sm:$0xff] %v1985_v7  ;;  %2573 = vst [vmem:[#allocation7_spill] sm:$0xff] %v1987_v8  ;;  %412 = vmatpush1.bf16.msra.mxu0 %v1667_v17  ;;  %495 = vmatpush1.bf16.msra.mxu1 %v1668_v18  ;;  %v1674_v57 = vld [vmem:[%s2547_s3 + $0xc8] ss:$16 sps:$4 sm:$0xff]   ;;  %v1675_v62 = vld [vmem:[%s2547_s3 + $0xa4] ss:$16 sps:$4 sm:$0xff]  }
   0x7   :  { %2574 = vst [vmem:[#allocation8_spill] sm:$0xff] %v1994_v10  ;;  %2575 = vst [vmem:[#allocation9_spill] sm:$0xff] %v1996_v11  ;;  %413 = vmatprep.subr.bf16.mxu0 %v1669_v54  ;;  %496 = vmatprep.subr.bf16.mxu1 %v1671_v55  ;;  %v1677_v63 = vld [vmem:[%s2547_s3 + $0xac] ss:$16 sps:$4 sm:$0xff]   ;;  %v1679_v1 = vld [vmem:[%s2547_s3 + $0xa0] ss:$16 sps:$4 sm:$0xff]  }
   0x8   :  { %49 = vadd.xlane.f32.xlu0 %v1976_v4  ;;  %53 = vadd.xlane.f32.xlu1 %v1978_v5  ;;  %2576 = vst [vmem:[#allocation10_spill] sm:$0xff] %v2003_v13  ;;  %2577 = vst [vmem:[#allocation11_spill] sm:$0xff] %v2005_v14  ;;  %v1680_v6 = vld [vmem:[%s2547_s3 + $0xa8] ss:$16 sps:$4 sm:$0xff]   ;;  %v1681_v9 = vld [vmem:[%s2547_s3 + $0x84] ss:$16 sps:$4 sm:$0xff]  }
   0x9   :  { %v1683_v12 = vld [vmem:[%s2547_s3 + $0x8c] ss:$16 sps:$4 sm:$0xff]   ;;  %v1685_v15 = vld [vmem:[%s2547_s3 + $0x80] ss:$16 sps:$4 sm:$0xff]   ;;  %v1686_v16 = vld [vmem:[%s2547_s3 + $0x88] ss:$16 sps:$4 sm:$0xff]  }
   0xa   :  { %414 = vmatpush1.bf16.msra.mxu0 %v1673_v56  ;;  %497 = vmatpush1.bf16.msra.mxu1 %v1674_v57  ;;  %v1687_v17 = vld [vmem:[%s2547_s3 + $0x64] ss:$16 sps:$4 sm:$0xff]   ;;  %v1689_v18 = vld [vmem:[%s2547_s3 + $0x6c] ss:$16 sps:$4 sm:$0xff]  }
   0xb   :  { %415 = vmatprep.subr.bf16.mxu0 %v1675_v62  ;;  %498 = vmatprep.subr.bf16.mxu1 %v1677_v63 }
   0xc   :  { %55 = vadd.xlane.f32.xlu0 %v1985_v7  ;;  %57 = vadd.xlane.f32.xlu1 %v1987_v8 }
   0xe   :  { %416 = vmatpush1.bf16.msra.mxu0 %v1679_v1  ;;  %499 = vmatpush1.bf16.msra.mxu1 %v1680_v6 }
   0xf   :  { %417 = vmatprep.subr.bf16.mxu0 %v1681_v9  ;;  %500 = vmatprep.subr.bf16.mxu1 %v1683_v12  ;;  %v2161_v12 = vld [vmem:[%s2548_s1] ss:$0 sm:$0xff] }
  0x10   :  { %59 = vadd.xlane.f32.xlu0 %v1994_v10  ;;  %61 = vadd.xlane.f32.xlu1 %v1996_v11 }
  0x12   :  { %418 = vmatpush1.bf16.msra.mxu0 %v1685_v15  ;;  %501 = vmatpush1.bf16.msra.mxu1 %v1686_v16 }
  0x13   :  { %419 = vmatprep.subr.bf16.mxu0 %v1687_v17  ;;  %502 = vmatprep.subr.bf16.mxu1 %v1689_v18 }
  0x14   :  { %63 = vadd.xlane.f32.xlu0 %v2003_v13  ;;  %65 = vadd.xlane.f32.xlu1 %v2005_v14 }
  0x8d   :  { %v48_v19 = vpop.xlane.xlu0 %47  ;;  %v52_v20 = vpop.xlane.xlu1 %51 }
  0x8e   :  { %v68_v21 = vmul.f32 0.0078125, %v48_v19  ;;  %v70_v22 = vmul.f32 0.0078125, %v52_v20  ;;  %v1691_v19 = vld [vmem:[%s2547_s3 + $0x60] ss:$16 sps:$4 sm:$0xff]   ;;  %v1692_v20 = vld [vmem:[%s2547_s3 + $0x68] ss:$16 sps:$4 sm:$0xff]  }
  0x8f   :  { %420 = vmatpush1.bf16.msra.mxu0 %v1691_v19  ;;  %503 = vmatpush1.bf16.msra.mxu1 %v1692_v20 }
  0x90   :  { %v2022_v23 = vsub.f32 %v1970_v2, %v68_v21  ;;  %v2025_v24 = vsub.f32 %v1972_v3, %v70_v22  ;;  %v1693_v21 = vld [vmem:[%s2547_s3 + $0x44] ss:$16 sps:$4 sm:$0xff]   ;;  %v1695_v22 = vld [vmem:[%s2547_s3 + $0x4c] ss:$16 sps:$4 sm:$0xff]  }
  0x91   :  { %v50_v25 = vpop.xlane.xlu0 %49  ;;  %v54_v26 = vpop.xlane.xlu1 %53  ;;  %421 = vmatprep.subr.bf16.mxu0 %v1693_v21  ;;  %504 = vmatprep.subr.bf16.mxu1 %v1695_v22 }
  0x92   :  { %v69_v27 = vmul.f32 0.0078125, %v50_v25  ;;  %v88_v28 = vmul.f32 %v2022_v23, %v2022_v23  ;;  %v71_v29 = vmul.f32 0.0078125, %v54_v26  ;;  %v90_v32 = vmul.f32 %v2025_v24, %v2025_v24  ;;  %v1697_v25 = vld [vmem:[%s2547_s3 + $0x40] ss:$16 sps:$4 sm:$0xff]   ;;  %v1698_v26 = vld [vmem:[%s2547_s3 + $0x48] ss:$16 sps:$4 sm:$0xff]  }
  0x93   :  { %422 = vmatpush1.bf16.msra.mxu0 %v1697_v25  ;;  %505 = vmatpush1.bf16.msra.mxu1 %v1698_v26  ;;  %v1391_v25 = vld [vmem:[%s2549_s2] ss:$0 sm:$0xff] }
  0x94   :  { %v2030_v30 = vsub.f32 %v1976_v4, %v69_v27  ;;  %98 = vadd.xlane.f32.xlu0 %v88_v28  ;;  %v2033_v31 = vsub.f32 %v1978_v5, %v71_v29  ;;  %v1699_v27 = vld [vmem:[%s2547_s3 + $0x24] ss:$16 sps:$4 sm:$0xff]   ;;  %v1701_v28 = vld [vmem:[%s2547_s3 + $0x2c] ss:$16 sps:$4 sm:$0xff]   ;;  %v1703_v29 = vld [vmem:[%s2547_s3 + $0x20] ss:$16 sps:$4 sm:$0xff]  }
  0x95   :  { %v56_v33 = vpop.xlane.xlu0 %55  ;;  %v58_v34 = vpop.xlane.xlu1 %57  ;;  %423 = vmatprep.subr.bf16.mxu0 %v1699_v27  ;;  %506 = vmatprep.subr.bf16.mxu1 %v1701_v28 }
  0x96   :  { %v72_v35 = vmul.f32 0.0078125, %v56_v33  ;;  %v89_v36 = vmul.f32 %v2030_v30, %v2030_v30  ;;  %v73_v37 = vmul.f32 0.0078125, %v58_v34  ;;  %v91_v40 = vmul.f32 %v2033_v31, %v2033_v31  ;;  %v1705_v33 = vld [vmem:[%s2547_s3 + $0x4] ss:$16 sps:$4 sm:$0xff]   ;;  %v1707_v34 = vld [vmem:[%s2547_s3 + $0xc] ss:$16 sps:$4 sm:$0xff]  }
  0x97   :  { %424 = vmatpush1.bf16.msra.mxu0 %v1703_v29 }
  0x98   :  { %v2040_v38 = vsub.f32 %v1985_v7, %v72_v35  ;;  %102 = vadd.xlane.f32.xlu0 %v90_v32  ;;  %100 = vadd.xlane.f32.xlu1 %v89_v36  ;;  %v2043_v39 = vsub.f32 %v1987_v8, %v73_v37  ;;  %v1704_v32 = vld [vmem:[%s2547_s3 + $0x28] ss:$16 sps:$4 sm:$0xff]   ;;  %v1709_v35 = vld [vmem:[%s2547_s3] ss:$16 sps:$4 sm:$0xff]   ;;  %v1923_v37 = vmov 0  }
  0x99   :  { %v60_v41 = vpop.xlane.xlu0 %59  ;;  %v62_v42 = vpop.xlane.xlu1 %61  ;;  %507 = vmatpush1.bf16.msra.mxu1 %v1704_v32  ;;  %v1710_v36 = vld [vmem:[%s2547_s3 + $0x8] ss:$16 sps:$4 sm:$0xff]   ;;  %425 = vmatprep.subr.bf16.mxu0 %v1705_v33 }
  0x9a   :  { %v74_v43 = vmul.f32 0.0078125, %v60_v41  ;;  %v92_v44 = vmul.f32 %v2040_v38, %v2040_v38  ;;  %v75_v45 = vmul.f32 0.0078125, %v62_v42  ;;  %v93_v48 = vmul.f32 %v2043_v39, %v2043_v39  ;;  %508 = vmatprep.subr.bf16.mxu1 %v1707_v34  ;;  %443 = vmatprep.mubr.bf16.mxu0 %v1923_v37 }
  0x9b   :  { %526 = vmatprep.mubr.bf16.mxu1 %v1923_v37  ;;  %426 = vmatpush1.bf16.msra.mxu0 %v1709_v35 }
  0x9c   :  { %v2050_v46 = vsub.f32 %v1994_v10, %v74_v43  ;;  %104 = vadd.xlane.f32.xlu1 %v91_v40  ;;  %106 = vadd.xlane.f32.xlu0 %v92_v44  ;;  %v2053_v47 = vsub.f32 %v1996_v11, %v75_v45 }
  0x9d   :  { %v64_v49 = vpop.xlane.xlu0 %63  ;;  %v66_v50 = vpop.xlane.xlu1 %65  ;;  %509 = vmatpush1.bf16.msra.mxu1 %v1710_v36 }
  0x9e   :  { %v76_v51 = vmul.f32 0.0078125, %v64_v49  ;;  %v94_v52 = vmul.f32 %v2050_v46, %v2050_v46  ;;  %v77_v53 = vmul.f32 0.0078125, %v66_v50  ;;  %v95_v60 = vmul.f32 %v2053_v47, %v2053_v47 }
  0xa0   :  { %v2072_v58 = vsub.f32 %v2003_v13, %v76_v51  ;;  %108 = vadd.xlane.f32.xlu1 %v93_v48  ;;  %110 = vadd.xlane.f32.xlu0 %v94_v52  ;;  %v2075_v59 = vsub.f32 %v2005_v14, %v77_v53 }
  0xa2   :  { %v96_v61 = vmul.f32 %v2072_v58, %v2072_v58  ;;  %v97_v0 = vmul.f32 %v2075_v59, %v2075_v59 }
  0xa4   :  { %112 = vadd.xlane.f32.xlu1 %v95_v60  ;;  %114 = vadd.xlane.f32.xlu0 %v96_v61 }
  0xa8   :  { %116 = vadd.xlane.f32.xlu1 %v97_v0 }
 0x11d   :  { %v99_v40 = vpop.xlane.xlu0 %98 }
 0x11e   :  { %v118_v41 = vmul.f32 0.0078125, %v99_v40 }
 0x120   :  { %v128_v42 = vadd.f32 1e-05, %v118_v41 }
 0x121   :  { %v101_v43 = vpop.xlane.xlu1 %100  ;;  %v103_v44 = vpop.xlane.xlu0 %102 }
 0x122   :  { %1743 = vrsqrt.f32 %v128_v42  ;;  %v119_v45 = vmul.f32 0.0078125, %v101_v43  ;;  %v120_v48 = vmul.f32 0.0078125, %v103_v44 }
 0x124   :  { %v129_v49 = vadd.f32 1e-05, %v119_v45  ;;  %v130_v50 = vadd.f32 1e-05, %v120_v48 }
 0x125   :  { %v105_v51 = vpop.xlane.xlu1 %104  ;;  %v107_v52 = vpop.xlane.xlu0 %106 }
 0x126   :  { %1745 = vrsqrt.f32 %v129_v49  ;;  %v121_v53 = vmul.f32 0.0078125, %v105_v51  ;;  %v122_v55 = vmul.f32 0.0078125, %v107_v52 }
 0x127   :  { %1747 = vrsqrt.f32 %v130_v50 }
 0x128   :  { %v131_v54 = vadd.f32 1e-05, %v121_v53  ;;  %v132_v60 = vadd.f32 1e-05, %v122_v55 }
 0x129   :  { %v109_v56 = vpop.xlane.xlu1 %108  ;;  %v111_v62 = vpop.xlane.xlu0 %110 }
 0x12a   :  { %1749 = vrsqrt.f32 %v131_v54  ;;  %v123_v57 = vmul.f32 0.0078125, %v109_v56  ;;  %v124_v6 = vmul.f32 0.0078125, %v111_v62 }
 0x12c   :  { %v133_v61 = vadd.f32 1e-05, %v123_v57  ;;  %v134_v17 = vadd.f32 1e-05, %v124_v6 }
 0x12d   :  { %v113_v63 = vpop.xlane.xlu1 %112  ;;  %v115_v19 = vpop.xlane.xlu0 %114 }
 0x12e   :  { %1751 = vrsqrt.f32 %v133_v61  ;;  %v125_v0 = vmul.f32 0.0078125, %v113_v63  ;;  %v126_v28 = vmul.f32 0.0078125, %v115_v19  ;;  %v1717_v19 = vld [vmem:[%s2550_s5 + $0xf0] sm:$0xff]  }
 0x12f   :  { %v1744_v1 = vpop.eup %1743  ;;  %1753 = vrsqrt.f32 %v132_v60 }
 0x130   :  { %v148_v9 = vmul.f32 %v1744_v1, %v2022_v23  ;;  %v135_v15 = vadd.f32 1e-05, %v125_v0  ;;  %v136_v41 = vadd.f32 1e-05, %v126_v28  ;;  %v1724_v28 = vld [vmem:[%s2550_s5 + $0x20] sm:$0xff]  }
 0x131   :  { %v117_v18 = vpop.xlane.xlu1 %116 }
 0x132   :  { %v165_v21 = vmul.f32 %v2161_v12, %v148_v9  ;;  %1755 = vrsqrt.f32 %v135_v15  ;;  %v127_v23 = vmul.f32 0.0078125, %v117_v18  ;;  %v1716_v18 = vld [vmem:[%s2550_s5 + $0x30] sm:$0xff]  }
 0x133   :  { %v1746_v16 = vpop.eup %1745  ;;  %1757 = vrsqrt.f32 %v134_v17  ;;  %v1715_v17 = vld [vmem:[%s2550_s5 + $0x70] sm:$0xff]  }
 0x134   :  { %v149_v20 = vmul.f32 %v1746_v16, %v2030_v30  ;;  %v1748_v22 = vpop.eup %1747  ;;  %v182_v29 = vadd.f32 %v1391_v25, %v165_v21  ;;  %v137_v34 = vadd.f32 1e-05, %v127_v23  ;;  %v1719_v21 = vld [vmem:[%s2550_s5 + $0x68] sm:$0xff]  }
 0x135   :  { %v150_v33 = vmul.f32 %v1748_v22, %v2025_v24  ;;  %v1721_v22 = vld [vmem:[%s2550_s5 + $0xe8] sm:$0xff]  }
 0x136   :  { %v166_v26 = vmul.f32 %v2161_v12, %v149_v20  ;;  %1759 = vrsqrt.f32 %v137_v34  ;;  %v1718_v20 = vld [vmem:[%s2550_s5 + $0xb0] sm:$0xff]   ;;  %v1722_v23 = vld [vmem:[%s2550_s5 + $0xa8] sm:$0xff]   ;;  %v1730_v34 = vld [vmem:[%s2550_s5 + $0x98] sm:$0xff]  }
 0x137   :  { %v1750_v27 = vpop.eup %1749  ;;  %v167_v42 = vmul.f32 %v2161_v12, %v150_v33  ;;  %1761 = vrsqrt.f32 %v136_v41  ;;  %v1729_v33 = vld [vmem:[%s2550_s5 + $0xd8] sm:$0xff]   ;;  %v1734_v41 = vld [vmem:[%s2550_s5 + $0x90] sm:$0xff]  }
 0x138   :  { %v183_v32 = vadd.f32 %v1391_v25, %v166_v26  ;;  %v151_v30 = vmul.f32 %v1750_v27, %v2033_v31  ;;  %v1723_v26 = vld [vmem:[%s2550_s5 + $0x60] sm:$0xff]  }
 0x139   :  { %v184_v31 = vadd.f32 %v1391_v25, %v167_v42  ;;  %v1725_v27 = vld [vmem:[%s2550_s5 + $0xe0] sm:$0xff]   ;;  %v1735_v42 = vld [vmem:[%s2550_s5 + $0x48] sm:$0xff]  }
 0x13a   :  { %v192_v35 = vpack.c.bf16 %v183_v32, %v182_v29  ;;  %v168_v36 = vmul.f32 %v2161_v12, %v151_v30  ;;  %v1726_v29 = vld [vmem:[%s2550_s5 + $0xa0] sm:$0xff]   ;;  %v1727_v32 = vld [vmem:[%s2550_s5 + $0x58] sm:$0xff]  }
 0x13b   :  { %v1752_v40 = vpop.eup %1751  ;;  %v1728_v30 = vld [vmem:[%s2550_s5 + $0x18] sm:$0xff]  }
 0x13c   :  { %444 = vmatmul.mubr.bf16.vlgmr.msra.gmra.mxu0 %v192_v35  ;;  %527 = vmatmul.mubr.bf16.vlgmr.msra.gmra.mxu1 %v192_v35  ;;  %v1754_v43 = vpop.eup %1753  ;;  %v185_v44 = vadd.f32 %v1391_v25, %v168_v36  ;;  %v153_v24 = vmul.f32 %v1752_v40, %v2043_v39  ;;  %v1731_v35 = vld [vmem:[%s2550_s5 + $0x50] sm:$0xff]  }
 0x13d   :  { %453 = vmatprep.mubr.bf16.mxu0 %v1923_v37  ;;  %536 = vmatprep.mubr.bf16.mxu1 %v1923_v37  ;;  %v152_v45 = vmul.f32 %v1754_v43, %v2040_v38  ;;  %v1733_v36 = vld [vmem:[%s2550_s5 + $0xd0] sm:$0xff]   ;;  %v1737_v43 = vld [vmem:[%s2550_s5 + $0xc8] sm:$0xff]  }
 0x13e   :  { %v193_v48 = vpack.c.bf16 %v185_v44, %v184_v31  ;;  %v170_v49 = vmul.f32 %v2161_v12, %v153_v24  ;;  %v1732_v40 = vld [vmem:[%s2550_s5 + $0x10] sm:$0xff]   ;;  %v1736_v44 = vld [vmem:[%s2550_s5 + $0x8] sm:$0xff]   ;;  %v1739_v31 = vld [vmem:[%s2550_s5 + $0x40] sm:$0xff]  }
 0x13f   :  { %v1756_v50 = vpop.eup %1755  ;;  %v169_v52 = vmul.f32 %v2161_v12, %v152_v45  ;;  %v1738_v24 = vld [vmem:[%s2550_s5 + $0x88] sm:$0xff]   ;;  %v1741_v45 = vld [vmem:[%s2550_s5 + $0xc0] sm:$0xff]  }
 0x140   :  { %v1758_v51 = vpop.eup %1757  ;;  %v187_v53 = vadd.f32 %v1391_v25, %v170_v49  ;;  %v155_v39 = vmul.f32 %v1756_v50, %v2053_v47  ;;  %v1742_v49 = vld [vmem:[%s2550_s5 + $0x80] sm:$0xff]   ;;  %v231_v50 = vlaneseq }
 0x141   :  { %v186_v54 = vadd.f32 %v1391_v25, %v169_v52  ;;  %v154_v55 = vmul.f32 %v1758_v51, %v2050_v46 }
 0x142   :  { %v172_v56 = vmul.f32 %v2161_v12, %v155_v39  ;;  %v232_v51 = vshrl.u32 %v231_v50, 7  ;;  %v229_v39 = vld [vmem:[%s2551_s4] sm:$0xf] }
 0x143   :  { %v194_v38 = vpack.c.bf16 %v187_v53, %v186_v54  ;;  %v1760_v57 = vpop.eup %1759  ;;  %v171_v60 = vmul.f32 %v2161_v12, %v154_v55 }
 0x144   :  { %454 = vmatmul.mubr.bf16.gmra.mxu0 %v193_v48  ;;  %537 = vmatmul.mubr.bf16.gmra.mxu1 %v193_v48  ;;  %v1762_v61 = vpop.eup %1761  ;;  %v189_v62 = vadd.f32 %v1391_v25, %v172_v56  ;;  %v157_v63 = vmul.f32 %v1760_v57, %v2075_v59  ;;  %v1712_v59 = vld [vmem:[%s2550_s5 + $0x38] sm:$0xff]   ;;  %v1740_v48 = vld [vmem:[%s2550_s5] sm:$0xff]   ;;  %v233_v52 = vsub.s32 0, %v232_v51  ;;  %v241_v53 = vsub.s32 2, %v232_v51 }
 0x145   :  { %463 = vmatprep.mubr.bf16.mxu0 %v1923_v37  ;;  %546 = vmatprep.mubr.bf16.mxu1 %v1923_v37  ;;  %v188_v47 = vadd.f32 %v1391_v25, %v171_v60  ;;  %v156_v0 = vmul.f32 %v1762_v61, %v2072_v58  ;;  %v1711_v58 = vld [vmem:[%s2550_s5 + $0x78] sm:$0xff]   ;;  %v237_v54 = vsub.s32 1, %v232_v51  ;;  %v245_v55 = vsub.s32 3, %v232_v51 }
 0x146   :  { %v174_v1 = vmul.f32 %v2161_v12, %v157_v63  ;;  %1570 = vmatprep.subr.bf16.mxu0 %v1711_v58  ;;  %v2294_v56 = vrot.slane %v229_v39, %v241_v53 }
 0x147   :  { %v195_v46 = vpack.c.bf16 %v189_v62, %v188_v47  ;;  %v173_v6 = vmul.f32 %v2161_v12, %v156_v0  ;;  %v1713_v12 = vld [vmem:[%s2550_s5 + $0xf8] sm:$0xff]   ;;  %1571 = vmatpush3.bf16.msra.mxu0 %v1712_v59  ;;  %v2296_v57 = vrot.slane %v229_v39, %v237_v54  ;;  %v2298_v60 = vrot.slane %v229_v39, %v245_v55 }
 0x148   :  { %v191_v9 = vadd.f32 %v1391_v25, %v174_v1  ;;  %1616 = vmatprep.subr.bf16.mxu1 %v1713_v12  ;;  %1572 = vmatprep.subr.bf16.mxu0 %v1715_v17 }
 0x149   :  { %v190_v15 = vadd.f32 %v1391_v25, %v173_v6  ;;  %v1720_v25 = vld [vmem:[%s2550_s5 + $0x28] sm:$0xff]  }
 0x14b   :  { %v196_v16 = vpack.c.bf16 %v191_v9, %v190_v15  ;;  %1573 = vmatpush3.bf16.msra.mxu0 %v1716_v18 }
 0x14c   :  { %464 = vmatmul.mubr.bf16.gmra.mxu0 %v194_v38  ;;  %547 = vmatmul.mubr.bf16.gmra.mxu1 %v194_v38  ;;  %v2292_v38 = vrot.slane %v229_v39, %v233_v52 }
 0x14d   :  { %473 = vmatprep.mubr.bf16.mxu0 %v1923_v37  ;;  %556 = vmatprep.mubr.bf16.mxu1 %v1923_v37 }
 0x14e   :  { %1574 = vmatprep.subr.bf16.mxu0 %v1719_v21 }
 0x14f   :  { %1575 = vmatpush3.bf16.msra.mxu0 %v1720_v25 }
 0x150   :  { %1576 = vmatprep.subr.bf16.mxu0 %v1723_v26 }
 0x153   :  { %1577 = vmatpush3.bf16.msra.mxu0 %v1724_v28 }
 0x154   :  { %474 = vmatmul.mubr.bf16.gmra.mxu0 %v195_v46  ;;  %557 = vmatmul.mubr.bf16.gmra.mxu1 %v195_v46 }
 0x155   :  { %483 = vmatprep.mubr.bf16.mxu0 %v1923_v37  ;;  %566 = vmatprep.mubr.bf16.mxu1 %v1923_v37  ;;  %v1714_v37 = vld [vmem:[%s2550_s5 + $0xb8] sm:$0xff]  }
 0x156   :  { %1617 = vmatpush3.bf16.msra.mxu1 %v1714_v37  ;;  %1578 = vmatprep.subr.bf16.mxu0 %v1727_v32 }
 0x157   :  { %1618 = vmatprep.subr.bf16.mxu1 %v1717_v19  ;;  %1579 = vmatpush3.bf16.msra.mxu0 %v1728_v30 }
 0x158   :  { %1580 = vmatprep.subr.bf16.mxu0 %v1731_v35 }
 0x15a   :  { %1619 = vmatpush3.bf16.msra.mxu1 %v1718_v20 }
 0x15b   :  { %1620 = vmatprep.subr.bf16.mxu1 %v1721_v22  ;;  %1581 = vmatpush3.bf16.msra.mxu0 %v1732_v40 }
 0x15c   :  { %484 = vmatmul.mubr.bf16.gmra.mxu0 %v196_v16  ;;  %567 = vmatmul.mubr.bf16.gmra.mxu1 %v196_v16 }
 0x15d   :  { %1582 = vmatprep.subr.bf16.mxu0 %v1735_v42 }
 0x15e   :  { %1621 = vmatpush3.bf16.msra.mxu1 %v1722_v23 }
 0x15f   :  { %1622 = vmatprep.subr.bf16.mxu1 %v1725_v27  ;;  %1583 = vmatpush3.bf16.msra.mxu0 %v1736_v44 }
 0x160   :  { %1584 = vmatprep.subr.bf16.mxu0 %v1739_v31 }
 0x162   :  { %1623 = vmatpush3.bf16.msra.mxu1 %v1726_v29 }
 0x163   :  { %1624 = vmatprep.subr.bf16.mxu1 %v1729_v33  ;;  %1585 = vmatpush3.bf16.msra.mxu0 %v1740_v48 }
 0x166   :  { %1625 = vmatpush3.bf16.msra.mxu1 %v1730_v34 }
 0x167   :  { %1626 = vmatprep.subr.bf16.mxu1 %v1733_v36 }
 0x16a   :  { %1627 = vmatpush3.bf16.msra.mxu1 %v1734_v41 }
 0x16b   :  { %1628 = vmatprep.subr.bf16.mxu1 %v1737_v43 }
 0x16e   :  { %1629 = vmatpush3.bf16.msra.mxu1 %v1738_v24 }
 0x16f   :  { %1630 = vmatprep.subr.bf16.mxu1 %v1741_v45 }
 0x172   :  { %1631 = vmatpush3.bf16.msra.mxu1 %v1742_v49 }
 0x1fc   :  { %v445_v61 = vpop.f32.mrf.mxu0  ;;  %v528_v62 = vpop.f32.mrf.mxu1 }
 0x1fd   :  { %v2301_v63 = vadd.f32 %v445_v61, %v2292_v38  ;;  %v2304_v47 = vadd.f32 %v528_v62, %v2294_v56 }
 0x1fe   :  { %v447_v0 = vpop.f32.mrf.mxu0  ;;  %v530_v46 = vpop.f32.mrf.mxu1 }
 0x1ff   :  { %v1424_v1 = vmul.f32 -1.702, %v2301_v63  ;;  %v1426_v6 = vmul.f32 -1.702, %v2304_v47  ;;  %v2309_v9 = vadd.f32 %v447_v0, %v2296_v57  ;;  %v2312_v15 = vadd.f32 %v530_v46, %v2298_v60 }
 0x200   :  { %v449_v16 = vpop.f32.mrf.mxu0  ;;  %v532_v58 = vpop.f32.mrf.mxu1 }
 0x201   :  { %v657_v59 = vmul.f32 1.442695, %v1424_v1  ;;  %v661_v12 = vmul.f32 1.442695, %v1426_v6  ;;  %v1425_v37 = vmul.f32 -1.702, %v2309_v9  ;;  %v2316_v17 = vadd.f32 %v449_v16, %v2292_v38 }
 0x202   :  { %v1427_v18 = vmul.f32 -1.702, %v2312_v15  ;;  %v2320_v19 = vadd.f32 %v532_v58, %v2294_v56  ;;  %v451_v20 = vpop.f32.mrf.mxu0  ;;  %v534_v21 = vpop.f32.mrf.mxu1 }
 0x203   :  { %1763 = vpow2.f32 %v657_v59  ;;  %v659_v22 = vmul.f32 1.442695, %v1425_v37  ;;  %v1428_v25 = vmul.f32 -1.702, %v2316_v17  ;;  %v2324_v23 = vadd.f32 %v451_v20, %v2296_v57 }
 0x204   :  { %1765 = vpow2.f32 %v661_v12  ;;  %v663_v26 = vmul.f32 1.442695, %v1427_v18  ;;  %v1430_v27 = vmul.f32 -1.702, %v2320_v19  ;;  %v2328_v28 = vadd.f32 %v534_v21, %v2298_v60  ;;  %v455_v29 = vpop.f32.mrf.mxu0  ;;  %v538_v32 = vpop.f32.mrf.mxu1 }
 0x205   :  { %1767 = vpow2.f32 %v659_v22  ;;  %v665_v33 = vmul.f32 1.442695, %v1428_v25  ;;  %v1429_v30 = vmul.f32 -1.702, %v2324_v23  ;;  %v2332_v34 = vadd.f32 %v455_v29, %v2292_v38 }
 0x206   :  { %1769 = vpow2.f32 %v663_v26  ;;  %v669_v35 = vmul.f32 1.442695, %v1430_v27  ;;  %v1431_v36 = vmul.f32 -1.702, %v2328_v28  ;;  %v2336_v40 = vadd.f32 %v538_v32, %v2294_v56  ;;  %v457_v41 = vpop.f32.mrf.mxu0  ;;  %v540_v42 = vpop.f32.mrf.mxu1 }
 0x207   :  { %1771 = vpow2.f32 %v665_v33  ;;  %v667_v43 = vmul.f32 1.442695, %v1429_v30  ;;  %v1432_v44 = vmul.f32 -1.702, %v2332_v34  ;;  %v2340_v24 = vadd.f32 %v457_v41, %v2296_v57 }
 0x208   :  { %1773 = vpow2.f32 %v669_v35  ;;  %v671_v31 = vmul.f32 1.442695, %v1431_v36  ;;  %v1434_v45 = vmul.f32 -1.702, %v2336_v40  ;;  %v2344_v48 = vadd.f32 %v540_v42, %v2298_v60  ;;  %v459_v49 = vpop.f32.mrf.mxu0  ;;  %v542_v50 = vpop.f32.mrf.mxu1 }
 0x209   :  { %1775 = vpow2.f32 %v667_v43  ;;  %v673_v51 = vmul.f32 1.442695, %v1432_v44  ;;  %v1433_v52 = vmul.f32 -1.702, %v2340_v24  ;;  %v2348_v53 = vadd.f32 %v459_v49, %v2292_v38 }
 0x20a   :  { %1777 = vpow2.f32 %v671_v31  ;;  %v677_v39 = vmul.f32 1.442695, %v1434_v45  ;;  %v1435_v54 = vmul.f32 -1.702, %v2344_v48  ;;  %v2352_v55 = vadd.f32 %v542_v50, %v2294_v56  ;;  %v461_v61 = vpop.f32.mrf.mxu0  ;;  %v544_v62 = vpop.f32.mrf.mxu1 }
 0x20b   :  { %1779 = vpow2.f32 %v673_v51  ;;  %v675_v0 = vmul.f32 1.442695, %v1433_v52  ;;  %v1436_v46 = vmul.f32 -1.702, %v2348_v53  ;;  %v2356_v1 = vadd.f32 %v461_v61, %v2296_v57 }
 0x20c   :  { %1781 = vpow2.f32 %v677_v39  ;;  %v679_v6 = vmul.f32 1.442695, %v1435_v54  ;;  %v1438_v16 = vmul.f32 -1.702, %v2352_v55  ;;  %v2360_v58 = vadd.f32 %v544_v62, %v2298_v60  ;;  %v465_v59 = vpop.f32.mrf.mxu0  ;;  %v548_v12 = vpop.f32.mrf.mxu1 }
 0x20d   :  { %1783 = vpow2.f32 %v675_v0  ;;  %v681_v37 = vmul.f32 1.442695, %v1436_v46  ;;  %v1437_v18 = vmul.f32 -1.702, %v2356_v1  ;;  %v2365_v31 = vadd.f32 %v465_v59, %v2292_v38 }
 0x20e   :  { %1785 = vpow2.f32 %v679_v6  ;;  %v685_v20 = vmul.f32 1.442695, %v1438_v16  ;;  %v1439_v21 = vmul.f32 -1.702, %v2360_v58  ;;  %v467_v22 = vpop.f32.mrf.mxu0  ;;  %v550_v25 = vpop.f32.mrf.mxu1  ;;  %v2368_v39 = vadd.f32 %v548_v12, %v2294_v56 }
 0x20f   :  { %1787 = vpow2.f32 %v681_v37  ;;  %v683_v26 = vmul.f32 1.442695, %v1437_v18  ;;  %v1440_v6 = vmul.f32 -1.702, %v2365_v31  ;;  %v2372_v18 = vadd.f32 %v467_v22, %v2296_v57 }
 0x210   :  { %v1764_v27 = vpop.eup %1763  ;;  %1789 = vpow2.f32 %v685_v20  ;;  %v687_v29 = vmul.f32 1.442695, %v1439_v21  ;;  %v469_v32 = vpop.f32.mrf.mxu0  ;;  %v1442_v21 = vmul.f32 -1.702, %v2368_v39 }
 0x211   :  { %v552_v33 = vpop.f32.mrf.mxu1  ;;  %v1766_v30 = vpop.eup %1765  ;;  %v737_v35 = vadd.f32 1.0, %v1764_v27  ;;  %1791 = vpow2.f32 %v683_v26 }
 0x212   :  { %v1768_v36 = vpop.eup %1767  ;;  %v739_v41 = vadd.f32 1.0, %v1766_v30  ;;  %1793 = vpow2.f32 %v687_v29  ;;  %v471_v42 = vpop.f32.mrf.mxu0  ;;  %v2376_v29 = vadd.f32 %v550_v25, %v2298_v60 }
 0x213   :  { %v1770_v43 = vpop.eup %1769  ;;  %1795 = vrcp.f32 %v737_v35  ;;  %v738_v44 = vadd.f32 1.0, %v1768_v36  ;;  %v554_v45 = vpop.f32.mrf.mxu1 }
 0x214   :  { %v1772_v49 = vpop.eup %1771  ;;  %1797 = vrcp.f32 %v739_v41  ;;  %v740_v50 = vadd.f32 1.0, %v1770_v43  ;;  %v475_v62 = vpop.f32.mrf.mxu0  ;;  %v689_v41 = vmul.f32 1.442695, %v1440_v6  ;;  %v2379_v43 = vadd.f32 %v469_v32, %v2292_v38 }
 0x215   :  { %v1774_v51 = vpop.eup %1773  ;;  %1799 = vrcp.f32 %v738_v44  ;;  %v741_v52 = vadd.f32 1.0, %v1772_v49  ;;  %v558_v16 = vpop.f32.mrf.mxu1  ;;  %v2390_v6 = vadd.f32 %v554_v45, %v2298_v60 }
 0x216   :  { %v1776_v54 = vpop.eup %1775  ;;  %1801 = vrcp.f32 %v740_v50  ;;  %v743_v61 = vadd.f32 1.0, %v1774_v51  ;;  %v477_v30 = vpop.f32.mrf.mxu0  ;;  %v1441_v50 = vmul.f32 -1.702, %v2372_v18  ;;  %v2383_v51 = vadd.f32 %v552_v33, %v2294_v56 }
 0x217   :  { %v1778_v0 = vpop.eup %1777  ;;  %1803 = vrcp.f32 %v741_v52  ;;  %v742_v46 = vadd.f32 1.0, %v1776_v54  ;;  %v560_v22 = vpop.f32.mrf.mxu1  ;;  %v693_v54 = vmul.f32 1.442695, %v1442_v21 }
 0x218   :  { %v1780_v59 = vpop.eup %1779  ;;  %1805 = vrcp.f32 %v743_v61  ;;  %v744_v37 = vadd.f32 1.0, %v1778_v0  ;;  %v2386_v61 = vadd.f32 %v471_v42, %v2296_v57 }
 0x219   :  { %v1782_v20 = vpop.eup %1781  ;;  %1807 = vrcp.f32 %v742_v46  ;;  %v745_v12 = vadd.f32 1.0, %v1780_v59  ;;  %v1443_v46 = vmul.f32 -1.702, %v2376_v29  ;;  %v479_v59 = vpop.f32.mrf.mxu0 }
 0x21a   :  { %v1784_v26 = vpop.eup %1783  ;;  %1809 = vrcp.f32 %v744_v37  ;;  %v747_v27 = vadd.f32 1.0, %v1782_v20  ;;  %v1444_v20 = vmul.f32 -1.702, %v2379_v43  ;;  %v562_v21 = vpop.f32.mrf.mxu1 }
 0x21b   :  { %v1786_v35 = vpop.eup %1785  ;;  %1811 = vrcp.f32 %v745_v12  ;;  %v746_v36 = vadd.f32 1.0, %v1784_v26  ;;  %v2394_v12 = vadd.f32 %v475_v62, %v2292_v38  ;;  %v695_v62 = vmul.f32 1.442695, %v1443_v46 }
 0x21c   :  { %v1788_v44 = vpop.eup %1787  ;;  %1813 = vrcp.f32 %v747_v27  ;;  %v748_v49 = vadd.f32 1.0, %v1786_v35  ;;  %v1446_v27 = vmul.f32 -1.702, %v2383_v51  ;;  %v2398_v35 = vadd.f32 %v558_v16, %v2294_v56  ;;  %v564_v14 = vpop.f32.mrf.mxu1 }
 0x21d   :  { %v1790_v52 = vpop.eup %1789  ;;  %1815 = vrcp.f32 %v746_v36  ;;  %v749_v25 = vadd.f32 1.0, %v1788_v44  ;;  %2578 = vst [vmem:[#allocation12_spill] sm:$0xff] %v2394_v12  ;;  %v691_v36 = vmul.f32 1.442695, %v1441_v50  ;;  %v1445_v44 = vmul.f32 -1.702, %v2386_v61 }
 0x21e   :  { %v1792_v0 = vpop.eup %1791  ;;  %1817 = vrcp.f32 %v748_v49  ;;  %v751_v32 = vadd.f32 1.0, %v1790_v52  ;;  %2579 = vst [vmem:[#allocation13_spill] sm:$0xff] %v2398_v35  ;;  %v2402_v49 = vadd.f32 %v477_v30, %v2296_v57  ;;  %v697_v16 = vmul.f32 1.442695, %v1444_v20 }
 0x21f   :  { %v1794_v37 = vpop.eup %1793  ;;  %1819 = vrcp.f32 %v749_v25  ;;  %v750_v33 = vadd.f32 1.0, %v1792_v0  ;;  %v1447_v25 = vmul.f32 -1.702, %v2390_v6  ;;  %v2406_v0 = vadd.f32 %v560_v22, %v2298_v60 }
 0x220   :  { %v1796_v42 = vpop.eup %1795  ;;  %1821 = vrcp.f32 %v751_v32  ;;  %v752_v26 = vadd.f32 1.0, %v1794_v37  ;;  %v481_v32 = vpop.f32.mrf.mxu0  ;;  %v2410_v50 = vadd.f32 %v479_v59, %v2292_v38  ;;  %v701_v13 = vmul.f32 1.442695, %v1446_v27 }
 0x221   :  { %v1798_v45 = vpop.eup %1797  ;;  %1823 = vrcp.f32 %v750_v33  ;;  %2580 = vst [vmem:[#allocation14_spill] sm:$0xff] %v2406_v0  ;;  %v1448_v33 = vmul.f32 -1.702, %v2394_v12  ;;  %v1450_v46 = vmul.f32 -1.702, %v2398_v35  ;;  %v2418_v20 = vadd.f32 %v481_v32, %v2296_v57 }
 0x222   :  { %v1800_v52 = vpop.eup %1799  ;;  %1825 = vrcp.f32 %v752_v26  ;;  %v2414_v26 = vadd.f32 %v562_v21, %v2294_v56  ;;  %v699_v11 = vmul.f32 1.442695, %v1445_v44  ;;  %v703_v59 = vmul.f32 1.442695, %v1447_v25 }
 0x223   :  { %v1802_v37 = vpop.eup %1801  ;;  %1827 = vpow2.f32 %v689_v41  ;;  %v1449_v41 = vmul.f32 -1.702, %v2402_v49  ;;  %v1451_v8 = vmul.f32 -1.702, %v2406_v0  ;;  %v705_v21 = vmul.f32 1.442695, %v1448_v33 }
 0x224   :  { %v1804_v30 = vpop.eup %1803  ;;  %1829 = vpow2.f32 %v693_v54  ;;  %v2422_v54 = vadd.f32 %v564_v14, %v2298_v60  ;;  %v1452_v7 = vmul.f32 -1.702, %v2410_v50  ;;  %v709_v44 = vmul.f32 1.442695, %v1450_v46 }
 0x225   :  { %v1806_v22 = vpop.eup %1805  ;;  %1831 = vpow2.f32 %v691_v36  ;;  %v1454_v32 = vmul.f32 -1.702, %v2414_v26  ;;  %v1453_v25 = vmul.f32 -1.702, %v2418_v20  ;;  %v711_v14 = vmul.f32 1.442695, %v1451_v8 }
 0x226   :  { %v1808_v10 = vpop.eup %1807  ;;  %1833 = vpow2.f32 %v695_v62  ;;  %2581 = vst [vmem:[#allocation15_spill] sm:$0xff] %v2422_v54  ;;  %v707_v62 = vmul.f32 1.442695, %v1449_v41  ;;  %v713_v4 = vmul.f32 1.442695, %v1452_v7  ;;  %v857_v0 = vmul.f32 %v1796_v42, %v2301_v63  ;;  %v485_v7 = vpop.f32.mrf.mxu0 }
 0x227   :  { %v1810_v27 = vpop.eup %1809  ;;  %1835 = vpow2.f32 %v697_v16  ;;  %v1455_v16 = vmul.f32 -1.702, %v2422_v54  ;;  %v717_v46 = vmul.f32 1.442695, %v1454_v32  ;;  %v715_v41 = vmul.f32 1.442695, %v1453_v25  ;;  %v568_v63 = vpop.f32.mrf.mxu1 }
 0x228   :  { %v2425_v36 = vpop.eup %1811  ;;  %1837 = vpow2.f32 %v701_v13  ;;  %v861_v13 = vmul.f32 %v1804_v30, %v2316_v17  ;;  %v859_v8 = vmul.f32 %v1798_v45, %v2304_v47  ;;  %v858_v17 = vmul.f32 %v1800_v52, %v2309_v9 }
 0x229   :  { %v2428_v5 = vpop.eup %1813  ;;  %1839 = vpow2.f32 %v699_v11  ;;  %v862_v11 = vmul.f32 %v1808_v10, %v2324_v23  ;;  %v863_v30 = vmul.f32 %v1806_v22, %v2320_v19  ;;  %v860_v23 = vmul.f32 %v1802_v37, %v2312_v15 }
 0x22a   :  { %v1816_v3 = vpop.eup %1815  ;;  %1841 = vpow2.f32 %v703_v59  ;;  %v864_v59 = vmul.f32 %v1810_v27, %v2328_v28  ;;  %v897_v42 = vpack.c.bf16 %v861_v13, %v857_v0  ;;  %v570_v0 = vpop.f32.mrf.mxu1 }
 0x22b   :  { %v1818_v33 = vpop.eup %1817  ;;  %1843 = vpow2.f32 %v705_v21  ;;  %v719_v21 = vmul.f32 1.442695, %v1455_v16  ;;  %v866_v45 = vmul.f32 %v1816_v3, %v2340_v24  ;;  %v898_v32 = vpack.c.bf16 %v862_v11, %v858_v17 }
 0x22c   :  { %v1820_v2 = vpop.eup %1819  ;;  %1845 = vpow2.f32 %v709_v44  ;;  %v868_v19 = vmul.f32 %v1818_v33, %v2344_v48  ;;  %v899_v22 = vpack.c.bf16 %v863_v30, %v859_v8  ;;  %v2445_v24 = vadd.f32 %v485_v7, %v2292_v38  ;;  %v572_v8 = vpop.f32.mrf.mxu1 }
 0x22d   :  { %v1822_v35 = vpop.eup %1821  ;;  %1847 = vpow2.f32 %v707_v62  ;;  %1212 = vmatprep.mubr.bf16.mxu0 %v898_v32  ;;  %v867_v17 = vmul.f32 %v2428_v5, %v2336_v40 }
 0x22e   :  { %v1824_v12 = vpop.eup %1823  ;;  %1849 = vpow2.f32 %v711_v14  ;;  %1213 = vmatmul.mubr.bf16.vlgmr.msra.gmra.mxu0 %v897_v42  ;;  %v869_v14 = vmul.f32 %v1820_v2, %v2348_v53  ;;  %v1456_v2 = vmul.f32 -1.702, %v2445_v24  ;;  %v574_v5 = vpop.f32.mrf.mxu1 }
 0x22f   :  { %v1826_v54 = vpop.eup %1825  ;;  %v870_v44 = vmul.f32 %v1824_v12, %v2356_v1  ;;  %1851 = vpow2.f32 %v713_v4  ;;  %v487_v4 = vpop.f32.mrf.mxu0  ;;  %v900_v1 = vpack.c.bf16 %v864_v59, %v860_v23 }
 0x230   :  { %v1828_v10 = vpop.eup %1827  ;;  %v872_v47 = vmul.f32 %v1826_v54, %v2360_v58  ;;  %1853 = vpow2.f32 %v717_v46  ;;  %v871_v46 = vmul.f32 %v1822_v35, %v2352_v55  ;;  %v2458_v35 = vadd.f32 %v487_v4, %v2296_v57 }
 0x231   :  { %v1830_v28 = vpop.eup %1829  ;;  %v753_v27 = vadd.f32 1.0, %v1828_v10  ;;  %1855 = vpow2.f32 %v715_v41  ;;  %v902_v58 = vpack.c.bf16 %v870_v44, %v866_v45  ;;  %1285 = vmatprep.mubr.bf16.mxu1 %v900_v1  ;;  %v489_v33 = vpop.f32.mrf.mxu0  ;;  %v2450_v41 = vadd.f32 %v568_v63, %v2294_v56 }
 0x232   :  { %v1832_v9 = vpop.eup %1831  ;;  %v755_v52 = vadd.f32 1.0, %v1830_v28  ;;  %1857 = vpow2.f32 %v719_v21  ;;  %v904_v48 = vpack.c.bf16 %v872_v47, %v868_v19  ;;  %1286 = vmatmul.mubr.bf16.vlgmr.msra.gmra.mxu1 %v899_v22  ;;  %v865_v21 = vmul.f32 %v2425_v36, %v2332_v34 }
 0x233   :  { %v1834_v12 = vpop.eup %1833  ;;  %1859 = vrcp.f32 %v753_v27  ;;  %v754_v15 = vadd.f32 1.0, %v1832_v9  ;;  %1220 = vmatprep.mubr.bf16.mxu0 %v902_v58  ;;  %v2461_v63 = vadd.f32 %v570_v0, %v2298_v60  ;;  %v491_v34 = vpop.f32.mrf.mxu0  ;;  %v2464_v42 = vadd.f32 %v489_v33, %v2292_v38 }
 0x234   :  { %v1836_v37 = vpop.eup %1835  ;;  %1861 = vrcp.f32 %v755_v52  ;;  %v756_v3 = vadd.f32 1.0, %v1834_v12  ;;  %1293 = vmatprep.mubr.bf16.mxu1 %v904_v48  ;;  %v901_v36 = vpack.c.bf16 %v869_v14, %v865_v21  ;;  %v903_v40 = vpack.c.bf16 %v871_v46, %v867_v17 }
 0x235   :  { %v1838_v54 = vpop.eup %1837  ;;  %1863 = vrcp.f32 %v754_v15  ;;  %v757_v62 = vadd.f32 1.0, %v1836_v37  ;;  %v1458_v45 = vmul.f32 -1.702, %v2450_v41  ;;  %v2468_v27 = vadd.f32 %v572_v8, %v2294_v56 }
 0x236   :  { %v1840_v25 = vpop.eup %1839  ;;  %1865 = vrcp.f32 %v756_v3  ;;  %v759_v16 = vadd.f32 1.0, %v1838_v54  ;;  %1221 = vmatmul.mubr.bf16.gmra.mxu0 %v901_v36  ;;  %v1457_v19 = vmul.f32 -1.702, %v2458_v35  ;;  %v2472_v52 = vadd.f32 %v491_v34, %v2296_v57 }
 0x237   :  { %v1842_v13 = vpop.eup %1841  ;;  %1867 = vrcp.f32 %v757_v62  ;;  %v758_v11 = vadd.f32 1.0, %v1840_v25  ;;  %v1459_v1 = vmul.f32 -1.702, %v2461_v63  ;;  %v2476_v12 = vadd.f32 %v574_v5, %v2298_v60 }
 0x238   :  { %v1844_v59 = vpop.eup %1843  ;;  %1869 = vrcp.f32 %v759_v16  ;;  %v760_v7 = vadd.f32 1.0, %v1842_v13  ;;  %v721_v15 = vmul.f32 1.442695, %v1456_v2  ;;  %v1460_v0 = vmul.f32 -1.702, %v2464_v42 }
 0x239   :  { %v1846_v53 = vpop.eup %1845  ;;  %1871 = vrcp.f32 %v758_v11  ;;  %v761_v55 = vadd.f32 1.0, %v1844_v59  ;;  %v725_v57 = vmul.f32 1.442695, %v1458_v45  ;;  %v1462_v3 = vmul.f32 -1.702, %v2468_v27 }
 0x23a   :  { %v1848_v30 = vpop.eup %1847  ;;  %1873 = vrcp.f32 %v760_v7  ;;  %v763_v44 = vadd.f32 1.0, %v1846_v53  ;;  %1294 = vmatmul.mubr.bf16.gmra.mxu1 %v903_v40  ;;  %v723_v54 = vmul.f32 1.442695, %v1457_v19  ;;  %v1461_v62 = vmul.f32 -1.702, %v2472_v52  ;;  %v2582_v19 = vld [vmem:[#allocation12_spill] sm:$0xff] }
 0x23b   :  { %v1850_v10 = vpop.eup %1849  ;;  %1875 = vrcp.f32 %v761_v55  ;;  %v762_v23 = vadd.f32 1.0, %v1848_v30  ;;  %v727_v60 = vmul.f32 1.442695, %v1459_v1  ;;  %v1463_v14 = vmul.f32 -1.702, %v2476_v12 }
 0x23c   :  { %v1852_v47 = vpop.eup %1851  ;;  %1877 = vrcp.f32 %v763_v44  ;;  %v764_v28 = vadd.f32 1.0, %v1850_v10  ;;  %v729_v33 = vmul.f32 1.442695, %v1460_v0  ;;  %v733_v46 = vmul.f32 1.442695, %v1462_v3  ;;  %v2585_v0 = vld [vmem:[#allocation13_spill] sm:$0xff] }
 0x23d   :  { %v1854_v32 = vpop.eup %1853  ;;  %1879 = vrcp.f32 %v762_v23  ;;  %v765_v9 = vadd.f32 1.0, %v1852_v47  ;;  %v731_v8 = vmul.f32 1.442695, %v1461_v62  ;;  %v735_v7 = vmul.f32 1.442695, %v1463_v14 }
 0x23e   :  { %v1856_v38 = vpop.eup %1855  ;;  %1881 = vrcp.f32 %v764_v28  ;;  %v767_v4 = vadd.f32 1.0, %v1854_v32 }
 0x23f   :  { %v1858_v56 = vpop.eup %1857  ;;  %1883 = vrcp.f32 %v765_v9  ;;  %v766_v22 = vadd.f32 1.0, %v1856_v38 }
 0x240   :  { %v1860_v58 = vpop.eup %1859  ;;  %1885 = vrcp.f32 %v767_v4  ;;  %v768_v37 = vadd.f32 1.0, %v1858_v56  ;;  %v2583_v4 = vld [vmem:[#allocation14_spill] sm:$0xff]  ;;  %v2584_v56 = vld [vmem:[#allocation15_spill] sm:$0xff] }
 0x241   :  { %v1862_v48 = vpop.eup %1861  ;;  %1887 = vrcp.f32 %v766_v22  ;;  %v873_v44 = vmul.f32 %v1860_v58, %v2365_v31 }
 0x242   :  { %v1864_v25 = vpop.eup %1863  ;;  %1889 = vrcp.f32 %v768_v37 }
 0x243   :  { %v1866_v16 = vpop.eup %1865  ;;  %1891 = vpow2.f32 %v721_v15  ;;  %v874_v53 = vmul.f32 %v1864_v25, %v2372_v18 }
 0x244   :  { %v1868_v13 = vpop.eup %1867  ;;  %1893 = vpow2.f32 %v725_v57  ;;  %v876_v34 = vmul.f32 %v1866_v16, %v2376_v29 }
 0x245   :  { %v1870_v11 = vpop.eup %1869  ;;  %1895 = vpow2.f32 %v723_v54  ;;  %v877_v21 = vmul.f32 %v1868_v13, %v2379_v43  ;;  %v875_v43 = vmul.f32 %v1862_v48, %v2368_v39 }
 0x246   :  { %v1872_v59 = vpop.eup %1871  ;;  %1897 = vpow2.f32 %v727_v60  ;;  %v879_v17 = vmul.f32 %v1870_v11, %v2383_v51 }
 0x247   :  { %v1874_v2 = vpop.eup %1873  ;;  %v878_v55 = vmul.f32 %v1872_v59, %v2386_v61  ;;  %1899 = vpow2.f32 %v729_v33  ;;  %v905_v51 = vpack.c.bf16 %v877_v21, %v873_v44 }
 0x248   :  { %v1876_v30 = vpop.eup %1875  ;;  %v880_v36 = vmul.f32 %v1874_v2, %v2390_v6  ;;  %1901 = vpow2.f32 %v733_v46  ;;  %v907_v61 = vpack.c.bf16 %v879_v17, %v875_v43 }
 0x249   :  { %v1878_v10 = vpop.eup %1877  ;;  %1903 = vpow2.f32 %v731_v8  ;;  %v906_v23 = vpack.c.bf16 %v878_v55, %v874_v53  ;;  %v881_v38 = vmul.f32 %v1876_v30, %v2582_v19 }
 0x24a   :  { %v1880_v5 = vpop.eup %1879  ;;  %1905 = vpow2.f32 %v735_v7  ;;  %v908_v18 = vpack.c.bf16 %v880_v36, %v876_v34  ;;  %v883_v58 = vmul.f32 %v1878_v10, %v2585_v0 }
 0x24b   :  { %v1882_v40 = vpop.eup %1881  ;;  %1228 = vmatprep.mubr.bf16.mxu0 %v906_v23  ;;  %v882_v39 = vmul.f32 %v1880_v5, %v2402_v49 }
 0x24c   :  { %v1884_v47 = vpop.eup %1883  ;;  %1301 = vmatprep.mubr.bf16.mxu1 %v908_v18  ;;  %1229 = vmatmul.mubr.bf16.gmra.mxu0 %v905_v51  ;;  %v884_v1 = vmul.f32 %v1882_v40, %v2583_v4 }
 0x24d   :  { %v1886_v31 = vpop.eup %1885  ;;  %1302 = vmatmul.mubr.bf16.gmra.mxu1 %v907_v61  ;;  %v885_v6 = vmul.f32 %v1884_v47, %v2410_v50 }
 0x24e   :  { %v1888_v29 = vpop.eup %1887  ;;  %v887_v45 = vmul.f32 %v1886_v31, %v2414_v26 }
 0x24f   :  { %v1890_v28 = vpop.eup %1889  ;;  %v886_v32 = vmul.f32 %v1888_v29, %v2418_v20  ;;  %v909_v49 = vpack.c.bf16 %v885_v6, %v881_v38 }
 0x250   :  { %v1892_v9 = vpop.eup %1891  ;;  %v888_v22 = vmul.f32 %v1890_v28, %v2584_v56  ;;  %v911_v20 = vpack.c.bf16 %v887_v45, %v883_v58  ;;  %v2587_v58 = vld [vmem:[#allocation4_spill] sm:$0xff] }
 0x251   :  { %v1894_v15 = vpop.eup %1893  ;;  %v769_v37 = vadd.f32 1.0, %v1892_v9  ;;  %v910_v57 = vpack.c.bf16 %v886_v32, %v882_v39 }
 0x252   :  { %v1896_v50 = vpop.eup %1895  ;;  %v771_v3 = vadd.f32 1.0, %v1894_v15  ;;  %v912_v48 = vpack.c.bf16 %v888_v22, %v884_v1  ;;  %v2586_v15 = vld [vmem:[#allocation2_spill] sm:$0xff] }
 0x253   :  { %v1898_v54 = vpop.eup %1897  ;;  %1907 = vrcp.f32 %v769_v37  ;;  %v770_v26 = vadd.f32 1.0, %v1896_v50  ;;  %1236 = vmatprep.mubr.bf16.mxu0 %v910_v57 }
 0x254   :  { %v1900_v62 = vpop.eup %1899  ;;  %1909 = vrcp.f32 %v771_v3  ;;  %v772_v25 = vadd.f32 1.0, %v1898_v54  ;;  %1309 = vmatprep.mubr.bf16.mxu1 %v912_v48  ;;  %1237 = vmatmul.mubr.bf16.gmra.mxu0 %v909_v49 }
 0x255   :  { %v1902_v60 = vpop.eup %1901  ;;  %1911 = vrcp.f32 %v770_v26  ;;  %v773_v14 = vadd.f32 1.0, %v1900_v62  ;;  %1310 = vmatmul.mubr.bf16.gmra.mxu1 %v911_v20 }
 0x256   :  { %v1904_v16 = vpop.eup %1903  ;;  %1913 = vrcp.f32 %v772_v25  ;;  %v775_v33 = vadd.f32 1.0, %v1902_v60 }
 0x257   :  { %v1906_v13 = vpop.eup %1905  ;;  %1915 = vrcp.f32 %v773_v14  ;;  %v774_v46 = vadd.f32 1.0, %v1904_v16  ;;  %v2588_v14 = vld [vmem:[#allocation3_spill] sm:$0xff] }
 0x258   :  { %1917 = vrcp.f32 %v775_v33  ;;  %v776_v11 = vadd.f32 1.0, %v1906_v13  ;;  %v2589_v33 = vld [vmem:[#allocation5_spill] sm:$0xff] }
 0x259   :  { %1919 = vrcp.f32 %v774_v46 }
 0x25a   :  { %1921 = vrcp.f32 %v776_v11 }
 0x260   :  { %v1908_v8 = vpop.eup %1907 }
 0x261   :  { %v1910_v59 = vpop.eup %1909  ;;  %v889_v10 = vmul.f32 %v1908_v8, %v2445_v24  ;;  %v2509_v24 = vld [vmem:[%s2552_s6] ss:$0 sm:$0xff] }
 0x262   :  { %v1912_v21 = vpop.eup %1911  ;;  %v891_v5 = vmul.f32 %v1910_v59, %v2450_v41 }
 0x263   :  { %v1914_v7 = vpop.eup %1913  ;;  %v890_v44 = vmul.f32 %v1912_v21, %v2458_v35 }
 0x264   :  { %v1916_v2 = vpop.eup %1915  ;;  %v892_v43 = vmul.f32 %v1914_v7, %v2461_v63 }
 0x265   :  { %v1918_v53 = vpop.eup %1917  ;;  %v893_v55 = vmul.f32 %v1916_v2, %v2464_v42 }
 0x266   :  { %v1920_v17 = vpop.eup %1919  ;;  %v895_v34 = vmul.f32 %v1918_v53, %v2468_v27 }
 0x267   :  { %v1922_v30 = vpop.eup %1921  ;;  %v894_v36 = vmul.f32 %v1920_v17, %v2472_v52  ;;  %v913_v40 = vpack.c.bf16 %v893_v55, %v889_v10 }
 0x268   :  { %v896_v23 = vmul.f32 %v1922_v30, %v2476_v12  ;;  %v915_v42 = vpack.c.bf16 %v895_v34, %v891_v5 }
 0x269   :  { %v914_v18 = vpack.c.bf16 %v894_v36, %v890_v44 }
 0x26a   :  { %v916_v51 = vpack.c.bf16 %v896_v23, %v892_v43 }
 0x26b   :  { %1244 = vmatprep.mubr.bf16.mxu0 %v914_v18 }
 0x26c   :  { %1317 = vmatprep.mubr.bf16.mxu1 %v916_v51  ;;  %1245 = vmatmul.mubr.bf16.gmra.mxu0 %v913_v40 }
 0x26d   :  { %1318 = vmatmul.mubr.bf16.gmra.mxu1 %v915_v42 }
 0x2ee   :  { %v1586_v35 = vpop.f32.mrf.mxu0 }
 0x2f0   :  { %v1587_v63 = vpop.f32.mrf.mxu0 }
 0x2f1   :  { %v1588_v52 = vadd.f32 %v1587_v63, %v1586_v35 }
 0x2f2   :  { %v1632_v27 = vpop.f32.mrf.mxu1  ;;  %v1589_v61 = vpop.f32.mrf.mxu0 }
 0x2f3   :  { %v1215_v41 = vadd.f32 %v1588_v52, %v2509_v24  ;;  %v2591_v52 = vld [vmem:[#allocation7_spill] sm:$0xff] }
 0x2f4   :  { %v1633_v12 = vpop.f32.mrf.mxu1  ;;  %v1590_v31 = vpop.f32.mrf.mxu0 }
 0x2f5   :  { %v1634_v29 = vadd.f32 %v1633_v12, %v1632_v27  ;;  %v1591_v6 = vadd.f32 %v1590_v31, %v1589_v61  ;;  %v2590_v27 = vld [vmem:[#allocation6_spill] sm:$0xff] }
 0x2f6   :  { %v1635_v47 = vpop.f32.mrf.mxu1  ;;  %v1592_v39 = vpop.f32.mrf.mxu0 }
 0x2f7   :  { %v1288_v45 = vadd.f32 %v1634_v29, %v1215_v41  ;;  %v1218_v32 = vadd.f32 %v1591_v6, %v2509_v24 }
 0x2f8   :  { %v1636_v28 = vpop.f32.mrf.mxu1  ;;  %v1593_v38 = vpop.f32.mrf.mxu0 }
 0x2f9   :  { %v1637_v9 = vadd.f32 %v1636_v28, %v1635_v47  ;;  %v1594_v1 = vadd.f32 %v1593_v38, %v1592_v39  ;;  %v1326_v0 = vadd.f32 %v2586_v15, %v1288_v45 }
 0x2fa   :  { %v1638_v19 = vpop.f32.mrf.mxu1  ;;  %v1595_v22 = vpop.f32.mrf.mxu0 }
 0x2fb   :  { %v1291_v4 = vadd.f32 %v1637_v9, %v1218_v32  ;;  %v1223_v57 = vadd.f32 %v1594_v1, %v2509_v24 }
 0x2fc   :  { %v1639_v56 = vpop.f32.mrf.mxu1  ;;  %v1596_v3 = vpop.f32.mrf.mxu0 }
 0x2fd   :  { %v1327_v37 = vadd.f32 %v2587_v58, %v1291_v4  ;;  %v1640_v49 = vadd.f32 %v1639_v56, %v1638_v19  ;;  %v1597_v54 = vadd.f32 %v1596_v3, %v1595_v22  ;;  %v2592_v19 = vld [vmem:[#allocation8_spill] sm:$0xff]  ;;  %v2593_v4 = vld [vmem:[#allocation9_spill] sm:$0xff] }
 0x2fe   :  { %v1641_v50 = vpop.f32.mrf.mxu1 }
 0x2ff   :  { %v1540_v48 = vpack.c.bf16 %v1327_v37, %v1326_v0  ;;  %v1296_v20 = vadd.f32 %v1640_v49, %v1223_v57  ;;  %v1226_v62 = vadd.f32 %v1597_v54, %v2509_v24 }
 0x300   :  { %v1642_v26 = vpop.f32.mrf.mxu1 }
 0x301   :  { %1541 = vst [vmem:[%s2553_s7] sm:$0xff] %v1540_v48   ;;  %v1643_v25 = vadd.f32 %v1642_v26, %v1641_v50  ;;  %v1328_v16 = vadd.f32 %v2588_v14, %v1296_v20  ;;  %v2594_v14 = vld [vmem:[#allocation10_spill] sm:$0xff] }
 0x303   :  { %v1299_v60 = vadd.f32 %v1643_v25, %v1226_v62 }
 0x305   :  { %v1329_v13 = vadd.f32 %v2589_v33, %v1299_v60  ;;  %v2595_v33 = vld [vmem:[#allocation11_spill] sm:$0xff] }
 0x307   :  { %v1545_v46 = vpack.c.bf16 %v1329_v13, %v1328_v16 }
 0x309   :  { %1566 = vst [vmem:[%s2553_s7 + $0x8] sm:$0xff] %v1545_v46  }
 0x30c   :  { %v1598_v11 = vpop.f32.mrf.mxu0 }
 0x30d   :  { %v1644_v8 = vpop.f32.mrf.mxu1 }
 0x30e   :  { %v1599_v59 = vpop.f32.mrf.mxu0 }
 0x30f   :  { %v1600_v21 = vadd.f32 %v1599_v59, %v1598_v11  ;;  %v1645_v7 = vpop.f32.mrf.mxu1 }
 0x310   :  { %v1601_v2 = vpop.f32.mrf.mxu0  ;;  %v1646_v30 = vadd.f32 %v1645_v7, %v1644_v8 }
 0x311   :  { %v1231_v53 = vadd.f32 %v1600_v21, %v2509_v24  ;;  %v1647_v17 = vpop.f32.mrf.mxu1 }
 0x312   :  { %v1602_v55 = vpop.f32.mrf.mxu0 }
 0x313   :  { %v1603_v44 = vadd.f32 %v1602_v55, %v1601_v2  ;;  %v1648_v34 = vpop.f32.mrf.mxu1  ;;  %v1304_v10 = vadd.f32 %v1646_v30, %v1231_v53 }
 0x314   :  { %v1604_v36 = vpop.f32.mrf.mxu0  ;;  %v1649_v23 = vadd.f32 %v1648_v34, %v1647_v17 }
 0x315   :  { %v1234_v43 = vadd.f32 %v1603_v44, %v2509_v24  ;;  %v1650_v5 = vpop.f32.mrf.mxu1  ;;  %v1330_v63 = vadd.f32 %v2590_v27, %v1304_v10 }
 0x316   :  { %v1605_v18 = vpop.f32.mrf.mxu0 }
 0x317   :  { %v1307_v51 = vadd.f32 %v1649_v23, %v1234_v43  ;;  %v1606_v40 = vadd.f32 %v1605_v18, %v1604_v36  ;;  %v1651_v42 = vpop.f32.mrf.mxu1 }
 0x318   :  { %v1607_v35 = vpop.f32.mrf.mxu0  ;;  %v1652_v29 = vadd.f32 %v1651_v42, %v1650_v5 }
 0x319   :  { %v1331_v12 = vadd.f32 %v2591_v52, %v1307_v51  ;;  %v1239_v61 = vadd.f32 %v1606_v40, %v2509_v24  ;;  %v1653_v41 = vpop.f32.mrf.mxu1 }
 0x31a   :  { %v1608_v47 = vpop.f32.mrf.mxu0 }
 0x31b   :  { %v1550_v31 = vpack.c.bf16 %v1331_v12, %v1330_v63  ;;  %v1609_v6 = vadd.f32 %v1608_v47, %v1607_v35  ;;  %v1654_v28 = vpop.f32.mrf.mxu1  ;;  %v1312_v39 = vadd.f32 %v1652_v29, %v1239_v61 }
 0x31c   :  { %v1655_v32 = vadd.f32 %v1654_v28, %v1653_v41 }
 0x31d   :  { %1567 = vst [vmem:[%s2553_s7 + $0x10] sm:$0xff] %v1550_v31   ;;  %v1242_v45 = vadd.f32 %v1609_v6, %v2509_v24  ;;  %v1332_v38 = vadd.f32 %v2592_v19, %v1312_v39 }
 0x31f   :  { %v1315_v9 = vadd.f32 %v1655_v32, %v1242_v45 }
 0x321   :  { %v1333_v1 = vadd.f32 %v2593_v4, %v1315_v9 }
 0x323   :  { %v1555_v56 = vpack.c.bf16 %v1333_v1, %v1332_v38 }
 0x325   :  { %1568 = vst [vmem:[%s2553_s7 + $0x18] sm:$0xff] %v1555_v56  }
 0x32c   :  { %v1610_v22 = vpop.f32.mrf.mxu0 }
 0x32d   :  { %v1656_v15 = vpop.f32.mrf.mxu1 }
 0x32e   :  { %v1611_v0 = vpop.f32.mrf.mxu0 }
 0x32f   :  { %v1612_v58 = vadd.f32 %v1611_v0, %v1610_v22  ;;  %v1657_v37 = vpop.f32.mrf.mxu1 }
 0x330   :  { %v1613_v57 = vpop.f32.mrf.mxu0  ;;  %v1658_v49 = vadd.f32 %v1657_v37, %v1656_v15 }
 0x331   :  { %v1247_v50 = vadd.f32 %v1612_v58, %v2509_v24  ;;  %v1659_v3 = vpop.f32.mrf.mxu1 }
 0x332   :  { %v1614_v48 = vpop.f32.mrf.mxu0 }
 0x333   :  { %v1615_v54 = vadd.f32 %v1614_v48, %v1613_v57  ;;  %v1660_v26 = vpop.f32.mrf.mxu1  ;;  %v1320_v20 = vadd.f32 %v1658_v49, %v1247_v50 }
 0x334   :  { %v1661_v25 = vadd.f32 %v1660_v26, %v1659_v3 }
 0x335   :  { %v1250_v62 = vadd.f32 %v1615_v54, %v2509_v24  ;;  %v1334_v16 = vadd.f32 %v2594_v14, %v1320_v20 }
 0x337   :  { %v1323_v60 = vadd.f32 %v1661_v25, %v1250_v62 }
 0x339   :  { %v1335_v13 = vadd.f32 %v2595_v33, %v1323_v60 }
 0x33b   :  { %v1560_v46 = vpack.c.bf16 %v1335_v13, %v1334_v16 }
 0x33d   :  { %1569 = vst [vmem:[%s2553_s7 + $0x20] sm:$0xff] %v1560_v46  }

</bundles_post_ra>
